<compile_context>
chip_gen: v5e
topology: v5e:2x2
jax: 0.10.0
libtpu: 0.0.40
codegen_flags: <defaults>
</compile_context>

<pallas_src>
import numpy as np
import jax
import jax.numpy as jnp
from jax import lax
from jax.experimental import pallas as pl
from jax.experimental.pallas import tpu as pltpu


# ----------------------------------------------------------------------------- kernel
def bottleneck_kernel(x_ref, w1_ref, s1_ref, b1_ref, w2_ref, s2_ref, b2_ref,
                      w3_ref, s3_ref, b3_ref, o_ref):
    H, W, Cin = x_ref.shape[1], x_ref.shape[2], x_ref.shape[3]
    width = w1_ref.shape[1]
    Cout = w3_ref.shape[1]
    HW = H * W

    x = x_ref[0]                                   # (H, W, Cin) f32
    xr = x.reshape(HW, Cin)                        # flat residual (W is a mult of 8 -> free)

    # ---- conv1 (1x1) + bn1 + relu : one (HW, Cin) x (Cin, width) MXU matmul ----
    s1 = s1_ref[...]
    b1 = b1_ref[...]                               # (1, width) f32, loaded once
    t1 = jnp.dot(xr.astype(jnp.bfloat16), w1_ref[...],
                 preferred_element_type=jnp.float32)
    t1 = jnp.maximum(t1 * s1 + b1, 0.0)            # (HW, width) f32

    # ---- conv2 (3x3, pad=1) : 9 accumulating per-tap matmuls, taps via roll ----
    # Tap (dy, dx) needs t1 at flat index p + (dy-1)*W + (dx-1), with zeros outside
    # the image.  A static circular roll plus a boundary mask gives exactly that
    # (wrapped values land only on positions the mask zeroes out).
    h_idx = lax.broadcasted_iota(jnp.int32, (H, W, 1), 0).reshape(HW, 1)
    w_idx = lax.broadcasted_iota(jnp.int32, (H, W, 1), 1).reshape(HW, 1)

    acc = jnp.zeros((HW, width), jnp.float32)
    for dy in range(3):
        for dx in range(3):
            off = (dy - 1) * W + (dx - 1)
            if off == 0:
                tap = t1
            else:
                tap = pltpu.roll(t1, shift=(-off) % HW, axis=0)
            conds = []
            if dy == 0:
                conds.append(h_idx >= 1)
            elif dy == 2:
                conds.append(h_idx <= H - 2)
            if dx == 0:
                conds.append(w_idx >= 1)
            elif dx == 2:
                conds.append(w_idx <= W - 2)
            if conds:
                m = conds[0]
                for c in conds[1:]:
                    m = jnp.logical_and(m, c)
                tap = jnp.where(m, tap, 0.0)
            acc = acc + jnp.dot(tap.astype(jnp.bfloat16), w2_ref[dy * 3 + dx],
                                preferred_element_type=jnp.float32)
    t2 = jnp.maximum(acc * s2_ref[...] + b2_ref[...], 0.0)       # (HW, width) f32

    # ---- conv3 (1x1) + bn3 + residual add + relu ----
    t3 = jnp.dot(t2.astype(jnp.bfloat16), w3_ref[...],
                 preferred_element_type=jnp.float32)              # (HW, Cout) f32
    t3 = t3 * s3_ref[...] + b3_ref[...]
    out = jnp.maximum(t3 + xr, 0.0)
    o_ref[0] = out.reshape(H, W, Cout).astype(o_ref.dtype)


# ----------------------------------------------------------------------------- VMEM budget
def _physical_vmem_bytes():
    """Per-core physical VMEM; conservative fallback = v7x (64 MiB)."""
    try:
        info = pltpu.get_tpu_info()
        for attr in ("vmem_capacity_bytes", "vmem_bytes", "vmem_size_bytes"):
            v = getattr(info, attr, None)
            if v:
                return int(v)
    except Exception:
        pass
    return 64 << 20


def _vmem_limit_bytes(H, W, Cin, width, Cout):
    """Scoped-VMEM request sized from the per-step footprint, never the full chip."""
    f32, bf16 = 4, 2
    x_blk = H * W * Cin * f32
    o_blk = H * W * Cout * f32
    consts = ((Cin * width + 9 * width * width + width * Cout) * bf16
              + (2 * width + Cout) * 2 * f32)
    acts = H * W * (width * (3 * f32 + 2 * bf16) + Cout * f32)
    need = 2 * (x_blk + o_blk) + 2 * consts + acts + (8 << 20)    # dbl-buffer + headroom
    cap = _physical_vmem_bytes() * 3 // 4                          # leave compiler headroom
    return int(max(min(need, cap), min(32 << 20, cap)))


# ----------------------------------------------------------------------------- wrapper
def _prepare_kernel_params(params):
    """bf16 weights for the MXU; w2 reshaped to (9, Cin, Cout) per-tap; BN in f32."""
    w1, s1, b1, w2, s2, b2, w3, s3, b3 = params
    kh, kw, ci, co = w2.shape
    return (w1.astype(jnp.bfloat16), s1, b1,
            w2.reshape(kh * kw, ci, co).astype(jnp.bfloat16), s2, b2,
            w3.astype(jnp.bfloat16), s3, b3)


def _bottleneck_pallas(x, kp, vmem_limit_bytes):
    w1, s1, b1, w2t, s2, b2, w3, s3, b3 = kp
    N, H, W, Cin = x.shape
    Cout = w3.shape[1]

    def const_spec(a):
        nd = a.ndim
        return pl.BlockSpec(a.shape, lambda n, _nd=nd: (0,) * _nd)

    grid_spec = pltpu.PrefetchScalarGridSpec(
        num_scalar_prefetch=0,
        grid=(N,),
        in_specs=[
            pl.BlockSpec((1, H, W, Cin), lambda n: (n, 0, 0, 0)),   # one image per step
            const_spec(w1), const_spec(s1), const_spec(b1),
            const_spec(w2t), const_spec(s2), const_spec(b2),
            const_spec(w3), const_spec(s3), const_spec(b3),
        ],
        out_specs=pl.BlockSpec((1, H, W, Cout), lambda n: (n, 0, 0, 0)),
    )
    return pl.pallas_call(
        bottleneck_kernel,
        out_shape=jax.ShapeDtypeStruct((N, H, W, Cout), x.dtype),
        grid_spec=grid_spec,
        compiler_params=pltpu.CompilerParams(
            dimension_semantics=("parallel",),
            vmem_limit_bytes=vmem_limit_bytes,
        ),
    )(x, w1, s1, b1, w2t, s2, b2, w3, s3, b3)


def bottleneck_forward(x_nhwc, params):
    """Fused Bottleneck forward. x_nhwc: (N, H, W, Cin) f32, returns (N, H, W, Cin)."""
    w1, w3 = params[0], params[6]
    N, H, W, Cin = x_nhwc.shape
    width = w1.shape[1]
    Cout = w3.shape[1]
    if Cout != Cin:
        raise ValueError(
            "Bottleneck with stride=1 and downsample=None requires "
            "inplanes == planes*expansion for the residual add.")
    kp = _prepare_kernel_params(params)
    limit = _vmem_limit_bytes(H, W, Cin, width, Cout)
    return _bottleneck_pallas(x_nhwc, kp, limit)


def bottleneck_forward_nchw(x_nchw, params):
    """Convenience adapter for PyTorch-layout tensors (pays two layout transposes)."""
    x = jnp.transpose(x_nchw, (0, 2, 3, 1))
    out = bottleneck_forward(x, params)
    return jnp.transpose(out, (0, 3, 1, 2))


# ----------------------------------------------------------------------------- params / reference
def fold_bn(gamma, beta, mean, var, eps=1e-5):
    scale = gamma / jnp.sqrt(var + eps)
    bias = beta - mean * scale
    return scale.reshape(1, -1), bias.reshape(1, -1)


def make_params(key, inplanes, planes, expansion=4, base_width=64, groups=1):
    width = int(planes * (base_width / 64.0)) * groups
    out_ch = planes * expansion
    ks = jax.random.split(key, 12)

    # conv weights, stored already transposed for the kernel: (Cin, Cout) / HWIO
    w1 = jax.random.normal(ks[0], (inplanes, width), jnp.float32) * 0.1
    w2 = jax.random.normal(ks[1], (3, 3, width, width), jnp.float32) * 0.1
    w3 = jax.random.normal(ks[2], (width, out_ch), jnp.float32) * 0.1

    def bn_params(k, c):
        k1, k2, k3, k4 = jax.random.split(k, 4)
        gamma = 1.0 + 0.1 * jax.random.normal(k1, (c,), jnp.float32)
        beta = 0.1 * jax.random.normal(k2, (c,), jnp.float32)
        mean = 0.1 * jax.random.normal(k3, (c,), jnp.float32)
        var = jnp.abs(jax.random.normal(k4, (c,), jnp.float32)) + 0.5
        return fold_bn(gamma, beta, mean, var)

    s1, b1 = bn_params(ks[3], width)
    s2, b2 = bn_params(ks[4], width)
    s3, b3 = bn_params(ks[5], out_ch)
    return (w1, s1, b1, w2, s2, b2, w3, s3, b3)


def reference_forward(x_nhwc, params):
    """Pure-JAX f32 reference (XLA convs) for validation.  NHWC in/out."""
    w1, s1, b1, w2, s2, b2, w3, s3, b3 = params

    def conv1x1(a, w):
        return jnp.einsum('nhwc,cd->nhwd', a, w)

    t = jnp.maximum(conv1x1(x_nhwc, w1) * s1[0] + b1[0], 0.0)
    t = lax.conv_general_dilated(t, w2, window_strides=(1, 1),
                                 padding=((1, 1), (1, 1)),
                                 dimension_numbers=('NHWC', 'HWIO', 'NHWC'))
    t = jnp.maximum(t * s2[0] + b2[0], 0.0)
    t = conv1x1(t, w3) * s3[0] + b3[0]
    return jnp.maximum(t + x_nhwc, 0.0)


# ----------------------------------------------------------------------------- main
if __name__ == "__main__":
    # Small shapes consistent with the module: planes=4 -> width=4, out=16,
    # inplanes must equal planes*expansion=16 (stride=1, downsample=None).
    # Whole image per grid step -> grid=(N,)=2 parallel steps.
    N, planes, H, W = 2, 4, 16, 16
    inplanes = planes * 4

    key = jax.random.PRNGKey(0)
    kx, kp = jax.random.split(key)
    x = jax.random.normal(kx, (N, H, W, inplanes), jnp.float32)   # NHWC
    params = make_params(kp, inplanes, planes)

    out = jax.block_until_ready(bottleneck_forward(x, params))
    ref = jax.block_until_ready(reference_forward(x, params))

    assert out.shape == ref.shape == (N, H, W, inplanes)
    assert np.allclose(np.asarray(out), np.asarray(ref), rtol=3e-2, atol=3e-2), \
        "Pallas output does not match JAX reference"

    print("KERNEL_OK")
</pallas_src>

<mosaic_0001>
module attributes {stable_mosaic.version = 11 : i64} {
  func.func @bottleneck_kernel(%arg0: i32, %arg1: memref<1x16x16x16xf32, #tpu.memory_space<vmem>>, %arg2: memref<16x4xbf16, #tpu.memory_space<vmem>>, %arg3: memref<1x4xf32, #tpu.memory_space<vmem>>, %arg4: memref<1x4xf32, #tpu.memory_space<vmem>>, %arg5: memref<9x4x4xbf16, #tpu.memory_space<vmem>>, %arg6: memref<1x4xf32, #tpu.memory_space<vmem>>, %arg7: memref<1x4xf32, #tpu.memory_space<vmem>>, %arg8: memref<4x16xbf16, #tpu.memory_space<vmem>>, %arg9: memref<1x16xf32, #tpu.memory_space<vmem>>, %arg10: memref<1x16xf32, #tpu.memory_space<vmem>>, %arg11: memref<1x16x16x16xf32, #tpu.memory_space<vmem>>) attributes {dimension_semantics = [#tpu.dimension_semantics<parallel>], iteration_bounds = array<i64: 2>, scalar_prefetch = 0 : i64, scratch_operands = 0 : i64, tpu.core_type = #tpu.core_type<tc>, window_params = [{transform_indices = @transform_0, window_bounds = array<i64: 1, 16, 16, 16>}, {pipeline_mode = #tpu.pipeline_mode<synchronous>, transform_indices = @transform_1, window_bounds = array<i64: 16, 4>}, {pipeline_mode = #tpu.pipeline_mode<synchronous>, transform_indices = @transform_2, window_bounds = array<i64: 1, 4>}, {pipeline_mode = #tpu.pipeline_mode<synchronous>, transform_indices = @transform_3, window_bounds = array<i64: 1, 4>}, {pipeline_mode = #tpu.pipeline_mode<synchronous>, transform_indices = @transform_4, window_bounds = array<i64: 9, 4, 4>}, {pipeline_mode = #tpu.pipeline_mode<synchronous>, transform_indices = @transform_5, window_bounds = array<i64: 1, 4>}, {pipeline_mode = #tpu.pipeline_mode<synchronous>, transform_indices = @transform_6, window_bounds = array<i64: 1, 4>}, {pipeline_mode = #tpu.pipeline_mode<synchronous>, transform_indices = @transform_7, window_bounds = array<i64: 4, 16>}, {pipeline_mode = #tpu.pipeline_mode<synchronous>, transform_indices = @transform_8, window_bounds = array<i64: 1, 16>}, {pipeline_mode = #tpu.pipeline_mode<synchronous>, transform_indices = @transform_9, window_bounds = array<i64: 1, 16>}, {transform_indices = @transform_10, window_bounds = array<i64: 1, 16, 16, 16>}]} {
    %c0 = arith.constant 0 : index
    %c0_0 = arith.constant 0 : index
    %c0_1 = arith.constant 0 : index
    %c0_2 = arith.constant 0 : index
    %0 = vector.load %arg1[%c0, %c0_0, %c0_1, %c0_2] : memref<1x16x16x16xf32, #tpu.memory_space<vmem>>, vector<1x16x16x16xf32>
    %1 = vector.shape_cast %0 : vector<1x16x16x16xf32> to vector<16x16x16xf32>
    %2 = vector.shape_cast %1 : vector<16x16x16xf32> to vector<256x16xf32>
    %c0_3 = arith.constant 0 : index
    %c0_4 = arith.constant 0 : index
    %3 = vector.load %arg3[%c0_3, %c0_4] : memref<1x4xf32, #tpu.memory_space<vmem>>, vector<1x4xf32>
    %c0_5 = arith.constant 0 : index
    %c0_6 = arith.constant 0 : index
    %4 = vector.load %arg4[%c0_5, %c0_6] : memref<1x4xf32, #tpu.memory_space<vmem>>, vector<1x4xf32>
    %5 = arith.truncf %2 : vector<256x16xf32> to vector<256x16xbf16>
    %c0_7 = arith.constant 0 : index
    %c0_8 = arith.constant 0 : index
    %6 = vector.load %arg2[%c0_7, %c0_8] : memref<16x4xbf16, #tpu.memory_space<vmem>>, vector<16x4xbf16>
    %cst = arith.constant dense<0.000000e+00> : vector<256x4xf32>
    %7 = tpu.matmul %5, %6, %cst {dimension_numbers = #tpu.dot_dimension_numbers<[1], [0], [0], [1], [0, 0, 1, 1], [], []>} : vector<256x16xbf16>, vector<16x4xbf16>, vector<256x4xf32> -> vector<256x4xf32>
    %8 = vector.broadcast %3 : vector<1x4xf32> to vector<256x4xf32>
    %9 = arith.mulf %7, %8 : vector<256x4xf32>
    %10 = vector.broadcast %4 : vector<1x4xf32> to vector<256x4xf32>
    %11 = arith.addf %9, %10 : vector<256x4xf32>
    %cst_9 = arith.constant 0.000000e+00 : f32
    %12 = vector.broadcast %cst_9 : f32 to vector<256x4xf32>
    %13 = arith.maximumf %11, %12 : vector<256x4xf32>
    %14 = tpu.iota {dimensions = array<i32: 0>} : vector<16x16x1xi32>
    %15 = vector.shape_cast %14 : vector<16x16x1xi32> to vector<256x1xi32>
    %16 = tpu.iota {dimensions = array<i32: 1>} : vector<16x16x1xi32>
    %17 = vector.shape_cast %16 : vector<16x16x1xi32> to vector<256x1xi32>
    %cst_10 = arith.constant 0.000000e+00 : f32
    %18 = vector.broadcast %cst_10 : f32 to vector<256x4xf32>
    %c17_i32 = arith.constant 17 : i32
    %19 = tpu.dynamic_rotate %13 by %c17_i32 dim 0 : vector<256x4xf32>, i32 -> vector<256x4xf32>
    %c1_i32 = arith.constant 1 : i32
    %20 = vector.broadcast %c1_i32 : i32 to vector<256x1xi32>
    %21 = arith.cmpi sge, %15, %20 : vector<256x1xi32>
    %c1_i32_11 = arith.constant 1 : i32
    %22 = vector.broadcast %c1_i32_11 : i32 to vector<256x1xi32>
    %23 = arith.cmpi sge, %17, %22 : vector<256x1xi32>
    %24 = arith.andi %21, %23 : vector<256x1xi1>
    %cst_12 = arith.constant 0.000000e+00 : f32
    %25 = vector.shape_cast %24 : vector<256x1xi1> to vector<256x1xi1>
    %26 = vector.broadcast %25 : vector<256x1xi1> to vector<256x4xi1>
    %27 = vector.broadcast %cst_12 : f32 to vector<256x4xf32>
    %28 = arith.select %26, %19, %27 : vector<256x4xi1>, vector<256x4xf32>
    %29 = arith.truncf %28 : vector<256x4xf32> to vector<256x4xbf16>
    %c0_13 = arith.constant 0 : index
    %c0_14 = arith.constant 0 : index
    %c0_15 = arith.constant 0 : index
    %30 = vector.load %arg5[%c0_13, %c0_14, %c0_15] : memref<9x4x4xbf16, #tpu.memory_space<vmem>>, vector<1x4x4xbf16>
    %31 = vector.shape_cast %30 : vector<1x4x4xbf16> to vector<4x4xbf16>
    %cst_16 = arith.constant dense<0.000000e+00> : vector<256x4xf32>
    %32 = tpu.matmul %29, %31, %cst_16 {dimension_numbers = #tpu.dot_dimension_numbers<[1], [0], [0], [1], [0, 0, 1, 1], [], []>} : vector<256x4xbf16>, vector<4x4xbf16>, vector<256x4xf32> -> vector<256x4xf32>
    %33 = arith.addf %18, %32 : vector<256x4xf32>
    %c16_i32 = arith.constant 16 : i32
    %34 = tpu.dynamic_rotate %13 by %c16_i32 dim 0 : vector<256x4xf32>, i32 -> vector<256x4xf32>
    %c1_i32_17 = arith.constant 1 : i32
    %35 = vector.broadcast %c1_i32_17 : i32 to vector<256x1xi32>
    %36 = arith.cmpi sge, %15, %35 : vector<256x1xi32>
    %cst_18 = arith.constant 0.000000e+00 : f32
    %37 = vector.shape_cast %36 : vector<256x1xi1> to vector<256x1xi1>
    %38 = vector.broadcast %37 : vector<256x1xi1> to vector<256x4xi1>
    %39 = vector.broadcast %cst_18 : f32 to vector<256x4xf32>
    %40 = arith.select %38, %34, %39 : vector<256x4xi1>, vector<256x4xf32>
    %41 = arith.truncf %40 : vector<256x4xf32> to vector<256x4xbf16>
    %c1 = arith.constant 1 : index
    %c0_19 = arith.constant 0 : index
    %c0_20 = arith.constant 0 : index
    %42 = vector.load %arg5[%c1, %c0_19, %c0_20] : memref<9x4x4xbf16, #tpu.memory_space<vmem>>, vector<1x4x4xbf16>
    %43 = vector.shape_cast %42 : vector<1x4x4xbf16> to vector<4x4xbf16>
    %cst_21 = arith.constant dense<0.000000e+00> : vector<256x4xf32>
    %44 = tpu.matmul %41, %43, %cst_21 {dimension_numbers = #tpu.dot_dimension_numbers<[1], [0], [0], [1], [0, 0, 1, 1], [], []>} : vector<256x4xbf16>, vector<4x4xbf16>, vector<256x4xf32> -> vector<256x4xf32>
    %45 = arith.addf %33, %44 : vector<256x4xf32>
    %c15_i32 = arith.constant 15 : i32
    %46 = tpu.dynamic_rotate %13 by %c15_i32 dim 0 : vector<256x4xf32>, i32 -> vector<256x4xf32>
    %c1_i32_22 = arith.constant 1 : i32
    %47 = vector.broadcast %c1_i32_22 : i32 to vector<256x1xi32>
    %48 = arith.cmpi sge, %15, %47 : vector<256x1xi32>
    %c14_i32 = arith.constant 14 : i32
    %49 = vector.broadcast %c14_i32 : i32 to vector<256x1xi32>
    %50 = arith.cmpi sle, %17, %49 : vector<256x1xi32>
    %51 = arith.andi %48, %50 : vector<256x1xi1>
    %cst_23 = arith.constant 0.000000e+00 : f32
    %52 = vector.shape_cast %51 : vector<256x1xi1> to vector<256x1xi1>
    %53 = vector.broadcast %52 : vector<256x1xi1> to vector<256x4xi1>
    %54 = vector.broadcast %cst_23 : f32 to vector<256x4xf32>
    %55 = arith.select %53, %46, %54 : vector<256x4xi1>, vector<256x4xf32>
    %56 = arith.truncf %55 : vector<256x4xf32> to vector<256x4xbf16>
    %c2 = arith.constant 2 : index
    %c0_24 = arith.constant 0 : index
    %c0_25 = arith.constant 0 : index
    %57 = vector.load %arg5[%c2, %c0_24, %c0_25] : memref<9x4x4xbf16, #tpu.memory_space<vmem>>, vector<1x4x4xbf16>
    %58 = vector.shape_cast %57 : vector<1x4x4xbf16> to vector<4x4xbf16>
    %cst_26 = arith.constant dense<0.000000e+00> : vector<256x4xf32>
    %59 = tpu.matmul %56, %58, %cst_26 {dimension_numbers = #tpu.dot_dimension_numbers<[1], [0], [0], [1], [0, 0, 1, 1], [], []>} : vector<256x4xbf16>, vector<4x4xbf16>, vector<256x4xf32> -> vector<256x4xf32>
    %60 = arith.addf %45, %59 : vector<256x4xf32>
    %c1_i32_27 = arith.constant 1 : i32
    %61 = tpu.dynamic_rotate %13 by %c1_i32_27 dim 0 : vector<256x4xf32>, i32 -> vector<256x4xf32>
    %c1_i32_28 = arith.constant 1 : i32
    %62 = vector.broadcast %c1_i32_28 : i32 to vector<256x1xi32>
    %63 = arith.cmpi sge, %17, %62 : vector<256x1xi32>
    %cst_29 = arith.constant 0.000000e+00 : f32
    %64 = vector.shape_cast %63 : vector<256x1xi1> to vector<256x1xi1>
    %65 = vector.broadcast %64 : vector<256x1xi1> to vector<256x4xi1>
    %66 = vector.broadcast %cst_29 : f32 to vector<256x4xf32>
    %67 = arith.select %65, %61, %66 : vector<256x4xi1>, vector<256x4xf32>
    %68 = arith.truncf %67 : vector<256x4xf32> to vector<256x4xbf16>
    %c3 = arith.constant 3 : index
    %c0_30 = arith.constant 0 : index
    %c0_31 = arith.constant 0 : index
    %69 = vector.load %arg5[%c3, %c0_30, %c0_31] : memref<9x4x4xbf16, #tpu.memory_space<vmem>>, vector<1x4x4xbf16>
    %70 = vector.shape_cast %69 : vector<1x4x4xbf16> to vector<4x4xbf16>
    %cst_32 = arith.constant dense<0.000000e+00> : vector<256x4xf32>
    %71 = tpu.matmul %68, %70, %cst_32 {dimension_numbers = #tpu.dot_dimension_numbers<[1], [0], [0], [1], [0, 0, 1, 1], [], []>} : vector<256x4xbf16>, vector<4x4xbf16>, vector<256x4xf32> -> vector<256x4xf32>
    %72 = arith.addf %60, %71 : vector<256x4xf32>
    %73 = arith.truncf %13 : vector<256x4xf32> to vector<256x4xbf16>
    %c4 = arith.constant 4 : index
    %c0_33 = arith.constant 0 : index
    %c0_34 = arith.constant 0 : index
    %74 = vector.load %arg5[%c4, %c0_33, %c0_34] : memref<9x4x4xbf16, #tpu.memory_space<vmem>>, vector<1x4x4xbf16>
    %75 = vector.shape_cast %74 : vector<1x4x4xbf16> to vector<4x4xbf16>
    %cst_35 = arith.constant dense<0.000000e+00> : vector<256x4xf32>
    %76 = tpu.matmul %73, %75, %cst_35 {dimension_numbers = #tpu.dot_dimension_numbers<[1], [0], [0], [1], [0, 0, 1, 1], [], []>} : vector<256x4xbf16>, vector<4x4xbf16>, vector<256x4xf32> -> vector<256x4xf32>
    %77 = arith.addf %72, %76 : vector<256x4xf32>
    %c255_i32 = arith.constant 255 : i32
    %78 = tpu.dynamic_rotate %13 by %c255_i32 dim 0 : vector<256x4xf32>, i32 -> vector<256x4xf32>
    %c14_i32_36 = arith.constant 14 : i32
    %79 = vector.broadcast %c14_i32_36 : i32 to vector<256x1xi32>
    %80 = arith.cmpi sle, %17, %79 : vector<256x1xi32>
    %cst_37 = arith.constant 0.000000e+00 : f32
    %81 = vector.shape_cast %80 : vector<256x1xi1> to vector<256x1xi1>
    %82 = vector.broadcast %81 : vector<256x1xi1> to vector<256x4xi1>
    %83 = vector.broadcast %cst_37 : f32 to vector<256x4xf32>
    %84 = arith.select %82, %78, %83 : vector<256x4xi1>, vector<256x4xf32>
    %85 = arith.truncf %84 : vector<256x4xf32> to vector<256x4xbf16>
    %c5 = arith.constant 5 : index
    %c0_38 = arith.constant 0 : index
    %c0_39 = arith.constant 0 : index
    %86 = vector.load %arg5[%c5, %c0_38, %c0_39] : memref<9x4x4xbf16, #tpu.memory_space<vmem>>, vector<1x4x4xbf16>
    %87 = vector.shape_cast %86 : vector<1x4x4xbf16> to vector<4x4xbf16>
    %cst_40 = arith.constant dense<0.000000e+00> : vector<256x4xf32>
    %88 = tpu.matmul %85, %87, %cst_40 {dimension_numbers = #tpu.dot_dimension_numbers<[1], [0], [0], [1], [0, 0, 1, 1], [], []>} : vector<256x4xbf16>, vector<4x4xbf16>, vector<256x4xf32> -> vector<256x4xf32>
    %89 = arith.addf %77, %88 : vector<256x4xf32>
    %c241_i32 = arith.constant 241 : i32
    %90 = tpu.dynamic_rotate %13 by %c241_i32 dim 0 : vector<256x4xf32>, i32 -> vector<256x4xf32>
    %c14_i32_41 = arith.constant 14 : i32
    %91 = vector.broadcast %c14_i32_41 : i32 to vector<256x1xi32>
    %92 = arith.cmpi sle, %15, %91 : vector<256x1xi32>
    %c1_i32_42 = arith.constant 1 : i32
    %93 = vector.broadcast %c1_i32_42 : i32 to vector<256x1xi32>
    %94 = arith.cmpi sge, %17, %93 : vector<256x1xi32>
    %95 = arith.andi %92, %94 : vector<256x1xi1>
    %cst_43 = arith.constant 0.000000e+00 : f32
    %96 = vector.shape_cast %95 : vector<256x1xi1> to vector<256x1xi1>
    %97 = vector.broadcast %96 : vector<256x1xi1> to vector<256x4xi1>
    %98 = vector.broadcast %cst_43 : f32 to vector<256x4xf32>
    %99 = arith.select %97, %90, %98 : vector<256x4xi1>, vector<256x4xf32>
    %100 = arith.truncf %99 : vector<256x4xf32> to vector<256x4xbf16>
    %c6 = arith.constant 6 : index
    %c0_44 = arith.constant 0 : index
    %c0_45 = arith.constant 0 : index
    %101 = vector.load %arg5[%c6, %c0_44, %c0_45] : memref<9x4x4xbf16, #tpu.memory_space<vmem>>, vector<1x4x4xbf16>
    %102 = vector.shape_cast %101 : vector<1x4x4xbf16> to vector<4x4xbf16>
    %cst_46 = arith.constant dense<0.000000e+00> : vector<256x4xf32>
    %103 = tpu.matmul %100, %102, %cst_46 {dimension_numbers = #tpu.dot_dimension_numbers<[1], [0], [0], [1], [0, 0, 1, 1], [], []>} : vector<256x4xbf16>, vector<4x4xbf16>, vector<256x4xf32> -> vector<256x4xf32>
    %104 = arith.addf %89, %103 : vector<256x4xf32>
    %c240_i32 = arith.constant 240 : i32
    %105 = tpu.dynamic_rotate %13 by %c240_i32 dim 0 : vector<256x4xf32>, i32 -> vector<256x4xf32>
    %c14_i32_47 = arith.constant 14 : i32
    %106 = vector.broadcast %c14_i32_47 : i32 to vector<256x1xi32>
    %107 = arith.cmpi sle, %15, %106 : vector<256x1xi32>
    %cst_48 = arith.constant 0.000000e+00 : f32
    %108 = vector.shape_cast %107 : vector<256x1xi1> to vector<256x1xi1>
    %109 = vector.broadcast %108 : vector<256x1xi1> to vector<256x4xi1>
    %110 = vector.broadcast %cst_48 : f32 to vector<256x4xf32>
    %111 = arith.select %109, %105, %110 : vector<256x4xi1>, vector<256x4xf32>
    %112 = arith.truncf %111 : vector<256x4xf32> to vector<256x4xbf16>
    %c7 = arith.constant 7 : index
    %c0_49 = arith.constant 0 : index
    %c0_50 = arith.constant 0 : index
    %113 = vector.load %arg5[%c7, %c0_49, %c0_50] : memref<9x4x4xbf16, #tpu.memory_space<vmem>>, vector<1x4x4xbf16>
    %114 = vector.shape_cast %113 : vector<1x4x4xbf16> to vector<4x4xbf16>
    %cst_51 = arith.constant dense<0.000000e+00> : vector<256x4xf32>
    %115 = tpu.matmul %112, %114, %cst_51 {dimension_numbers = #tpu.dot_dimension_numbers<[1], [0], [0], [1], [0, 0, 1, 1], [], []>} : vector<256x4xbf16>, vector<4x4xbf16>, vector<256x4xf32> -> vector<256x4xf32>
    %116 = arith.addf %104, %115 : vector<256x4xf32>
    %c239_i32 = arith.constant 239 : i32
    %117 = tpu.dynamic_rotate %13 by %c239_i32 dim 0 : vector<256x4xf32>, i32 -> vector<256x4xf32>
    %c14_i32_52 = arith.constant 14 : i32
    %118 = vector.broadcast %c14_i32_52 : i32 to vector<256x1xi32>
    %119 = arith.cmpi sle, %15, %118 : vector<256x1xi32>
    %c14_i32_53 = arith.constant 14 : i32
    %120 = vector.broadcast %c14_i32_53 : i32 to vector<256x1xi32>
    %121 = arith.cmpi sle, %17, %120 : vector<256x1xi32>
    %122 = arith.andi %119, %121 : vector<256x1xi1>
    %cst_54 = arith.constant 0.000000e+00 : f32
    %123 = vector.shape_cast %122 : vector<256x1xi1> to vector<256x1xi1>
    %124 = vector.broadcast %123 : vector<256x1xi1> to vector<256x4xi1>
    %125 = vector.broadcast %cst_54 : f32 to vector<256x4xf32>
    %126 = arith.select %124, %117, %125 : vector<256x4xi1>, vector<256x4xf32>
    %127 = arith.truncf %126 : vector<256x4xf32> to vector<256x4xbf16>
    %c8 = arith.constant 8 : index
    %c0_55 = arith.constant 0 : index
    %c0_56 = arith.constant 0 : index
    %128 = vector.load %arg5[%c8, %c0_55, %c0_56] : memref<9x4x4xbf16, #tpu.memory_space<vmem>>, vector<1x4x4xbf16>
    %129 = vector.shape_cast %128 : vector<1x4x4xbf16> to vector<4x4xbf16>
    %cst_57 = arith.constant dense<0.000000e+00> : vector<256x4xf32>
    %130 = tpu.matmul %127, %129, %cst_57 {dimension_numbers = #tpu.dot_dimension_numbers<[1], [0], [0], [1], [0, 0, 1, 1], [], []>} : vector<256x4xbf16>, vector<4x4xbf16>, vector<256x4xf32> -> vector<256x4xf32>
    %131 = arith.addf %116, %130 : vector<256x4xf32>
    %c0_58 = arith.constant 0 : index
    %c0_59 = arith.constant 0 : index
    %132 = vector.load %arg6[%c0_58, %c0_59] : memref<1x4xf32, #tpu.memory_space<vmem>>, vector<1x4xf32>
    %133 = vector.broadcast %132 : vector<1x4xf32> to vector<256x4xf32>
    %134 = arith.mulf %131, %133 : vector<256x4xf32>
    %c0_60 = arith.constant 0 : index
    %c0_61 = arith.constant 0 : index
    %135 = vector.load %arg7[%c0_60, %c0_61] : memref<1x4xf32, #tpu.memory_space<vmem>>, vector<1x4xf32>
    %136 = vector.broadcast %135 : vector<1x4xf32> to vector<256x4xf32>
    %137 = arith.addf %134, %136 : vector<256x4xf32>
    %cst_62 = arith.constant 0.000000e+00 : f32
    %138 = vector.broadcast %cst_62 : f32 to vector<256x4xf32>
    %139 = arith.maximumf %137, %138 : vector<256x4xf32>
    %140 = arith.truncf %139 : vector<256x4xf32> to vector<256x4xbf16>
    %c0_63 = arith.constant 0 : index
    %c0_64 = arith.constant 0 : index
    %141 = vector.load %arg8[%c0_63, %c0_64] : memref<4x16xbf16, #tpu.memory_space<vmem>>, vector<4x16xbf16>
    %cst_65 = arith.constant dense<0.000000e+00> : vector<256x16xf32>
    %142 = tpu.matmul %140, %141, %cst_65 {dimension_numbers = #tpu.dot_dimension_numbers<[1], [0], [0], [1], [0, 0, 1, 1], [], []>} : vector<256x4xbf16>, vector<4x16xbf16>, vector<256x16xf32> -> vector<256x16xf32>
    %c0_66 = arith.constant 0 : index
    %c0_67 = arith.constant 0 : index
    %143 = vector.load %arg9[%c0_66, %c0_67] : memref<1x16xf32, #tpu.memory_space<vmem>>, vector<1x16xf32>
    %144 = vector.broadcast %143 : vector<1x16xf32> to vector<256x16xf32>
    %145 = arith.mulf %142, %144 : vector<256x16xf32>
    %c0_68 = arith.constant 0 : index
    %c0_69 = arith.constant 0 : index
    %146 = vector.load %arg10[%c0_68, %c0_69] : memref<1x16xf32, #tpu.memory_space<vmem>>, vector<1x16xf32>
    %147 = vector.broadcast %146 : vector<1x16xf32> to vector<256x16xf32>
    %148 = arith.addf %145, %147 : vector<256x16xf32>
    %149 = arith.addf %148, %2 : vector<256x16xf32>
    %cst_70 = arith.constant 0.000000e+00 : f32
    %150 = vector.broadcast %cst_70 : f32 to vector<256x16xf32>
    %151 = arith.maximumf %149, %150 : vector<256x16xf32>
    %152 = vector.shape_cast %151 : vector<256x16xf32> to vector<16x16x16xf32>
    %c0_71 = arith.constant 0 : index
    %c0_72 = arith.constant 0 : index
    %c0_73 = arith.constant 0 : index
    %c0_74 = arith.constant 0 : index
    %153 = vector.load %arg11[%c0_71, %c0_72, %c0_73, %c0_74] : memref<1x16x16x16xf32, #tpu.memory_space<vmem>>, vector<1x16x16x16xf32>
    %154 = vector.shape_cast %153 : vector<1x16x16x16xf32> to vector<16x16x16xf32>
    %155 = vector.shape_cast %152 : vector<16x16x16xf32> to vector<1x16x16x16xf32>
    tpu.vector_store %arg11[%c0_71, %c0_72, %c0_73, %c0_74], %155 {strides = array<i32>} : memref<1x16x16x16xf32, #tpu.memory_space<vmem>>, vector<1x16x16x16xf32>,
    return
  }
  func.func @transform_0(%arg0: i32) -> (i32, i32, i32, i32) {
    %c0_i32 = arith.constant 0 : i32
    %c0_i32_0 = arith.constant 0 : i32
    %c0_i32_1 = arith.constant 0 : i32
    %c0_i32_2 = arith.constant 0 : i32
    return %arg0, %c0_i32, %c0_i32_0, %c0_i32_1 : i32, i32, i32, i32
  }
  func.func @transform_1(%arg0: i32) -> (i32, i32) {
    %c0_i32 = arith.constant 0 : i32
    %c0_i32_0 = arith.constant 0 : i32
    %c0_i32_1 = arith.constant 0 : i32
    return %c0_i32, %c0_i32_0 : i32, i32
  }
  func.func @transform_2(%arg0: i32) -> (i32, i32) {
    %c0_i32 = arith.constant 0 : i32
    %c0_i32_0 = arith.constant 0 : i32
    %c0_i32_1 = arith.constant 0 : i32
    return %c0_i32, %c0_i32_0 : i32, i32
  }
  func.func @transform_3(%arg0: i32) -> (i32, i32) {
    %c0_i32 = arith.constant 0 : i32
    %c0_i32_0 = arith.constant 0 : i32
    %c0_i32_1 = arith.constant 0 : i32
    return %c0_i32, %c0_i32_0 : i32, i32
  }
  func.func @transform_4(%arg0: i32) -> (i32, i32, i32) {
    %c0_i32 = arith.constant 0 : i32
    %c0_i32_0 = arith.constant 0 : i32
    %c0_i32_1 = arith.constant 0 : i32
    %c0_i32_2 = arith.constant 0 : i32
    return %c0_i32, %c0_i32_0, %c0_i32_1 : i32, i32, i32
  }
  func.func @transform_5(%arg0: i32) -> (i32, i32) {
    %c0_i32 = arith.constant 0 : i32
    %c0_i32_0 = arith.constant 0 : i32
    %c0_i32_1 = arith.constant 0 : i32
    return %c0_i32, %c0_i32_0 : i32, i32
  }
  func.func @transform_6(%arg0: i32) -> (i32, i32) {
    %c0_i32 = arith.constant 0 : i32
    %c0_i32_0 = arith.constant 0 : i32
    %c0_i32_1 = arith.constant 0 : i32
    return %c0_i32, %c0_i32_0 : i32, i32
  }
  func.func @transform_7(%arg0: i32) -> (i32, i32) {
    %c0_i32 = arith.constant 0 : i32
    %c0_i32_0 = arith.constant 0 : i32
    %c0_i32_1 = arith.constant 0 : i32
    return %c0_i32, %c0_i32_0 : i32, i32
  }
  func.func @transform_8(%arg0: i32) -> (i32, i32) {
    %c0_i32 = arith.constant 0 : i32
    %c0_i32_0 = arith.constant 0 : i32
    %c0_i32_1 = arith.constant 0 : i32
    return %c0_i32, %c0_i32_0 : i32, i32
  }
  func.func @transform_9(%arg0: i32) -> (i32, i32) {
    %c0_i32 = arith.constant 0 : i32
    %c0_i32_0 = arith.constant 0 : i32
    %c0_i32_1 = arith.constant 0 : i32
    return %c0_i32, %c0_i32_0 : i32, i32
  }
  func.func @transform_10(%arg0: i32) -> (i32, i32, i32, i32) {
    %c0_i32 = arith.constant 0 : i32
    %c0_i32_0 = arith.constant 0 : i32
    %c0_i32_1 = arith.constant 0 : i32
    %c0_i32_2 = arith.constant 0 : i32
    return %arg0, %c0_i32, %c0_i32_0, %c0_i32_1 : i32, i32, i32, i32
  }
}

</mosaic_0001>

<bundles_post_ra>
// kernel: tpu_custom_call.1
= control target key start
LH: loop header
LB: loop body
LE: loop exit
PB: predicated region body
PF: predicated region fallthrough
CT: control target
= control target key end

     0   :  { %15 = vsyncpa [#allocation3], 0  ;;  %s5066_s0 = inlined_call_operand.hbm [shape: f32[2,16,16,16], index: 0, kind: input, shape index: {}]   ;;  %s5067_s1 = inlined_call_operand.vmem [shape: bf16[16,4], index: 1, kind: input, shape index: {}]   ;;  %s5068_s2 = inlined_call_operand.vmem [shape: f32[1,4], index: 2, kind: input, shape index: {}]   ;;  %s5069_s3 = inlined_call_operand.vmem [shape: f32[1,4], index: 3, kind: input, shape index: {}]   ;;  %s5070_s4 = inlined_call_operand.vmem [shape: bf16[9,4,4], index: 4, kind: input, shape index: {}]   ;;  %s5071_s5 = inlined_call_operand.vmem [shape: f32[1,4], index: 5, kind: input, shape index: {}]   ;;  %s5072_s6 = inlined_call_operand.vmem [shape: f32[1,4], index: 6, kind: input, shape index: {}]   ;;  %s5073_s7 = inlined_call_operand.vmem [shape: bf16[4,16], index: 7, kind: input, shape index: {}]   ;;  %s5074_s8 = inlined_call_operand.vmem [shape: f32[1,16], index: 8, kind: input, shape index: {}]   ;;  %s5075_s9 = inlined_call_operand.vmem [shape: f32[1,16], index: 9, kind: input, shape index: {}]   ;;  %s5076_s10 = inlined_call_operand.hbm [shape: f32[2,16,16,16], index: 10, kind: output, shape index: {}]  }
   0x1   :  { %17 = vsyncpa [#allocation3 + $0x1], 0 }
   0x2   :  { %18 = vsyncpa [#allocation4], 0 }
   0x3   :  { %20 = vsyncpa [#allocation4 + $0x1], 0  ;;  %s3122_s13 = smov 0   ;;  %s3124_s14 = smov 0  }
   0x4   :  { %s3126_s15 = smov 0   ;;  %s3128_s16 = smov 0  }
   0x5 LB: > { %5102 = sst [smem:[#allocation8_spill]] %s3056_s15  ;;  %s3143_s17 = sadd.s32 4294967295, %s3060_s16   ;;  %s3060_s16 = sphi %s3128_s16, %s5327_s16   ;;  %s3056_s15 = sphi %s3126_s15, %s5329_s15   ;;  %s3052_s14 = sphi %s3124_s14, %s5331_s14   ;;  %s3048_s13 = sphi %s3122_s13, %s5330_s13  }
   0x6   : > { %s2673_s18 = sadd.s32 4294967294, %s3060_s16   ;;  %s3147_s19 = sadd.s32 1, %s3060_s16  }
   0x7   : > { %5103 = sst [smem:[#allocation9_spill]] %s3147_s19  ;;  %s33_s20 = sadd.s32 1, %s3056_s15 }
   0x8   : > { %s30_s21 = ssub.s32 %s3060_s16, %s3147_s19  ;;  %p40_p0 = scmp.ne.s32.totalorder %s3056_s15, %s3052_s14 }
   0x9   : > { %p31_p1 = scmp.eq.s32.totalorder %s30_s21, 0  ;;  %p41_p2 = scmp.eq.s32.totalorder %s3060_s16, 0 }
   0xa   : > { %p46_p3 = scmp.ne.s32.totalorder %s3052_s14, %s3048_s13  ;;  %p47_p4 = scmp.eq.s32.totalorder %s3143_s17, 0 }
   0xb   : > { %s3159_s22 = scalar_select %p31_p1, %s3056_s15, %s33_s20  }
   0xc   : > { %p3161_p5 = por %p41_p2, %p40_p0  ;;  %p3165_p6 = por %p47_p4, %p46_p3 }
   0xd   : > { %5104 = sst [smem:[#allocation10_spill]] %s3159_s22  ;;  %p259_p7 = scmp.eq.s32.totalorder %s3143_s17, 1 }
   0xe   : > { %p265_p8 = scmp.eq.s32.totalorder %s2673_s18, 1  ;;  %p2887_p10 = scmp.lt.s32.totalorder %s3060_s16, 2 }
   0xf   : > { %p3172_p11 = por %p259_p7, %p40_p0  ;;  %s312_s27 = sand.u32 1, %s3056_s15  }
  0x10   : > { %p3176_p12 = por %p265_p8, %p46_p3  ;;  %s2869_s28 = sshll.u32 %s3060_s16, 8 }
  0x11   : > { %s2676_s29 = sshll.u32 %s312_s27, 8  ;;  %s321_s12 = scalar_lea.hbm %s5066_s0, %s2869_s28 }
  0x12   : > { %s5108_s26 = scalar_select %p3176_p12, 1, 0 }
  0x13   : > { %s322_s20 = sshll.u32 %s321_s12, 4  ;;  %s316_s18 = scalar_lea.vmem [#allocation2], %s2676_s29  ;;  %s323_s20 = int_to_ptr.hbm [resolvable:$true] %s322_s20 }
  0x14   : > { %5109 = sst [smem:[#allocation11_spill]] %s5108_s26  ;;  %s324_s21 = sshll.u32 %s316_s18, 4  ;;  %s325_s21 = int_to_ptr.vmem [resolvable:$true] %s324_s21 }
  0x15   : > { %p3187_p13 = pnand %p2887_p10, %p3161_p5  ;;  %p2679_p0 = scmp.ge.s32.totalorder %s3060_s16, 1 }
  0x16   : > { %p332_p1 = scmp.lt.s32.totalorder %s3060_s16, 3  ;;  %s313_s15 = scalar_lea.sflag [#allocation3], %s312_s27 }
  0x17   : > { %s2964_s19 = sshra.s32 %s323_s20, 4  ;;  %p2968_p3 = pneg %p3187_p13  ;;  %s2965_s19 = int_to_ptr.hbm [resolvable:$true] %s2964_s19 }
  0x18   : > { %s2966_s26 = scalar_lea.hbm %s2965_s19, 256  ;;  %s2971_s23 = scalar_lea.hbm %s5066_s0, 512 }
  0x19   : > { %p2967_p2 = scmp.ne.s32.totalorder %s2965_s19, %s2966_s26  ;;  %p2972_p5 = scmp.lt.s32.totalorder %s2965_s19, %s5066_s0 }
  0x1a   : > { %p2973_p8 = scmp.lt.s32.totalorder %s2971_s23, %s2966_s26 }
  0x1b   : > { %p2969_p4 = pnand %p2968_p3, %p2967_p2 }
  0x1c   : > { %p2974_p10 = por %p2973_p8, %p2972_p5 }
  0x1d   : > { %p2970_p7 = pneg %p2969_p4 }
  0x1f   : > { %p2975_p9 = pnand %p2974_p10, %p2970_p7 }
  0x21   : > { %2978 = shalt.err (!%p2975_p9)
}
  0x22   : > { %s3062_s27 = smov 128   ;;  %s3063_s12 = smov 8  }
  0x23   : > { %2882 = dma.hbm_to_vmem [thread:$0]  (!%p3187_p13), %s323_s20, 4096, %s325_s21, %s313_s15, %s3062_s27, %s3062_s27, %s3063_s12  }
  0x24   : > { %p333_p2 = pnand %p2679_p0, %p332_p1 }
  0x26   : > { %336 = sbr.rel (%p333_p2) target bundleno = 1299 (0x513), region = 60 }
  0x2b   : > { %s3208_s18 = sand.u32 1, %s3052_s14  }
  0x2c   : > { %s2680_s19 = sshll.u32 %s3208_s18, 8  ;;  %s339_s26 = scalar_lea.sflag [#allocation3], %s3208_s18 }
  0x2d   : > { %s3214_s28 = scalar_lea.vmem [#allocation2], %s2680_s19 }
  0x2e   : > { %3039 = dma.done.wait (%p3165_p6), %s339_s26, 4096  }
  0x2f   : > { %3041 = vsyncadd (%p3165_p6), %s339_s26, 4294963200  ;;  %v2870_v0 = vld [vmem:[%s5067_s1] sm:$0xff]  ;;  %v382_v2 = vld [vmem:[%s3214_s28 + $0x8] sm:$0xff]  ;;  %vm439_vm0 = vcmask 130048   ;;  %vm863_vm1 = vcmask 1041408   ;;  %v5082_v36 = vmov 0.0|0.0   ;;  %v679_v48 = vlaneseq }
  0x30   : > { %v381_v1 = vld [vmem:[%s3214_s28] sm:$0xff]  ;;  %v406_v5 = vld [vmem:[%s3214_s28 + $0xc8] sm:$0xff]  ;;  %495 = vmatpush.bf16.msra.mxu0 %v2870_v0  ;;  %2872 = vmatpush.bf16.msra.mxu3 %v2870_v0  ;;  %v383_v7 = vld [vmem:[%s3214_s28 + $0x10] sm:$0xff]  ;;  %vm814_vm2 = vcmask 31744   ;;  %s4801_s12 = scalar_lea.vmem [#allocation5], %s2680_s19  ;;  %s2871_s19 = sshll.u32 %s3143_s17, 8 }
  0x31   : > { %v415_v3 = vpack.c.bf16 %v382_v2, %v381_v1  ;;  %v405_v4 = vld [vmem:[%s3214_s28 + $0xc0] sm:$0xff]  ;;  %v384_v8 = vld [vmem:[%s3214_s28 + $0x18] sm:$0xff]  ;;  %v407_v9 = vld [vmem:[%s3214_s28 + $0xd0] sm:$0xff]  ;;  %v3283_v53 = vshrl.u32 %v679_v48, 7  ;;  %s2596_s22 = scalar_lea.hbm %s5076_s10, %s2871_s19  ;;  %s2597_s24 = sshll.u32 %s4801_s12, 4  ;;  %s2598_s24 = int_to_ptr.vmem [resolvable:$true] %s2597_s24 }
  0x32   : > { %v427_v6 = vpack.c.bf16 %v406_v5, %v405_v4  ;;  %v408_v10 = vld [vmem:[%s3214_s28 + $0xd8] sm:$0xff]  ;;  %v416_v11 = vpack.c.bf16 %v384_v8, %v383_v7  ;;  %v385_v13 = vld [vmem:[%s3214_s28 + $0x20] sm:$0xff]  ;;  %v386_v14 = vld [vmem:[%s3214_s28 + $0x28] sm:$0xff]  ;;  %s2599_s20 = sshll.u32 %s2596_s22, 4  ;;  %s2585_s17 = scalar_lea.sflag [#allocation4], %s3208_s18  ;;  %s2600_s20 = int_to_ptr.hbm [resolvable:$true] %s2599_s20 }
  0x33   : > { %2686 = vmatmul.msk.bf16.vlgmr.msra.gmra.mxu0 %vm439_vm0, %v415_v3  ;;  %v428_v12 = vpack.c.bf16 %v408_v10, %v407_v9  ;;  %v409_v15 = vld [vmem:[%s3214_s28 + $0xe0] sm:$0xff]  ;;  %v410_v16 = vld [vmem:[%s3214_s28 + $0xe8] sm:$0xff]  ;;  %v417_v17 = vpack.c.bf16 %v386_v14, %v385_v13  ;;  %v387_v19 = vld [vmem:[%s3214_s28 + $0x30] sm:$0xff]  ;;  %vm1124_vm3 = vcmp.lt.s32.totalorder %v3283_v53, 7  ;;  %v3310_v3 = vadd.s32 8, %v3283_v53  ;;  %s3008_s21 = sshra.s32 %s2600_s20, 4  ;;  %s3009_s21 = int_to_ptr.hbm [resolvable:$true] %s3008_s21 }
  0x34   : > { %2698 = vmatmul.msk.bf16.vlgmr.msra.gmra.mxu3 %vm439_vm0, %v427_v6  ;;  %v429_v18 = vpack.c.bf16 %v410_v16, %v409_v15  ;;  %v388_v20 = vld [vmem:[%s3214_s28 + $0x38] sm:$0xff]  ;;  %v411_v21 = vld [vmem:[%s3214_s28 + $0xf0] sm:$0xff]  ;;  %v389_v25 = vld [vmem:[%s3214_s28 + $0x40] sm:$0xff]  ;;  %vm713_vm5 = vcmp.lt.s32.totalorder %v3283_v53, 1  ;;  %vm744_vm6 = vcmp.ge.s32.totalorder %v3283_v53, 1  ;;  %s3010_s29 = scalar_lea.hbm %s3009_s21, 256  ;;  %p3015_p0 = scmp.lt.s32.totalorder %s3009_s21, %s5076_s10 }
  0x35   : > { %v412_v22 = vld [vmem:[%s3214_s28 + $0xf8] sm:$0xff]  ;;  %v418_v23 = vpack.c.bf16 %v388_v20, %v387_v19  ;;  %v390_v26 = vld [vmem:[%s3214_s28 + $0x48] sm:$0xff]  ;;  %v391_v28 = vld [vmem:[%s3214_s28 + $0x50] sm:$0xff]  ;;  %vm1156_vm4 = vcmp.le.s32.totalorder %v3310_v3, 14  ;;  %p3011_p6 = scmp.ne.s32.totalorder %s3009_s21, %s3010_s29  ;;  %s3014_s11 = scalar_lea.hbm %s5076_s10, 512 }
  0x36   : > { %v430_v24 = vpack.c.bf16 %v412_v22, %v411_v21  ;;  %v419_v27 = vpack.c.bf16 %v390_v26, %v389_v25  ;;  %v392_v29 = vld [vmem:[%s3214_s28 + $0x58] sm:$0xff]  ;;  %v2702_v31 = vld [vmem:[%s5070_s4 + $0x2] sm:$0x3]  ;;  %v394_v34 = vld [vmem:[%s3214_s28 + $0x68] sm:$0xff]  ;;  %p3016_p1 = scmp.lt.s32.totalorder %s3014_s11, %s3010_s29 }
  0x37   : > { %v420_v30 = vpack.c.bf16 %v392_v29, %v391_v28  ;;  %v865_v32 = vsel %vm863_vm1, %v2702_v31, 0  ;;  %v393_v33 = vld [vmem:[%s3214_s28 + $0x60] sm:$0xff]  ;;  %v395_v37 = vld [vmem:[%s3214_s28 + $0x70] sm:$0xff]  ;;  %v396_v38 = vld [vmem:[%s3214_s28 + $0x78] sm:$0xff]  ;;  %p3012_p9 = pnand %p3011_p6, %p3172_p11 }
  0x38   : > { %874 = vmatpush.bf16.msra.mxu1 %v865_v32  ;;  %2873 = vmatpush.bf16.msrb.mxu3 %v865_v32  ;;  %v421_v35 = vpack.c.bf16 %v394_v34, %v393_v33  ;;  %v422_v39 = vpack.c.bf16 %v396_v38, %v395_v37  ;;  %v397_v40 = vld [vmem:[%s3214_s28 + $0x80] sm:$0xff]  ;;  %v398_v41 = vld [vmem:[%s3214_s28 + $0x88] sm:$0xff]  ;;  %v399_v55 = vld [vmem:[%s3214_s28 + $0x90] sm:$0xff]  ;;  %p3017_p3 = por %p3016_p1, %p3015_p0 }
  0x39   : > { %v423_v42 = vpack.c.bf16 %v398_v41, %v397_v40  ;;  %v3269_v44 = vld [vmem:[%s5068_s2] ss:$0 sm:$0xff]  ;;  %v400_v56 = vld [vmem:[%s3214_s28 + $0x98] sm:$0xff]  ;;  %v402_v16 = vld [vmem:[%s3214_s28 + $0xa8] sm:$0xff]  ;;  %p3013_p13 = pneg %p3012_p9 }
  0x3a   : > { %v3276_v46 = vld [vmem:[%s5069_s3] ss:$0 sm:$0xff]  ;;  %v424_v61 = vpack.c.bf16 %v400_v56, %v399_v55  ;;  %v2749_v28 = vld [vmem:[%s5070_s4 + $0x6] sm:$0x3]  ;;  %v403_v38 = vld [vmem:[%s3214_s28 + $0xb0] sm:$0xff] }
  0x3b   : > { %875 = vmatmul.bf16.vlgmr.msra.gmra.mxu1 %v5082_v36  ;;  %v796_v6 = vld [vmem:[%s5070_s4] sm:$0x3]  ;;  %p3018_p4 = pnand %p3017_p3, %p3013_p13 }
  0x3c   : > { %v1002_v8 = vsel %vm863_vm1, %v796_v6, 0  ;;  %v401_v15 = vld [vmem:[%s3214_s28 + $0xa0] sm:$0xff] }
  0x3d   : > { %1011 = vmatpush.bf16.msra.mxu2 %v1002_v8  ;;  %2874 = vmatpush.bf16.msra.mxu3 %v1002_v8  ;;  %v425_v21 = vpack.c.bf16 %v402_v16, %v401_v15 }
  0x40   : > { %1012 = vmatmul.bf16.vlgmr.msra.gmra.mxu2 %v5082_v36 }
  0x43   : > { %2687 = vmatmul.msk.bf16.gmra.mxu0 %vm439_vm0, %v416_v11 }
  0x44   : > { %2699 = vmatmul.msk.bf16.gmra.mxu3 %vm439_vm0, %v428_v12 }
  0x53   : > { %2688 = vmatmul.msk.bf16.gmra.mxu0 %vm439_vm0, %v417_v17 }
  0x54   : > { %2700 = vmatmul.msk.bf16.gmra.mxu3 %vm439_vm0, %v429_v18 }
  0x63   : > { %2689 = vmatmul.msk.bf16.gmra.mxu0 %vm439_vm0, %v418_v23 }
  0x64   : > { %2701 = vmatmul.msk.bf16.gmra.mxu3 %vm439_vm0, %v430_v24 }
  0x73   : > { %2690 = vmatmul.msk.bf16.gmra.mxu0 %vm439_vm0, %v419_v27 }
  0x83   : > { %2691 = vmatmul.msk.bf16.gmra.mxu0 %vm439_vm0, %v420_v30  ;;  %v1389_v30 = vsel %vm863_vm1, %v2749_v28, 0 }
  0x84   : > { %1398 = vmatpush.bf16.msrb.mxu0 %v1389_v30 }
  0x93   : > { %2692 = vmatmul.msk.bf16.gmra.mxu0 %vm439_vm0, %v421_v35 }
  0xa3   : > { %2693 = vmatmul.msk.bf16.gmra.mxu0 %vm439_vm0, %v422_v39  ;;  %v404_v39 = vld [vmem:[%s3214_s28 + $0xb8] sm:$0xff] }
  0xb0   : > { %v497_v43 = vpop.f32.mrf.mxu0 }
  0xb1   : > { %v580_v45 = vmul.f32 %v3269_v44, %v497_v43 }
  0xb3   : > { %2694 = vmatmul.msk.bf16.gmra.mxu0 %vm439_vm0, %v423_v42  ;;  %v615_v49 = vadd.f32 %v3276_v46, %v580_v45  ;;  %v426_v45 = vpack.c.bf16 %v404_v39, %v403_v38 }
  0xb5   : > { %v3285_v54 = vmax.f32 %v615_v49, 0.0 }
  0xb7   : > { %v3278_v47 = vpop.f32.mrf.mxu3  ;;  %5111 = vst [vmem:[#allocation12_spill] sm:$0xff] %v3285_v54  ;;  %v5081_v62 = vrot.slane %v3285_v54, 1 }
  0xb8   : > { %v499_v50 = vpop.f32.mrf.mxu0 }
  0xb9   : > { %v581_v51 = vmul.f32 %v3269_v44, %v499_v50 }
  0xbb   : > { %v616_v52 = vadd.f32 %v3276_v46, %v581_v51 }
  0xbd   : > { %v3289_v57 = vmax.f32 %v616_v52, 0.0 }
  0xbf   : > { %v3291_v58 = vpop.f32.mrf.mxu3  ;;  %v1094_v59 = vrot.slane %v3289_v57, 1  ;;  %v3297_v60 = vpack.c.bf16 %v3289_v57, %v3285_v54 }
  0xc0   : > { %v502_v63 = vpop.f32.mrf.mxu0 }
  0xc1   : > { %v582_v0 = vmul.f32 %v3269_v44, %v502_v63  ;;  %2703 = vmatmul.msk.bf16.gmra.mxu1 %vm814_vm2, %v3297_v60  ;;  %v1154_v1 = vsel %vm1124_vm3, %v5081_v62, %v1094_v59 }
  0xc3   : > { %v617_v2 = vadd.f32 %v3276_v46, %v582_v0  ;;  %2695 = vmatmul.msk.bf16.gmra.mxu0 %vm439_vm0, %v424_v61 }
  0xc5   : > { %v3312_v4 = vmax.f32 %v617_v2, 0.0 }
  0xc7   : > { %v3314_v5 = vpop.f32.mrf.mxu3  ;;  %v1095_v7 = vrot.slane %v3312_v4, 1 }
  0xc8   : > { %v504_v9 = vpop.f32.mrf.mxu0 }
  0xc9   : > { %v1153_v10 = vsel %vm1124_vm3, %v1094_v59, %v1095_v7  ;;  %v583_v11 = vmul.f32 %v3269_v44, %v504_v9 }
  0xca   : > { %v1162_v12 = vsel %vm1156_vm4, %v1153_v10, 0.0 }
  0xcb   : > { %v618_v13 = vadd.f32 %v3276_v46, %v583_v11  ;;  %v3329_v14 = vpack.c.bf16 %v1162_v12, %v1154_v1 }
  0xcd   : > { %v3333_v17 = vmax.f32 %v618_v13, 0.0 }
  0xcf   : > { %v3335_v18 = vpop.f32.mrf.mxu3  ;;  %v1096_v19 = vrot.slane %v3333_v17, 1  ;;  %v3340_v20 = vpack.c.bf16 %v3333_v17, %v3312_v4 }
  0xd0   : > { %v507_v22 = vpop.f32.mrf.mxu0 }
  0xd1   : > { %v584_v23 = vmul.f32 %v3269_v44, %v507_v22  ;;  %2704 = vmatmul.msk.bf16.gmra.mxu1 %vm814_vm2, %v3340_v20  ;;  %v1152_v24 = vsel %vm1124_vm3, %v1095_v7, %v1096_v19  ;;  %v682_v22 = vrot.slane %v3285_v54, 7 }
  0xd3   : > { %v619_v25 = vadd.f32 %v3276_v46, %v584_v23  ;;  %2696 = vmatmul.msk.bf16.gmra.mxu0 %vm439_vm0, %v425_v21  ;;  %v683_v21 = vrot.slane %v3289_v57, 7 }
  0xd5   : > { %v3349_v26 = vmax.f32 %v619_v25, 0.0  ;;  %v742_v57 = vsel %vm713_vm5, %v682_v22, %v683_v21 }
  0xd7   : > { %v3351_v27 = vpop.f32.mrf.mxu3  ;;  %v1097_v29 = vrot.slane %v3349_v26, 1 }
  0xd8   : > { %v509_v31 = vpop.f32.mrf.mxu0 }
  0xd9   : > { %v585_v32 = vmul.f32 %v3269_v44, %v509_v31  ;;  %v1151_v33 = vsel %vm1124_vm3, %v1096_v19, %v1097_v29 }
  0xda   : > { %v1164_v34 = vsel %vm1156_vm4, %v1151_v33, 0.0 }
  0xdb   : > { %v620_v35 = vadd.f32 %v3276_v46, %v585_v32  ;;  %v3364_v37 = vpack.c.bf16 %v1164_v34, %v1152_v24 }
  0xdd   : > { %v3368_v40 = vmax.f32 %v620_v35, 0.0 }
  0xdf   : > { %v3370_v41 = vpop.f32.mrf.mxu3  ;;  %v1098_v42 = vrot.slane %v3368_v40, 1  ;;  %v3375_v43 = vpack.c.bf16 %v3368_v40, %v3349_v26 }
  0xe0   : > { %v512_v48 = vpop.f32.mrf.mxu0 }
  0xe1   : > { %v586_v49 = vmul.f32 %v3269_v44, %v512_v48  ;;  %2705 = vmatmul.msk.bf16.gmra.mxu1 %vm814_vm2, %v3375_v43  ;;  %v1150_v50 = vsel %vm1124_vm3, %v1097_v29, %v1098_v42 }
  0xe3   : > { %v621_v51 = vadd.f32 %v3276_v46, %v586_v49  ;;  %2697 = vmatmul.msk.bf16.gmra.mxu0 %vm439_vm0, %v426_v45  ;;  %v684_v49 = vrot.slane %v3312_v4, 7 }
  0xe5   : > { %v3384_v52 = vmax.f32 %v621_v51, 0.0 }
  0xe7   : > { %v3386_v55 = vpop.f32.mrf.mxu3  ;;  %v1099_v56 = vrot.slane %v3384_v52, 1 }
  0xe8   : > { %v514_v59 = vpop.f32.mrf.mxu0 }
  0xe9   : > { %v587_v61 = vmul.f32 %v3269_v44, %v514_v59  ;;  %v1149_v63 = vsel %vm1124_vm3, %v1098_v42, %v1099_v56 }
  0xea   : > { %v1166_v0 = vsel %vm1156_vm4, %v1149_v63, 0.0  ;;  %v741_v63 = vsel %vm713_vm5, %v683_v21, %v684_v49 }
  0xeb   : > { %v622_v1 = vadd.f32 %v3276_v46, %v587_v61  ;;  %v3395_v2 = vpack.c.bf16 %v1166_v0, %v1150_v50 }
  0xed   : > { %v3397_v6 = vmax.f32 %v622_v1, 0.0 }
  0xef   : > { %v574_v7 = vpop.f32.mrf.mxu3  ;;  %v1100_v8 = vrot.slane %v3397_v6, 1  ;;  %v3403_v10 = vpack.c.bf16 %v3397_v6, %v3384_v52 }
  0xf0   : > { %v611_v9 = vmul.f32 %v3269_v44, %v574_v7  ;;  %v517_v11 = vpop.f32.mrf.mxu0  ;;  %v752_v7 = vsel %vm744_vm6, %v741_v63, 0.0 }
  0xf1   : > { %v588_v13 = vmul.f32 %v3269_v44, %v517_v11  ;;  %2706 = vmatmul.msk.bf16.gmra.mxu1 %vm814_vm2, %v3403_v10  ;;  %v1148_v15 = vsel %vm1124_vm3, %v1099_v56, %v1100_v8  ;;  %v685_v56 = vrot.slane %v3333_v17, 7 }
  0xf2   : > { %v646_v12 = vadd.f32 %v3276_v46, %v611_v9 }
  0xf3   : > { %v623_v19 = vadd.f32 %v3276_v46, %v588_v13  ;;  %v740_v4 = vsel %vm713_vm5, %v684_v49, %v685_v56 }
  0xf4   : > { %v3411_v16 = vmax.f32 %v646_v12, 0.0  ;;  %v3465_v9 = vpack.c.bf16 %v740_v4, %v752_v7  ;;  %v2766_v4 = vld [vmem:[%s5070_s4 + $0x8] sm:$0x3]  ;;  %v688_v7 = vrot.slane %v3384_v52, 7 }
  0xf5   : > { %v3417_v24 = vmax.f32 %v623_v19, 0.0 }
  0xf6   : > { %v5084_v23 = vrot.slane %v3411_v16, 7  ;;  %5112 = vst [vmem:[#allocation13_spill] sm:$0xff] %v3465_v9 }
  0xf7   : > { %v1101_v25 = vrot.slane %v3417_v24, 1 }
  0xf8   : > { %v743_v28 = vsel %vm713_vm5, %v5084_v23, %v682_v22  ;;  %v519_v29 = vpop.f32.mrf.mxu0 }
  0xf9   : > { %v750_v30 = vsel %vm744_vm6, %v743_v28, 0.0  ;;  %v589_v31 = vmul.f32 %v3269_v44, %v519_v29  ;;  %v1147_v33 = vsel %vm1124_vm3, %v1100_v8, %v1101_v25 }
  0xfa   : > { %v781_v32 = vpack.c.bf16 %v742_v57, %v750_v30  ;;  %v1168_v34 = vsel %vm1156_vm4, %v1147_v33, 0.0  ;;  %v687_v57 = vrot.slane %v3368_v40, 7 }
  0xfb   : > { %v624_v35 = vadd.f32 %v3276_v46, %v589_v31  ;;  %v3438_v38 = vpack.c.bf16 %v1168_v34, %v1148_v15 }
  0xfc   : > { %2718 = vmatmul.msk.bf16.gmra.mxu2 %vm814_vm2, %v781_v32  ;;  %2750 = vmatmul.msk.bf16.vlgmr.msrb.gmra.mxu0 %vm814_vm2, %v781_v32 }
  0xfd   : > { %v3440_v39 = vmax.f32 %v624_v35, 0.0 }
  0xff   : > { %v1102_v42 = vrot.slane %v3440_v39, 1  ;;  %v3445_v45 = vpack.c.bf16 %v3440_v39, %v3417_v24 }
 0x100   : > { %v522_v48 = vpop.f32.mrf.mxu0 }
 0x101   : > { %v590_v50 = vmul.f32 %v3269_v44, %v522_v48  ;;  %2707 = vmatmul.msk.bf16.gmra.mxu1 %vm814_vm2, %v3445_v45  ;;  %v1146_v51 = vsel %vm1124_vm3, %v1101_v25, %v1102_v42  ;;  %v686_v25 = vrot.slane %v3349_v26, 7 }
 0x103   : > { %v625_v59 = vadd.f32 %v3276_v46, %v590_v50  ;;  %v739_v32 = vsel %vm713_vm5, %v685_v56, %v686_v25  ;;  %v738_v26 = vsel %vm713_vm5, %v686_v25, %v687_v57 }
 0x104   : > { %v754_v35 = vsel %vm744_vm6, %v739_v32, 0.0 }
 0x105   : > { %v3455_v61 = vmax.f32 %v625_v59, 0.0  ;;  %v3503_v48 = vpack.c.bf16 %v738_v26, %v754_v35  ;;  %v876_v26 = vpop.f32.mrf.mxu1 }
 0x107   : > { %v1103_v0 = vrot.slane %v3455_v61, 1  ;;  %5113 = vst [vmem:[#allocation14_spill] sm:$0xff] %v3503_v48 }
 0x108   : > { %v524_v1 = vpop.f32.mrf.mxu0 }
 0x109   : > { %v591_v8 = vmul.f32 %v3269_v44, %v524_v1  ;;  %v1145_v17 = vsel %vm1124_vm3, %v1102_v42, %v1103_v0  ;;  %v1519_v1 = vsel %vm863_vm1, %v2766_v4, 0 }
 0x10a   : > { %v1170_v11 = vsel %vm1156_vm4, %v1145_v17, 0.0  ;;  %1528 = vmatpush.bf16.msrb.mxu1 %v1519_v1 }
 0x10b   : > { %v626_v12 = vadd.f32 %v3276_v46, %v591_v8  ;;  %v3476_v13 = vpack.c.bf16 %v1170_v11, %v1146_v51  ;;  %v689_v11 = vrot.slane %v3397_v6, 7 }
 0x10c   : > { %2719 = vmatmul.msk.bf16.gmra.mxu2 %vm814_vm2, %v3465_v9  ;;  %2751 = vmatmul.msk.bf16.gmra.mxu0 %vm814_vm2, %v3465_v9 }
 0x10d   : > { %v3478_v15 = vmax.f32 %v626_v12, 0.0  ;;  %v736_v52 = vsel %vm713_vm5, %v688_v7, %v689_v11 }
 0x10f   : > { %v1104_v19 = vrot.slane %v3478_v15, 1  ;;  %v3483_v21 = vpack.c.bf16 %v3478_v15, %v3455_v61 }
 0x110   : > { %v527_v22 = vpop.f32.mrf.mxu0 }
 0x111   : > { %v592_v28 = vmul.f32 %v3269_v44, %v527_v22  ;;  %2708 = vmatmul.msk.bf16.gmra.mxu1 %vm814_vm2, %v3483_v21  ;;  %v1144_v29 = vsel %vm1124_vm3, %v1103_v0, %v1104_v19  ;;  %v737_v22 = vsel %vm713_vm5, %v687_v57, %v688_v7  ;;  %v3573_v7 = vpop.f32.mrf.mxu1 }
 0x113   : > { %v627_v30 = vadd.f32 %v3276_v46, %v592_v28 }
 0x115   : > { %v3493_v31 = vmax.f32 %v627_v30, 0.0 }
 0x117   : > { %v1105_v33 = vrot.slane %v3493_v31, 1 }
 0x118   : > { %v529_v34 = vpop.f32.mrf.mxu0 }
 0x119   : > { %v593_v42 = vmul.f32 %v3269_v44, %v529_v34  ;;  %v1143_v40 = vsel %vm1124_vm3, %v1104_v19, %v1105_v33 }
 0x11a   : > { %v1172_v49 = vsel %vm1156_vm4, %v1143_v40, 0.0 }
 0x11b   : > { %v628_v50 = vadd.f32 %v3276_v46, %v593_v42  ;;  %v3514_v51 = vpack.c.bf16 %v1172_v49, %v1144_v29  ;;  %v756_v29 = vsel %vm744_vm6, %v737_v22, 0.0 }
 0x11c   : > { %2720 = vmatmul.msk.bf16.gmra.mxu2 %vm814_vm2, %v3503_v48  ;;  %2752 = vmatmul.msk.bf16.gmra.mxu0 %vm814_vm2, %v3503_v48  ;;  %v3545_v6 = vpack.c.bf16 %v736_v52, %v756_v29 }
 0x11d   : > { %v3516_v56 = vmax.f32 %v628_v50, 0.0  ;;  %v690_v50 = vrot.slane %v3417_v24, 7 }
 0x11e   : > { %5114 = vst [vmem:[#allocation15_spill] sm:$0xff] %v3545_v6 }
 0x11f   : > { %v1106_v59 = vrot.slane %v3516_v56, 1  ;;  %v3521_v63 = vpack.c.bf16 %v3516_v56, %v3493_v31 }
 0x120   : > { %v532_v0 = vpop.f32.mrf.mxu0 }
 0x121   : > { %v594_v8 = vmul.f32 %v3269_v44, %v532_v0  ;;  %2709 = vmatmul.msk.bf16.gmra.mxu1 %vm814_vm2, %v3521_v63  ;;  %v1142_v17 = vsel %vm1124_vm3, %v1105_v33, %v1106_v59  ;;  %v691_v0 = vrot.slane %v3440_v39, 7 }
 0x123   : > { %v629_v12 = vadd.f32 %v3276_v46, %v594_v8  ;;  %v734_v24 = vsel %vm713_vm5, %v690_v50, %v691_v0 }
 0x125   : > { %v3535_v19 = vmax.f32 %v629_v12, 0.0 }
 0x127   : > { %v1107_v25 = vrot.slane %v3535_v19, 1 }
 0x128   : > { %v534_v28 = vpop.f32.mrf.mxu0 }
 0x129   : > { %v595_v30 = vmul.f32 %v3269_v44, %v534_v28  ;;  %v1141_v32 = vsel %vm1124_vm3, %v1106_v59, %v1107_v25 }
 0x12a   : > { %v1174_v57 = vsel %vm1156_vm4, %v1141_v32, 0.0 }
 0x12b   : > { %v630_v33 = vadd.f32 %v3276_v46, %v595_v30  ;;  %v3556_v34 = vpack.c.bf16 %v1174_v57, %v1142_v17  ;;  %v735_v17 = vsel %vm713_vm5, %v689_v11, %v690_v50  ;;  %v692_v50 = vrot.slane %v3455_v61, 7 }
 0x12c   : > { %2721 = vmatmul.msk.bf16.gmra.mxu2 %vm814_vm2, %v3545_v6  ;;  %2753 = vmatmul.msk.bf16.gmra.mxu0 %vm814_vm2, %v3545_v6  ;;  %v758_v52 = vsel %vm744_vm6, %v735_v17, 0.0 }
 0x12d   : > { %v3558_v35 = vmax.f32 %v630_v33, 0.0 }
 0x12f   : > { %v1108_v42 = vrot.slane %v3558_v35, 1  ;;  %v3563_v40 = vpack.c.bf16 %v3558_v35, %v3535_v19 }
 0x130   : > { %v537_v49 = vpop.f32.mrf.mxu0 }
 0x131   : > { %v596_v59 = vmul.f32 %v3269_v44, %v537_v49  ;;  %2710 = vmatmul.msk.bf16.gmra.mxu1 %vm814_vm2, %v3563_v40  ;;  %v1140_v4 = vsel %vm1124_vm3, %v1107_v25, %v1108_v42  ;;  %v3585_v25 = vpack.c.bf16 %v734_v24, %v758_v52 }
 0x133   : > { %v631_v1 = vadd.f32 %v3276_v46, %v596_v59  ;;  %5115 = vst [vmem:[#allocation16_spill] sm:$0xff] %v3585_v25 }
 0x135   : > { %v3575_v8 = vmax.f32 %v631_v1, 0.0  ;;  %v693_v1 = vrot.slane %v3478_v15, 7 }
 0x137   : > { %v1109_v12 = vrot.slane %v3575_v8, 1  ;;  %v732_v61 = vsel %vm713_vm5, %v692_v50, %v693_v1 }
 0x138   : > { %v539_v22 = vpop.f32.mrf.mxu0 }
 0x139   : > { %v597_v39 = vmul.f32 %v3269_v44, %v539_v22  ;;  %v1139_v28 = vsel %vm1124_vm3, %v1108_v42, %v1109_v12  ;;  %v733_v22 = vsel %vm713_vm5, %v691_v0, %v692_v50 }
 0x13a   : > { %v1176_v29 = vsel %vm1156_vm4, %v1139_v28, 0.0 }
 0x13b   : > { %v632_v11 = vadd.f32 %v3276_v46, %v597_v39  ;;  %v3596_v30 = vpack.c.bf16 %v1176_v29, %v1140_v4 }
 0x13c   : > { %2722 = vmatmul.msk.bf16.gmra.mxu2 %vm814_vm2, %v3585_v25  ;;  %2754 = vmatmul.msk.bf16.gmra.mxu0 %vm814_vm2, %v3585_v25 }
 0x13d   : > { %v3598_v32 = vmax.f32 %v632_v11, 0.0 }
 0x13e   : > { %v3600_v57 = vpop.f32.mrf.mxu1 }
 0x13f   : > { %v1110_v33 = vrot.slane %v3598_v32, 1  ;;  %v3605_v42 = vpack.c.bf16 %v3598_v32, %v3575_v8 }
 0x140   : > { %v542_v49 = vpop.f32.mrf.mxu0 }
 0x141   : > { %v598_v59 = vmul.f32 %v3269_v44, %v542_v49  ;;  %2711 = vmatmul.msk.bf16.gmra.mxu1 %vm814_vm2, %v3605_v42  ;;  %v1138_v4 = vsel %vm1124_vm3, %v1109_v12, %v1110_v33  ;;  %v760_v12 = vsel %vm744_vm6, %v733_v22, 0.0  ;;  %v1013_v22 = vpop.f32.mrf.mxu2 }
 0x142   : > { %v3627_v29 = vpack.c.bf16 %v732_v61, %v760_v12 }
 0x143   : > { %v633_v17 = vadd.f32 %v3276_v46, %v598_v59 }
 0x144   : > { %5116 = vst [vmem:[#allocation17_spill] sm:$0xff] %v3627_v29 }
 0x145   : > { %v3615_v24 = vmax.f32 %v633_v17, 0.0 }
 0x146   : > { %v3619_v52 = vpop.f32.mrf.mxu1 }
 0x147   : > { %v1111_v39 = vrot.slane %v3615_v24, 1 }
 0x148   : > { %v544_v28 = vpop.f32.mrf.mxu0 }
 0x149   : > { %v599_v15 = vmul.f32 %v3269_v44, %v544_v28  ;;  %v1137_v11 = vsel %vm1124_vm3, %v1110_v33, %v1111_v39  ;;  %v3649_v28 = vadd.f32 %v1013_v22, %v876_v26 }
 0x14a   : > { %v1178_v0 = vsel %vm1156_vm4, %v1137_v11, 0.0 }
 0x14b   : > { %v634_v49 = vadd.f32 %v3276_v46, %v599_v15  ;;  %v3638_v50 = vpack.c.bf16 %v1178_v0, %v1138_v4  ;;  %v694_v15 = vrot.slane %v3493_v31, 7  ;;  %v695_v0 = vrot.slane %v3516_v56, 7 }
 0x14c   : > { %2723 = vmatmul.msk.bf16.gmra.mxu2 %vm814_vm2, %v3627_v29  ;;  %2755 = vmatmul.msk.bf16.gmra.mxu0 %vm814_vm2, %v3627_v29 }
 0x14d   : > { %v3640_v59 = vmax.f32 %v634_v49, 0.0  ;;  %v731_v26 = vsel %vm713_vm5, %v693_v1, %v694_v15  ;;  %v730_v31 = vsel %vm713_vm5, %v694_v15, %v695_v0 }
 0x14e   : > { %v3642_v17 = vpop.f32.mrf.mxu1 }
 0x14f   : > { %v1112_v33 = vrot.slane %v3640_v59, 1  ;;  %v3647_v61 = vpack.c.bf16 %v3640_v59, %v3615_v24 }
 0x150   : > { %v547_v12 = vpop.f32.mrf.mxu0 }
 0x151   : > { %v600_v11 = vmul.f32 %v3269_v44, %v547_v12  ;;  %2712 = vmatmul.msk.bf16.gmra.mxu1 %vm814_vm2, %v3647_v61  ;;  %v1136_v4 = vsel %vm1124_vm3, %v1111_v39, %v1112_v33  ;;  %v762_v39 = vsel %vm744_vm6, %v731_v26, 0.0 }
 0x152   : > { %v3671_v23 = vpack.c.bf16 %v730_v31, %v762_v39 }
 0x153   : > { %v635_v49 = vadd.f32 %v3276_v46, %v600_v11 }
 0x154   : > { %5117 = vst [vmem:[#allocation18_spill] sm:$0xff] %v3671_v23 }
 0x155   : > { %v3659_v62 = vmax.f32 %v635_v49, 0.0 }
 0x156   : > { %v3663_v22 = vpop.f32.mrf.mxu1 }
 0x157   : > { %v1113_v12 = vrot.slane %v3659_v62, 1 }
 0x158   : > { %v549_v36 = vpop.f32.mrf.mxu0 }
 0x159   : > { %v601_v56 = vmul.f32 %v3269_v44, %v549_v36  ;;  %v1135_v11 = vsel %vm1124_vm3, %v1112_v33, %v1113_v12 }
 0x15a   : > { %v1180_v1 = vsel %vm1156_vm4, %v1135_v11, 0.0  ;;  %v696_v11 = vrot.slane %v3535_v19, 7 }
 0x15b   : > { %v636_v49 = vadd.f32 %v3276_v46, %v601_v56  ;;  %v3682_v15 = vpack.c.bf16 %v1180_v1, %v1136_v4  ;;  %v604_v56 = vmul.f32 %v3269_v44, %v3278_v47  ;;  %v697_v1 = vrot.slane %v3558_v35, 7 }
 0x15c   : > { %2724 = vmatmul.msk.bf16.gmra.mxu2 %vm814_vm2, %v3671_v23  ;;  %2756 = vmatmul.msk.bf16.gmra.mxu0 %vm814_vm2, %v3671_v23  ;;  %v729_v47 = vsel %vm713_vm5, %v695_v0, %v696_v11 }
 0x15d   : > { %v3684_v26 = vmax.f32 %v636_v49, 0.0  ;;  %v639_v29 = vadd.f32 %v3276_v46, %v604_v56  ;;  %v764_v35 = vsel %vm744_vm6, %v729_v47, 0.0 }
 0x15e   : > { %v3686_v36 = vpop.f32.mrf.mxu1 }
 0x15f   : > { %v1114_v31 = vrot.slane %v3684_v26, 1  ;;  %v3691_v33 = vpack.c.bf16 %v3684_v26, %v3659_v62 }
 0x160   : > { %v552_v39 = vpop.f32.mrf.mxu0 }
 0x161   : > { %v602_v23 = vmul.f32 %v3269_v44, %v552_v39  ;;  %2713 = vmatmul.msk.bf16.gmra.mxu1 %vm814_vm2, %v3691_v33  ;;  %v1134_v4 = vsel %vm1124_vm3, %v1113_v12, %v1114_v31  ;;  %v728_v39 = vsel %vm713_vm5, %v696_v11, %v697_v1  ;;  %v3715_v12 = vmax.f32 %v639_v29, 0.0 }
 0x162   : > { %v3718_v56 = vpack.c.bf16 %v728_v39, %v764_v35 }
 0x163   : > { %v637_v49 = vadd.f32 %v3276_v46, %v602_v23 }
 0x164   : > { %5118 = vst [vmem:[#allocation19_spill] sm:$0xff] %v3718_v56 }
 0x165   : > { %v3704_v25 = vmax.f32 %v637_v49, 0.0 }
 0x166   : > { %v3708_v19 = vpop.f32.mrf.mxu1 }
 0x167   : > { %v1115_v6 = vrot.slane %v3704_v25, 1 }
 0x168   : > { %v554_v48 = vpop.f32.mrf.mxu0 }
 0x169   : > { %v603_v23 = vmul.f32 %v3269_v44, %v554_v48  ;;  %v1133_v0 = vsel %vm1124_vm3, %v1114_v31, %v1115_v6  ;;  %v5093_v48 = vrot.slane %v3715_v12, 1 }
 0x16a   : > { %v1182_v49 = vsel %vm1156_vm4, %v1133_v0, 0.0  ;;  %v699_v0 = vrot.slane %v3598_v32, 7 }
 0x16b   : > { %v638_v11 = vadd.f32 %v3276_v46, %v603_v23  ;;  %v3729_v29 = vpack.c.bf16 %v1182_v49, %v1134_v4  ;;  %v698_v23 = vrot.slane %v3575_v8, 7 }
 0x16c   : > { %2725 = vmatmul.msk.bf16.gmra.mxu2 %vm814_vm2, %v3718_v56  ;;  %2757 = vmatmul.msk.bf16.gmra.mxu0 %vm814_vm2, %v3718_v56  ;;  %v3757_v56 = vpop.f32.mrf.mxu2 }
 0x16d   : > { %v3732_v47 = vmax.f32 %v638_v11, 0.0  ;;  %v727_v9 = vsel %vm713_vm5, %v697_v1, %v698_v23  ;;  %v726_v32 = vsel %vm713_vm5, %v698_v23, %v699_v0 }
 0x16e   : > { %v3734_v39 = vpop.f32.mrf.mxu1 }
 0x16f   : > { %v1116_v31 = vrot.slane %v3732_v47, 1  ;;  %v3739_v35 = vpack.c.bf16 %v3732_v47, %v3704_v25 }
 0x171   : > { %2714 = vmatmul.msk.bf16.vlgmr.msrb.gmra.mxu3 %vm814_vm2, %v3739_v35  ;;  %2767 = vmatmul.msk.bf16.vlgmr.msrb.gmra.mxu1 %vm814_vm2, %v3297_v60  ;;  %v1131_v4 = vsel %vm1124_vm3, %v1116_v31, %v5093_v48  ;;  %v1132_v49 = vsel %vm1124_vm3, %v1115_v6, %v1116_v31  ;;  %v605_v60 = vmul.f32 %v3269_v44, %v3291_v58  ;;  %v766_v6 = vsel %vm744_vm6, %v727_v9, 0.0 }
 0x172   : > { %v1184_v11 = vsel %vm1156_vm4, %v1131_v4, 0.0  ;;  %v3772_v4 = vpack.c.bf16 %v726_v32, %v766_v6  ;;  %v701_v32 = vrot.slane %v3640_v59, 7  ;;  %v607_v6 = vmul.f32 %v3269_v44, %v3335_v18 }
 0x173   : > { %v3755_v8 = vpack.c.bf16 %v1184_v11, %v1132_v49  ;;  %v640_v31 = vadd.f32 %v3276_v46, %v605_v60  ;;  %v700_v60 = vrot.slane %v3615_v24, 7 }
 0x174   : > { %5120 = vst [vmem:[#allocation21_spill] sm:$0xff] %v3772_v4 }
 0x175   : > { %v3778_v58 = vmax.f32 %v640_v31, 0.0  ;;  %v725_v31 = vsel %vm713_vm5, %v699_v0, %v700_v60 }
 0x176   : > { %v3763_v54 = vpop.f32.mrf.mxu1  ;;  %v768_v18 = vsel %vm744_vm6, %v725_v31, 0.0 }
 0x177   : > { %v3787_v9 = vpack.c.bf16 %v3778_v58, %v3715_v12 }
 0x179   : > { %v3767_v48 = vpop.f32.mrf.mxu0 }
 0x17a   : > { %5119 = vst [vmem:[#allocation20_spill] sm:$0xff] %v3767_v48  ;;  %v2783_v48 = vld [vmem:[%s5070_s4 + $0xa] sm:$0x3] }
 0x17c   : > { %2726 = vmatmul.msk.bf16.gmra.mxu2 %vm814_vm2, %v3772_v4  ;;  %2758 = vmatmul.msk.bf16.gmra.mxu0 %vm814_vm2, %v3772_v4 }
 0x17e   : > { %v3780_v1 = vpop.f32.mrf.mxu1 }
 0x17f   : > { %v1018_v23 = vpop.f32.mrf.mxu2 }
 0x180   : > { %v3783_v49 = vadd.f32 %v1018_v23, %v3600_v57  ;;  %v606_v57 = vmul.f32 %v3269_v44, %v3314_v5  ;;  %v1654_v5 = vsel %vm863_vm1, %v2783_v48, 0 }
 0x181   : > { %v3789_v11 = vpop.f32.mrf.mxu0  ;;  %2715 = vmatmul.msk.bf16.gmra.mxu3 %vm814_vm2, %v3787_v9  ;;  %2768 = vmatmul.msk.bf16.gmra.mxu1 %vm814_vm2, %v3340_v20 }
 0x182   : > { %5121 = vst [vmem:[#allocation22_spill] sm:$0xff] %v3783_v49  ;;  %1663 = vmatpush.bf16.msrb.mxu2 %v1654_v5  ;;  %v641_v0 = vadd.f32 %v3276_v46, %v606_v57  ;;  %v642_v49 = vadd.f32 %v3276_v46, %v607_v6  ;;  %v702_v6 = vrot.slane %v3659_v62, 7  ;;  %v609_v62 = vmul.f32 %v3269_v44, %v3370_v41 }
 0x183   : > { %5122 = vst [vmem:[#allocation23_spill] sm:$0xff] %v3789_v11  ;;  %v724_v11 = vsel %vm713_vm5, %v700_v60, %v701_v32 }
 0x184   : > { %v3820_v60 = vpack.c.bf16 %v724_v11, %v768_v18  ;;  %v3828_v48 = vmax.f32 %v642_v49, 0.0  ;;  %v2733_v49 = vld [vmem:[%s5070_s4 + $0x4] sm:$0x3]  ;;  %v644_v41 = vadd.f32 %v3276_v46, %v609_v62  ;;  %v704_v62 = vrot.slane %v3704_v25, 7 }
 0x185   : > { %v1254_v18 = vsel %vm863_vm1, %v2733_v49, 0 }
 0x186   : > { %v3803_v23 = vpop.f32.mrf.mxu1  ;;  %5124 = vst [vmem:[#allocation25_spill] sm:$0xff] %v3820_v60  ;;  %1263 = vmatpush.bf16.msrb.mxu3 %v1254_v18 }
 0x187   : > { %v1020_v24 = vpop.f32.mrf.mxu2 }
 0x188   : > { %v3811_v59 = vadd.f32 %v1020_v24, %v3619_v52  ;;  %v3826_v52 = vmax.f32 %v641_v0, 0.0  ;;  %v608_v0 = vmul.f32 %v3269_v44, %v3351_v27 }
 0x189   : > { %v3814_v4 = vpop.f32.mrf.mxu0 }
 0x18a   : > { %5123 = vst [vmem:[#allocation24_spill] sm:$0xff] %v3814_v4  ;;  %v3837_v11 = vpack.c.bf16 %v3828_v48, %v3826_v52  ;;  %v643_v18 = vadd.f32 %v3276_v46, %v608_v0 }
 0x18c   : > { %2727 = vmatmul.msk.bf16.gmra.mxu2 %vm814_vm2, %v3820_v60  ;;  %2759 = vmatmul.msk.bf16.gmra.mxu0 %vm814_vm2, %v3820_v60 }
 0x18e   : > { %v3830_v24 = vpop.f32.mrf.mxu1 }
 0x18f   : > { %v1023_v31 = vpop.f32.mrf.mxu2 }
 0x190   : > { %v3833_v5 = vadd.f32 %v1023_v31, %v3642_v17  ;;  %v703_v17 = vrot.slane %v3684_v26, 7  ;;  %v723_v31 = vsel %vm713_vm5, %v701_v32, %v702_v6  ;;  %v3876_v32 = vmax.f32 %v643_v18, 0.0 }
 0x191   : > { %v3839_v57 = vpop.f32.mrf.mxu0  ;;  %2716 = vmatmul.msk.bf16.gmra.mxu3 %vm814_vm2, %v3837_v11  ;;  %2769 = vmatmul.msk.bf16.gmra.mxu1 %vm814_vm2, %v3375_v43  ;;  %v770_v27 = vsel %vm744_vm6, %v723_v31, 0.0 }
 0x192   : > { %5125 = vst [vmem:[#allocation26_spill] sm:$0xff] %v3833_v5  ;;  %v722_v60 = vsel %vm713_vm5, %v702_v6, %v703_v17 }
 0x193   : > { %5126 = vst [vmem:[#allocation27_spill] sm:$0xff] %v3839_v57  ;;  %v3870_v5 = vpack.c.bf16 %v722_v60, %v770_v27  ;;  %v705_v27 = vrot.slane %v3732_v47, 7 }
 0x195   : > { %5128 = vst [vmem:[#allocation29_spill] sm:$0xff] %v3870_v5 }
 0x196   : > { %v3857_v57 = vpop.f32.mrf.mxu1 }
 0x197   : > { %v1025_v4 = vpop.f32.mrf.mxu2 }
 0x198   : > { %v3862_v26 = vadd.f32 %v1025_v4, %v3663_v22  ;;  %v3878_v22 = vmax.f32 %v644_v41, 0.0 }
 0x199   : > { %v3864_v49 = vpop.f32.mrf.mxu0 }
 0x19a   : > { %5127 = vst [vmem:[#allocation28_spill] sm:$0xff] %v3864_v49  ;;  %v3887_v60 = vpack.c.bf16 %v3878_v22, %v3876_v32 }
 0x19c   : > { %2728 = vmatmul.msk.bf16.gmra.mxu2 %vm814_vm2, %v3870_v5  ;;  %2760 = vmatmul.msk.bf16.gmra.mxu0 %vm814_vm2, %v3870_v5 }
 0x19e   : > { %v3880_v4 = vpop.f32.mrf.mxu1 }
 0x19f   : > { %v1028_v6 = vpop.f32.mrf.mxu2 }
 0x1a0   : > { %v3883_v31 = vadd.f32 %v1028_v6, %v3686_v36  ;;  %v721_v36 = vsel %vm713_vm5, %v703_v17, %v704_v62  ;;  %v720_v6 = vsel %vm713_vm5, %v704_v62, %v705_v27  ;;  %v706_v62 = vrot.slane %v3715_v12, 7 }
 0x1a1   : > { %v3889_v0 = vpop.f32.mrf.mxu0  ;;  %2717 = vmatmul.msk.bf16.gmra.mxu3 %vm814_vm2, %v3887_v60  ;;  %2770 = vmatmul.msk.bf16.gmra.mxu1 %vm814_vm2, %v3403_v10  ;;  %v772_v49 = vsel %vm744_vm6, %v721_v36, 0.0 }
 0x1a2   : > { %5129 = vst [vmem:[#allocation30_spill] sm:$0xff] %v3889_v0  ;;  %v3910_v5 = vpack.c.bf16 %v720_v6, %v772_v49  ;;  %v707_v49 = vrot.slane %v3778_v58, 7  ;;  %v719_v36 = vsel %vm713_vm5, %v705_v27, %v706_v62 }
 0x1a4   : > { %5132 = vst [vmem:[#allocation33_spill] sm:$0xff] %v3910_v5 }
 0x1a6   : > { %v3899_v18 = vpop.f32.mrf.mxu1 }
 0x1a7   : > { %v1030_v41 = vpop.f32.mrf.mxu2 }
 0x1a8   : > { %v3904_v0 = vadd.f32 %v1030_v41, %v3708_v19 }
 0x1a9   : > { %v3906_v25 = vpop.f32.mrf.mxu0 }
 0x1aa   : > { %5130 = vst [vmem:[#allocation31_spill] sm:$0xff] %v3904_v0 }
 0x1ab   : > { %5131 = vst [vmem:[#allocation32_spill] sm:$0xff] %v3906_v25 }
 0x1ac   : > { %2761 = vmatmul.msk.bf16.gmra.mxu0 %vm814_vm2, %v3910_v5  ;;  %2784 = vmatmul.msk.bf16.vlgmr.msrb.gmra.mxu2 %vm814_vm2, %v3329_v14 }
 0x1ae   : > { %v3916_v47 = vpop.f32.mrf.mxu1 }
 0x1af   : > { %v1033_v17 = vpop.f32.mrf.mxu2 }
 0x1b0   : > { %v3920_v19 = vadd.f32 %v1033_v17, %v3734_v39  ;;  %v718_v39 = vsel %vm713_vm5, %v706_v62, %v707_v49  ;;  %v774_v17 = vsel %vm744_vm6, %v719_v36, 0.0  ;;  %v708_v62 = vrot.slane %v3826_v52, 7 }
 0x1b1   : > { %v3922_v41 = vpop.f32.mrf.mxu0  ;;  %2729 = vmatmul.msk.bf16.vlgmr.msra.gmra.mxu3 %vm814_vm2, %v3910_v5  ;;  %2771 = vmatmul.msk.bf16.gmra.mxu1 %vm814_vm2, %v3445_v45 }
 0x1b2   : > { %5133 = vst [vmem:[#allocation34_spill] sm:$0xff] %v3920_v19  ;;  %v3942_v19 = vpack.c.bf16 %v718_v39, %v774_v17  ;;  %v717_v39 = vsel %vm713_vm5, %v707_v49, %v708_v62 }
 0x1b3   : > { %5134 = vst [vmem:[#allocation35_spill] sm:$0xff] %v3922_v41 }
 0x1b4   : > { %5137 = vst [vmem:[#allocation38_spill] sm:$0xff] %v3942_v19 }
 0x1b6   : > { %v3931_v6 = vpop.f32.mrf.mxu1 }
 0x1b7   : > { %v1035_v25 = vpop.f32.mrf.mxu2 }
 0x1b8   : > { %v3938_v41 = vadd.f32 %v1035_v25, %v3763_v54  ;;  %v709_v25 = vrot.slane %v3828_v48, 7 }
 0x1b9   : > { %v3940_v5 = vpop.f32.mrf.mxu0 }
 0x1ba   : > { %5135 = vst [vmem:[#allocation36_spill] sm:$0xff] %v3938_v41 }
 0x1bb   : > { %5136 = vst [vmem:[#allocation37_spill] sm:$0xff] %v3940_v5 }
 0x1bc   : > { %2762 = vmatmul.msk.bf16.gmra.mxu0 %vm814_vm2, %v3942_v19  ;;  %2785 = vmatmul.msk.bf16.gmra.mxu2 %vm814_vm2, %v3364_v37 }
 0x1be   : > { %v3948_v27 = vpop.f32.mrf.mxu1 }
 0x1bf   : > { %v1038_v0 = vpop.f32.mrf.mxu2 }
 0x1c0   : > { %v3952_v36 = vadd.f32 %v1038_v0, %v3780_v1  ;;  %v716_v1 = vsel %vm713_vm5, %v708_v62, %v709_v25  ;;  %v776_v0 = vsel %vm744_vm6, %v717_v39, 0.0  ;;  %v710_v62 = vrot.slane %v3876_v32, 7 }
 0x1c1   : > { %v3954_v54 = vpop.f32.mrf.mxu0  ;;  %2730 = vmatmul.msk.bf16.gmra.mxu3 %vm814_vm2, %v3942_v19  ;;  %2772 = vmatmul.msk.bf16.gmra.mxu1 %vm814_vm2, %v3483_v21 }
 0x1c2   : > { %5138 = vst [vmem:[#allocation39_spill] sm:$0xff] %v3952_v36  ;;  %v3974_v36 = vpack.c.bf16 %v716_v1, %v776_v0 }
 0x1c3   : > { %5139 = vst [vmem:[#allocation40_spill] sm:$0xff] %v3954_v54 }
 0x1c4   : > { %5142 = vst [vmem:[#allocation43_spill] sm:$0xff] %v3974_v36 }
 0x1c6   : > { %v3963_v17 = vpop.f32.mrf.mxu1 }
 0x1c7   : > { %v1040_v5 = vpop.f32.mrf.mxu2 }
 0x1c8   : > { %v3970_v54 = vadd.f32 %v1040_v5, %v3803_v23  ;;  %v2800_v23 = vld [vmem:[%s5070_s4 + $0xc] sm:$0x3]  ;;  %v711_v5 = vrot.slane %v3878_v22, 7 }
 0x1c9   : > { %v3972_v19 = vpop.f32.mrf.mxu0  ;;  %v1780_v1 = vsel %vm863_vm1, %v2800_v23, 0 }
 0x1ca   : > { %5140 = vst [vmem:[#allocation41_spill] sm:$0xff] %v3970_v54  ;;  %1789 = vmatpush.bf16.msra.mxu3 %v1780_v1 }
 0x1cb   : > { %5141 = vst [vmem:[#allocation42_spill] sm:$0xff] %v3972_v19 }
 0x1cc   : > { %2763 = vmatmul.msk.bf16.gmra.mxu0 %vm814_vm2, %v3974_v36  ;;  %2786 = vmatmul.msk.bf16.gmra.mxu2 %vm814_vm2, %v3395_v2 }
 0x1ce   : > { %v3980_v49 = vpop.f32.mrf.mxu1 }
 0x1cf   : > { %v1043_v41 = vpop.f32.mrf.mxu2 }
 0x1d0   : > { %v3984_v39 = vadd.f32 %v1043_v41, %v3830_v24  ;;  %v715_v24 = vsel %vm713_vm5, %v709_v25, %v710_v62  ;;  %v610_v41 = vmul.f32 %v3269_v44, %v3386_v55  ;;  %v2816_v25 = vld [vmem:[%s5070_s4 + $0xe] sm:$0x3] }
 0x1d1   : > { %2731 = vmatmul.msk.bf16.gmra.mxu3 %vm814_vm2, %v3974_v36  ;;  %2773 = vmatmul.msk.bf16.gmra.mxu1 %vm814_vm2, %v3521_v63  ;;  %v3995_v0 = vpop.f32.mrf.mxu0  ;;  %v778_v54 = vsel %vm744_vm6, %v715_v24, 0.0  ;;  %v1906_v1 = vsel %vm863_vm1, %v2816_v25, 0 }
 0x1d2   : > { %5143 = vst [vmem:[#allocation44_spill] sm:$0xff] %v3984_v39  ;;  %v714_v39 = vsel %vm713_vm5, %v710_v62, %v711_v5  ;;  %v645_v44 = vadd.f32 %v3276_v46, %v610_v41  ;;  %1915 = vmatpush.bf16.msra.mxu0 %v1906_v1 }
 0x1d3   : > { %5144 = vst [vmem:[#allocation45_spill] sm:$0xff] %v3995_v0  ;;  %v4015_v55 = vpack.c.bf16 %v714_v39, %v778_v54 }
 0x1d4   : > { %v4025_v62 = vmax.f32 %v645_v44, 0.0 }
 0x1d5   : > { %5145 = vst [vmem:[#allocation46_spill] sm:$0xff] %v4015_v55 }
 0x1d6   : > { %v4001_v19 = vpop.f32.mrf.mxu1  ;;  %v1377_v39 = vrot.slane %v4025_v62, 7 }
 0x1d7   : > { %v1045_v36 = vpop.f32.mrf.mxu2 }
 0x1d8   : > { %v4008_v23 = vadd.f32 %v1045_v36, %v3857_v57  ;;  %v2832_v57 = vld [vmem:[%s5070_s4 + $0x10] sm:$0x3]  ;;  %v1379_v25 = vsel %vm713_vm5, %v711_v5, %v1377_v39 }
 0x1d9   : > { %v2032_v36 = vsel %vm863_vm1, %v2832_v57, 0  ;;  %v4027_v24 = vpop.f32.mrf.mxu0  ;;  %v5147_v57 = vrot.slane %v3411_v16, 7 }
 0x1da   : > { %5146 = vst [vmem:[#allocation47_spill] sm:$0xff] %v4027_v24  ;;  %2041 = vmatpush.bf16.msra.mxu1 %v2032_v36 }
 0x1db   : > { %v1378_v36 = vsel %vm713_vm5, %v1377_v39, %v5147_v57  ;;  %v5152_v57 = vmov 0.0|0.0  }
 0x1dc   : > { %2764 = vmatmul.msk.bf16.gmra.mxu0 %vm814_vm2, %v4015_v55  ;;  %2787 = vmatmul.msk.bf16.gmra.mxu2 %vm814_vm2, %v3438_v38 }
 0x1de   : > { %v931_v46 = vpop.f32.mrf.mxu1 }
 0x1df   : > { %v1048_v54 = vpop.f32.mrf.mxu2 }
 0x1e0   : > { %v4031_v41 = vadd.f32 %v1048_v54, %v3880_v4  ;;  %v1380_v4 = vsel %vm744_vm6, %v1379_v25, 0.0 }
 0x1e1   : > { %2732 = vmatmul.msk.bf16.gmra.mxu3 %vm814_vm2, %v4015_v55  ;;  %2774 = vmatmul.msk.bf16.gmra.mxu1 %vm814_vm2, %v3563_v40  ;;  %v4045_v54 = vpop.f32.mrf.mxu0  ;;  %v4050_v0 = vpack.c.bf16 %v1378_v36, %v1380_v4 }
 0x1e2   : > { %5148 = vst [vmem:[#allocation48_spill] sm:$0xff] %v4045_v54 }
 0x1e3   : > { %5149 = vst [vmem:[#allocation49_spill] sm:$0xff] %v4050_v0 }
 0x1e6   : > { %v933_v1 = vpop.f32.mrf.mxu1 }
 0x1e7   : > { %v1050_v44 = vpop.f32.mrf.mxu2 }
 0x1e8   : > { %v4048_v24 = vadd.f32 %v1050_v44, %v3899_v18 }
 0x1e9   : > { %v4061_v25 = vpop.f32.mrf.mxu0 }
 0x1ea   : > { %5151 = vst [vmem:[#allocation51_spill] sm:$0xff] %v4061_v25 }
 0x1ec   : > { %2765 = vmatmul.msk.bf16.gmra.mxu0 %vm814_vm2, %v4050_v0  ;;  %2788 = vmatmul.msk.bf16.gmra.mxu2 %vm814_vm2, %v3476_v13 }
 0x1ee   : > { %v4056_v55 = vpop.f32.mrf.mxu1 }
 0x1ef   : > { %v1053_v5 = vpop.f32.mrf.mxu2  ;;  %5150 = vst [vmem:[#allocation50_spill] sm:$0xff] %v4056_v55 }
 0x1f0   : > { %v4059_v39 = vadd.f32 %v1053_v5, %v3916_v47 }
 0x1f1   : > { %1264 = vmatmul.bf16.vlgmr.msrb.gmra.mxu3 %v5152_v57  ;;  %2775 = vmatmul.msk.bf16.gmra.mxu1 %vm814_vm2, %v3605_v42  ;;  %v4071_v54 = vpop.f32.mrf.mxu0 }
 0x1f2   : > { %5154 = vst [vmem:[#allocation53_spill] sm:$0xff] %v4071_v54 }
 0x1f4   : > { %v936_v18 = vpop.f32.mrf.mxu3 }
 0x1f6   : > { %v4066_v36 = vpop.f32.mrf.mxu1 }
 0x1f7   : > { %v1055_v44 = vpop.f32.mrf.mxu2  ;;  %5153 = vst [vmem:[#allocation52_spill] sm:$0xff] %v4066_v36 }
 0x1f8   : > { %v4069_v4 = vadd.f32 %v1055_v44, %v3931_v6 }
 0x1f9   : > { %v4086_v44 = vpop.f32.mrf.mxu0 }
 0x1fa   : > { %5156 = vst [vmem:[#allocation55_spill] sm:$0xff] %v4086_v44 }
 0x1fc   : > { %2789 = vmatmul.msk.bf16.gmra.mxu2 %vm814_vm2, %v3514_v51  ;;  %2817 = vmatmul.msk.bf16.vlgmr.msra.gmra.mxu0 %vm814_vm2, %v3340_v20  ;;  %v938_v47 = vpop.f32.mrf.mxu3 }
 0x1fe   : > { %v4077_v25 = vpop.f32.mrf.mxu1 }
 0x1ff   : > { %v1058_v5 = vpop.f32.mrf.mxu2  ;;  %5155 = vst [vmem:[#allocation54_spill] sm:$0xff] %v4077_v25 }
 0x200   : > { %v4080_v0 = vadd.f32 %v1058_v5, %v3948_v27 }
 0x201   : > { %2734 = vmatmul.msk.bf16.gmra.mxu3 %vm814_vm2, %v3329_v14  ;;  %2776 = vmatmul.msk.bf16.gmra.mxu1 %vm814_vm2, %v3647_v61  ;;  %v4099_v25 = vpop.f32.mrf.mxu0 }
 0x202   : > { %5159 = vst [vmem:[#allocation58_spill] sm:$0xff] %v4099_v25 }
 0x204   : > { %v941_v6 = vpop.f32.mrf.mxu3 }
 0x206   : > { %v4088_v36 = vpop.f32.mrf.mxu1 }
 0x207   : > { %v1060_v54 = vpop.f32.mrf.mxu2  ;;  %5157 = vst [vmem:[#allocation56_spill] sm:$0xff] %v4088_v36 }
 0x208   : > { %v4091_v20 = vadd.f32 %v1060_v54, %v3963_v17 }
 0x209   : > { %v4113_v55 = vpop.f32.mrf.mxu0 }
 0x20a   : > { %5162 = vst [vmem:[#allocation61_spill] sm:$0xff] %v4113_v55 }
 0x20c   : > { %2790 = vmatmul.msk.bf16.gmra.mxu2 %vm814_vm2, %v3556_v34  ;;  %2818 = vmatmul.msk.bf16.gmra.mxu0 %vm814_vm2, %v3375_v43  ;;  %v943_v27 = vpop.f32.mrf.mxu3 }
 0x20e   : > { %v4097_v5 = vpop.f32.mrf.mxu1 }
 0x20f   : > { %v1063_v14 = vpop.f32.mrf.mxu2  ;;  %5158 = vst [vmem:[#allocation57_spill] sm:$0xff] %v4097_v5 }
 0x210   : > { %v4102_v44 = vadd.f32 %v1063_v14, %v3980_v49 }
 0x211   : > { %2735 = vmatmul.msk.bf16.gmra.mxu3 %vm814_vm2, %v3364_v37  ;;  %2777 = vmatmul.msk.bf16.gmra.mxu1 %vm814_vm2, %v3691_v33 }
 0x214   : > { %v946_v17 = vpop.f32.mrf.mxu3 }
 0x216   : > { %v4108_v36 = vpop.f32.mrf.mxu1 }
 0x217   : > { %v1065_v54 = vpop.f32.mrf.mxu2  ;;  %5160 = vst [vmem:[#allocation59_spill] sm:$0xff] %v4108_v36 }
 0x218   : > { %v4111_v43 = vadd.f32 %v1065_v54, %v4001_v19  ;;  %v4127_v19 = vpop.f32.mrf.mxu0 }
 0x219   : > { %5164 = vst [vmem:[#allocation63_spill] sm:$0xff] %v4127_v19 }
 0x21a   : > { %5161 = vst [vmem:[#allocation60_spill] sm:$0xff] %v4111_v43 }
 0x21c   : > { %2791 = vmatmul.msk.bf16.gmra.mxu2 %vm814_vm2, %v3596_v30  ;;  %2819 = vmatmul.msk.bf16.gmra.mxu0 %vm814_vm2, %v3403_v10  ;;  %v948_v49 = vpop.f32.mrf.mxu3 }
 0x21e   : > { %v4119_v25 = vpop.f32.mrf.mxu1 }
 0x21f   : > { %v1068_v14 = vpop.f32.mrf.mxu2  ;;  %5163 = vst [vmem:[#allocation62_spill] sm:$0xff] %v4119_v25 }
 0x220   : > { %v4121_v5 = vadd.f32 %v1068_v14, %v931_v46  ;;  %v4137_v46 = vpop.f32.mrf.mxu0 }
 0x221   : > { %2736 = vmatmul.msk.bf16.gmra.mxu3 %vm814_vm2, %v3395_v2  ;;  %2778 = vmatmul.msk.bf16.gmra.mxu1 %vm814_vm2, %v3739_v35  ;;  %5166 = vst [vmem:[#allocation65_spill] sm:$0xff] %v4137_v46 }
 0x224   : > { %v951_v54 = vpop.f32.mrf.mxu3 }
 0x226   : > { %v4129_v36 = vpop.f32.mrf.mxu1 }
 0x227   : > { %v1070_v55 = vpop.f32.mrf.mxu2  ;;  %5165 = vst [vmem:[#allocation64_spill] sm:$0xff] %v4129_v36 }
 0x228   : > { %v4131_v43 = vadd.f32 %v1070_v55, %v933_v1  ;;  %v4149_v36 = vpop.f32.mrf.mxu0 }
 0x229   : > { %5169 = vst [vmem:[#allocation68_spill] sm:$0xff] %v4149_v36 }
 0x22c   : > { %2792 = vmatmul.msk.bf16.gmra.mxu2 %vm814_vm2, %v3638_v50  ;;  %2820 = vmatmul.msk.bf16.gmra.mxu0 %vm814_vm2, %v3445_v45  ;;  %v953_v10 = vpop.f32.mrf.mxu3 }
 0x22e   : > { %v4139_v14 = vpop.f32.mrf.mxu1 }
 0x22f   : > { %5167 = vst [vmem:[#allocation66_spill] sm:$0xff] %v4139_v14 }
 0x230   : > { %v4159_v25 = vpop.f32.mrf.mxu0 }
 0x231   : > { %2737 = vmatmul.msk.bf16.gmra.mxu3 %vm814_vm2, %v3438_v38  ;;  %2779 = vmatmul.msk.bf16.gmra.mxu1 %vm814_vm2, %v3787_v9  ;;  %5171 = vst [vmem:[#allocation70_spill] sm:$0xff] %v4159_v25 }
 0x234   : > { %v1073_v19 = vpop.f32.mrf.mxu3 }
 0x235   : > { %v4145_v55 = vadd.f32 %v1073_v19, %v936_v18 }
 0x236   : > { %v4147_v1 = vpop.f32.mrf.mxu1 }
 0x237   : > { %5168 = vst [vmem:[#allocation67_spill] sm:$0xff] %v4147_v1 }
 0x238   : > { %v4169_v1 = vpop.f32.mrf.mxu0 }
 0x239   : > { %5173 = vst [vmem:[#allocation72_spill] sm:$0xff] %v4169_v1 }
 0x23c   : > { %2793 = vmatmul.msk.bf16.gmra.mxu2 %vm814_vm2, %v3682_v15  ;;  %2821 = vmatmul.msk.bf16.gmra.mxu0 %vm814_vm2, %v3483_v21  ;;  %v1075_v45 = vpop.f32.mrf.mxu3 }
 0x23d   : > { %v4155_v46 = vadd.f32 %v1075_v45, %v938_v47 }
 0x23e   : > { %v4157_v14 = vpop.f32.mrf.mxu1 }
 0x23f   : > { %5170 = vst [vmem:[#allocation69_spill] sm:$0xff] %v4157_v14 }
 0x240   : > { %v4185_v1 = vpop.f32.mrf.mxu0 }
 0x241   : > { %2738 = vmatmul.msk.bf16.gmra.mxu3 %vm814_vm2, %v3476_v13  ;;  %2780 = vmatmul.msk.bf16.gmra.mxu1 %vm814_vm2, %v3837_v11  ;;  %5176 = vst [vmem:[#allocation75_spill] sm:$0xff] %v4185_v1 }
 0x244   : > { %v1078_v18 = vpop.f32.mrf.mxu3 }
 0x245   : > { %v4165_v19 = vadd.f32 %v1078_v18, %v941_v6  ;;  %v4183_v18 = vpop.f32.mrf.mxu2 }
 0x246   : > { %v4167_v36 = vpop.f32.mrf.mxu1  ;;  %5175 = vst [vmem:[#allocation74_spill] sm:$0xff] %v4183_v18 }
 0x247   : > { %5172 = vst [vmem:[#allocation71_spill] sm:$0xff] %v4167_v36  ;;  %v1119_v36 = vrot.slane %v3826_v52, 1  ;;  %v5180_v52 = vrot.slane %v3715_v12, 1  ;;  %v2275_v12 = vld [vmem:[%s5073_s7] sm:$0x3] }
 0x248   : > { %v4201_v1 = vpop.f32.mrf.mxu0 }
 0x249   : > { %5179 = vst [vmem:[#allocation78_spill] sm:$0xff] %v4201_v1 }
 0x24c   : > { %2794 = vmatmul.msk.bf16.gmra.mxu2 %vm814_vm2, %v3729_v29  ;;  %2822 = vmatmul.msk.bf16.gmra.mxu0 %vm814_vm2, %v3521_v63  ;;  %v1080_v21 = vpop.f32.mrf.mxu3 }
 0x24d   : > { %v4175_v47 = vadd.f32 %v1080_v21, %v943_v27  ;;  %v4199_v14 = vpop.f32.mrf.mxu2 }
 0x24e   : > { %v4181_v6 = vpop.f32.mrf.mxu1  ;;  %5178 = vst [vmem:[#allocation77_spill] sm:$0xff] %v4199_v14 }
 0x24f   : > { %5174 = vst [vmem:[#allocation73_spill] sm:$0xff] %v4181_v6  ;;  %v1118_v6 = vrot.slane %v3778_v58, 1 }
 0x250   : > { %v4225_v14 = vpop.f32.mrf.mxu0 }
 0x251   : > { %2739 = vmatmul.msk.bf16.gmra.mxu3 %vm814_vm2, %v3514_v51  ;;  %2781 = vmatmul.msk.bf16.gmra.mxu1 %vm814_vm2, %v3887_v60  ;;  %5181 = vst [vmem:[#allocation79_spill] sm:$0xff] %v4225_v14 }
 0x254   : > { %v1083_v45 = vpop.f32.mrf.mxu3 }
 0x255   : > { %v4187_v25 = vadd.f32 %v1083_v45, %v946_v17  ;;  %v4205_v17 = vpack.c.bf16 %v3411_v16, %v4025_v62  ;;  %v1130_v45 = vsel %vm1124_vm3, %v5180_v52, %v1118_v6  ;;  %v1121_v52 = vrot.slane %v3876_v32, 1 }
 0x256   : > { %v4193_v27 = vpop.f32.mrf.mxu1 }
 0x257   : > { %5177 = vst [vmem:[#allocation76_spill] sm:$0xff] %v4193_v27  ;;  %v4223_v27 = vpop.f32.mrf.mxu2 }
 0x25c   : > { %2795 = vmatmul.msk.bf16.gmra.mxu2 %vm814_vm2, %v3755_v8  ;;  %2823 = vmatmul.msk.bf16.gmra.mxu0 %vm814_vm2, %v3563_v40  ;;  %v1085_v63 = vpop.f32.mrf.mxu3  ;;  %v1129_v40 = vsel %vm1124_vm3, %v1118_v6, %v1119_v36  ;;  %v2325_v6 = vsel %vm863_vm1, %v2275_v12, 0 }
 0x25d   : > { %v4195_v21 = vadd.f32 %v1085_v63, %v948_v49  ;;  %v1186_v63 = vsel %vm1156_vm4, %v1129_v40, 0.0  ;;  %2334 = vmatpush.bf16.msra.mxu2 %v2325_v6 }
 0x25e   : > { %v4221_v1 = vpop.f32.mrf.mxu1  ;;  %v4227_v18 = vpack.c.bf16 %v1186_v63, %v1130_v45  ;;  %v4249_v63 = vpop.f32.mrf.mxu0 }
 0x25f   : > { %5182 = vst [vmem:[#allocation80_spill] sm:$0xff] %v4249_v63 }
 0x261   : > { %2740 = vmatmul.msk.bf16.gmra.mxu3 %vm814_vm2, %v3556_v34  ;;  %2782 = vmatmul.msk.bf16.gmra.mxu1 %vm814_vm2, %v4205_v17 }
 0x264   : > { %v1088_v58 = vpop.f32.mrf.mxu3 }
 0x265   : > { %v4213_v49 = vadd.f32 %v1088_v58, %v951_v54  ;;  %v1120_v58 = vrot.slane %v3828_v48, 1 }
 0x266   : > { %v4241_v45 = vpop.f32.mrf.mxu1 }
 0x267   : > { %v1128_v32 = vsel %vm1124_vm3, %v1119_v36, %v1120_v58  ;;  %v4272_v36 = vpop.f32.mrf.mxu0 }
 0x268   : > { %5184 = vst [vmem:[#allocation82_spill] sm:$0xff] %v4272_v36 }
 0x26c   : > { %2796 = vmatmul.msk.bf16.gmra.mxu2 %vm814_vm2, %v4227_v18  ;;  %2824 = vmatmul.msk.bf16.gmra.mxu0 %vm814_vm2, %v3605_v42  ;;  %v1090_v54 = vpop.f32.mrf.mxu3  ;;  %v4247_v42 = vpop.f32.mrf.mxu2 }
 0x26d   : > { %v4237_v40 = vadd.f32 %v1090_v54, %v953_v10  ;;  %v1127_v10 = vsel %vm1124_vm3, %v1120_v58, %v1121_v52 }
 0x26e   : > { %v1188_v54 = vsel %vm1156_vm4, %v1127_v10, 0.0  ;;  %v4264_v14 = vpop.f32.mrf.mxu1  ;;  %v1122_v10 = vrot.slane %v3878_v22, 1 }
 0x26f   : > { %v4260_v6 = vpack.c.bf16 %v1188_v54, %v1128_v32  ;;  %5183 = vst [vmem:[#allocation81_spill] sm:$0xff] %v4264_v14  ;;  %v1123_v32 = vrot.slane %v4025_v62, 1  ;;  %v5186_v54 = vld [vmem:[#allocation22_spill] sm:$0xff] }
 0x270   : > { %v1126_v22 = vsel %vm1124_vm3, %v1121_v52, %v1122_v10  ;;  %v1642_v52 = vrot.slane %v3411_v16, 1 }
 0x271   : > { %2741 = vmatmul.msk.bf16.gmra.mxu3 %vm814_vm2, %v3596_v30  ;;  %2833 = vmatmul.msk.bf16.vlgmr.msra.gmra.mxu1 %vm814_vm2, %v3364_v37  ;;  %v1016_v37 = vadd.f32 %v3757_v56, %v3573_v7  ;;  %v1125_v7 = vsel %vm1124_vm3, %v1122_v10, %v1123_v32 }
 0x272   : > { %v1190_v62 = vsel %vm1156_vm4, %v1125_v7, 0.0 }
 0x274   : > { %v1265_v12 = vpop.f32.mrf.mxu3 }
 0x275   : > { %v4254_v48 = vadd.f32 %v1265_v12, %v3649_v28  ;;  %v4270_v12 = vpop.f32.mrf.mxu2 }
 0x276   : > { %v4284_v56 = vpop.f32.mrf.mxu1 }
 0x277   : > { %5185 = vst [vmem:[#allocation83_spill] sm:$0xff] %v4284_v56 }
 0x27c   : > { %2797 = vmatmul.msk.bf16.gmra.mxu2 %vm814_vm2, %v4260_v6  ;;  %2825 = vmatmul.msk.bf16.gmra.mxu0 %vm814_vm2, %v3647_v61  ;;  %v1267_v28 = vpop.f32.mrf.mxu3 }
 0x27d   : > { %v4274_v58 = vadd.f32 %v1267_v28, %v1016_v37  ;;  %v4293_v37 = vpop.f32.mrf.mxu2  ;;  %v4295_v28 = vpop.f32.mrf.mxu0 }
 0x27e   : > { %5187 = vst [vmem:[#allocation22_spill] sm:$0xff] %v4295_v28  ;;  %v4307_v10 = vpop.f32.mrf.mxu1  ;;  %v1643_v28 = vsel %vm1124_vm3, %v1123_v32, %v1642_v52 }
 0x27f   : > { %5188 = vst [vmem:[#allocation84_spill] sm:$0xff] %v4307_v10 }
 0x281   : > { %2742 = vmatmul.msk.bf16.gmra.mxu3 %vm814_vm2, %v3638_v50  ;;  %2834 = vmatmul.msk.bf16.gmra.mxu1 %vm814_vm2, %v3395_v2  ;;  %v4297_v2 = vpack.c.bf16 %v1190_v62, %v1126_v22  ;;  %v5190_v22 = vld [vmem:[#allocation12_spill] sm:$0xff] }
 0x284   : > { %v1270_v61 = vpop.f32.mrf.mxu3 }
 0x285   : > { %v4287_v36 = vadd.f32 %v1270_v61, %v5186_v54  ;;  %v4309_v7 = vpop.f32.mrf.mxu2  ;;  %v4311_v63 = vpop.f32.mrf.mxu0 }
 0x286   : > { %5189 = vst [vmem:[#allocation85_spill] sm:$0xff] %v4311_v63  ;;  %v4328_v10 = vpop.f32.mrf.mxu1 }
 0x287   : > { %5193 = vst [vmem:[#allocation12_spill] sm:$0xff] %v4328_v10 }
 0x28c   : > { %2798 = vmatmul.msk.bf16.gmra.mxu2 %vm814_vm2, %v4297_v2  ;;  %2826 = vmatmul.msk.bf16.gmra.mxu0 %vm814_vm2, %v3691_v33  ;;  %v1272_v61 = vpop.f32.mrf.mxu3  ;;  %v5191_v33 = vrot.slane %v5190_v22, 1 }
 0x28d   : > { %v4304_v54 = vadd.f32 %v1272_v61, %v3811_v59  ;;  %v5192_v61 = vld [vmem:[#allocation26_spill] sm:$0xff]  ;;  %v4334_v22 = vpop.f32.mrf.mxu0 }
 0x28e   : > { %v1644_v59 = vsel %vm1124_vm3, %v1642_v52, %v5191_v33  ;;  %5194 = vst [vmem:[#allocation26_spill] sm:$0xff] %v4334_v22  ;;  %v4347_v3 = vpop.f32.mrf.mxu1  ;;  %v5197_v52 = vld [vmem:[#allocation31_spill] sm:$0xff] }
 0x28f   : > { %v1646_v63 = vsel %vm1156_vm4, %v1644_v59, 0.0  ;;  %5195 = vst [vmem:[#allocation86_spill] sm:$0xff] %v4347_v3 }
 0x290   : > { %v4330_v56 = vpack.c.bf16 %v1646_v63, %v1643_v28 }
 0x291   : > { %2743 = vmatmul.msk.bf16.gmra.mxu3 %vm814_vm2, %v3682_v15  ;;  %2835 = vmatmul.msk.bf16.gmra.mxu1 %vm814_vm2, %v3438_v38  ;;  %v4332_v38 = vpop.f32.mrf.mxu2 }
 0x294   : > { %v1275_v62 = vpop.f32.mrf.mxu3 }
 0x295   : > { %v4322_v16 = vadd.f32 %v1275_v62, %v5192_v61  ;;  %v4349_v32 = vpop.f32.mrf.mxu0 }
 0x29c   : > { %2799 = vmatmul.msk.bf16.gmra.mxu2 %vm814_vm2, %v4330_v56  ;;  %2827 = vmatmul.msk.bf16.gmra.mxu0 %vm814_vm2, %v3739_v35  ;;  %v1277_v33 = vpop.f32.mrf.mxu3 }
 0x29d   : > { %v4341_v53 = vadd.f32 %v1277_v33, %v3862_v26  ;;  %v4356_v26 = vpop.f32.mrf.mxu1  ;;  %v4361_v62 = vpop.f32.mrf.mxu0 }
 0x29e   : > { %5196 = vst [vmem:[#allocation87_spill] sm:$0xff] %v4356_v26 }
 0x2a1   : > { %2744 = vmatmul.msk.bf16.gmra.mxu3 %vm814_vm2, %v3729_v29  ;;  %2836 = vmatmul.msk.bf16.gmra.mxu1 %vm814_vm2, %v3476_v13 }
 0x2a4   : > { %v1280_v63 = vpop.f32.mrf.mxu3 }
 0x2a5   : > { %v4352_v28 = vadd.f32 %v1280_v63, %v3883_v31  ;;  %v5198_v31 = vld [vmem:[#allocation34_spill] sm:$0xff]  ;;  %v4370_v33 = vpop.f32.mrf.mxu1 }
 0x2a6   : > { %5199 = vst [vmem:[#allocation31_spill] sm:$0xff] %v4370_v33 }
 0x2ac   : > { %2828 = vmatmul.msk.bf16.gmra.mxu0 %vm814_vm2, %v3787_v9  ;;  %v1282_v35 = vpop.f32.mrf.mxu3  ;;  %v4372_v9 = vpop.f32.mrf.mxu0 }
 0x2ad   : > { %v4359_v59 = vadd.f32 %v1282_v35, %v5197_v52  ;;  %v5200_v35 = vld [vmem:[#allocation36_spill] sm:$0xff]  ;;  %v4379_v22 = vpop.f32.mrf.mxu1 }
 0x2ae   : > { %5201 = vst [vmem:[#allocation34_spill] sm:$0xff] %v4379_v22 }
 0x2b1   : > { %2745 = vmatmul.msk.bf16.gmra.mxu3 %vm814_vm2, %v3755_v8  ;;  %2837 = vmatmul.msk.bf16.gmra.mxu1 %vm814_vm2, %v3514_v51 }
 0x2b4   : > { %v1285_v13 = vpop.f32.mrf.mxu3  ;;  %v4385_v51 = vpop.f32.mrf.mxu0 }
 0x2b5   : > { %v4368_v61 = vadd.f32 %v1285_v13, %v5198_v31  ;;  %v5202_v31 = vld [vmem:[#allocation39_spill] sm:$0xff]  ;;  %v4390_v26 = vpop.f32.mrf.mxu1 }
 0x2b6   : > { %5203 = vst [vmem:[#allocation36_spill] sm:$0xff] %v4390_v26 }
 0x2bc   : > { %2829 = vmatmul.msk.bf16.gmra.mxu0 %vm814_vm2, %v3837_v11  ;;  %v1287_v63 = vpop.f32.mrf.mxu3 }
 0x2bd   : > { %v4377_v52 = vadd.f32 %v1287_v63, %v5200_v35  ;;  %v4394_v63 = vpop.f32.mrf.mxu0  ;;  %v5204_v35 = vld [vmem:[#allocation41_spill] sm:$0xff] }
 0x2c1   : > { %2746 = vmatmul.msk.bf16.gmra.mxu3 %vm814_vm2, %v4227_v18  ;;  %2838 = vmatmul.msk.bf16.gmra.mxu1 %vm814_vm2, %v3556_v34 }
 0x2c4   : > { %v1290_v13 = vpop.f32.mrf.mxu3 }
 0x2c5   : > { %v4388_v33 = vadd.f32 %v1290_v13, %v5202_v31  ;;  %v4403_v13 = vpop.f32.mrf.mxu1  ;;  %v5206_v31 = vld [vmem:[#allocation44_spill] sm:$0xff]  ;;  %v4408_v3 = vpop.f32.mrf.mxu0 }
 0x2c6   : > { %5205 = vst [vmem:[#allocation39_spill] sm:$0xff] %v4403_v13 }
 0x2cc   : > { %2830 = vmatmul.msk.bf16.gmra.mxu0 %vm814_vm2, %v3887_v60  ;;  %v1292_v11 = vpop.f32.mrf.mxu3 }
 0x2cd   : > { %v4397_v22 = vadd.f32 %v1292_v11, %v5204_v35  ;;  %v4415_v35 = vpop.f32.mrf.mxu1  ;;  %v4417_v10 = vpop.f32.mrf.mxu0 }
 0x2ce   : > { %5207 = vst [vmem:[#allocation41_spill] sm:$0xff] %v4415_v35  ;;  %v5209_v35 = vld [vmem:[#allocation13_spill] sm:$0xff] }
 0x2d1   : > { %2747 = vmatmul.msk.bf16.gmra.mxu3 %vm814_vm2, %v4260_v6  ;;  %2839 = vmatmul.msk.bf16.gmra.mxu1 %vm814_vm2, %v3596_v30 }
 0x2d4   : > { %v1295_v34 = vpop.f32.mrf.mxu3 }
 0x2d5   : > { %v4406_v26 = vadd.f32 %v1295_v34, %v5206_v31  ;;  %v4426_v31 = vpop.f32.mrf.mxu1 }
 0x2d6   : > { %5208 = vst [vmem:[#allocation44_spill] sm:$0xff] %v4426_v31 }
 0x2dc   : > { %2831 = vmatmul.msk.bf16.gmra.mxu0 %vm814_vm2, %v4205_v17  ;;  %v1297_v60 = vpop.f32.mrf.mxu3  ;;  %v4428_v17 = vpop.f32.mrf.mxu0 }
 0x2dd   : > { %v4413_v11 = vadd.f32 %v1297_v60, %v4008_v23 }
 0x2e1   : > { %2748 = vmatmul.msk.bf16.gmra.mxu3 %vm814_vm2, %v4297_v2  ;;  %2840 = vmatmul.msk.bf16.gmra.mxu1 %vm814_vm2, %v3638_v50  ;;  %v4438_v50 = vpop.f32.mrf.mxu1 }
 0x2e2   : > { %5210 = vst [vmem:[#allocation13_spill] sm:$0xff] %v4438_v50  ;;  %v4472_v50 = vpop.f32.mrf.mxu2 }
 0x2e4   : > { %v1300_v30 = vpop.f32.mrf.mxu3 }
 0x2e5   : > { %v4424_v34 = vadd.f32 %v1300_v30, %v4031_v41 }
 0x2e9   : > { %v4443_v13 = vpop.f32.mrf.mxu1 }
 0x2ea   : > { %5212 = vst [vmem:[#allocation89_spill] sm:$0xff] %v4443_v13 }
 0x2ec   : > { %1991 = vmatmul.bf16.gmra.mxu0 %v5152_v57  ;;  %v1302_v23 = vpop.f32.mrf.mxu3 }
 0x2ed   : > { %v4432_v60 = vadd.f32 %v1302_v23, %v4048_v24  ;;  %v5214_v24 = vld [vmem:[#allocation14_spill] sm:$0xff] }
 0x2f1   : > { %2801 = vmatmul.msk.bf16.vlgmr.msra.gmra.mxu3 %vm814_vm2, %v5209_v35  ;;  %2841 = vmatmul.msk.bf16.gmra.mxu1 %vm814_vm2, %v3682_v15  ;;  %v4455_v23 = vpop.f32.mrf.mxu1 }
 0x2f2   : > { %5216 = vst [vmem:[#allocation91_spill] sm:$0xff] %v4455_v23 }
 0x2f4   : > { %v1305_v41 = vpop.f32.mrf.mxu3 }
 0x2f5   : > { %v4441_v30 = vadd.f32 %v1305_v41, %v4059_v39 }
 0x2f7   : > { %5211 = vst [vmem:[#allocation88_spill] sm:$0xff] %v4441_v30 }
 0x2f9   : > { %v4460_v13 = vpop.f32.mrf.mxu1 }
 0x2fa   : > { %5218 = vst [vmem:[#allocation93_spill] sm:$0xff] %v4460_v13 }
 0x2fc   : > { %v1307_v31 = vpop.f32.mrf.mxu3 }
 0x2fd   : > { %v4446_v14 = vadd.f32 %v1307_v31, %v4069_v4  ;;  %v5219_v4 = vld [vmem:[#allocation15_spill] sm:$0xff] }
 0x2ff   : > { %5213 = vst [vmem:[#allocation90_spill] sm:$0xff] %v4446_v14 }
 0x301   : > { %2802 = vmatmul.msk.bf16.gmra.mxu3 %vm814_vm2, %v5214_v24  ;;  %2842 = vmatmul.msk.bf16.gmra.mxu1 %vm814_vm2, %v3729_v29 }
 0x304   : > { %v1310_v35 = vpop.f32.mrf.mxu3 }
 0x305   : > { %v4453_v15 = vadd.f32 %v1310_v35, %v4080_v0  ;;  %v2043_v0 = vpop.f32.mrf.mxu1  ;;  %v5221_v35 = vld [vmem:[#allocation60_spill] sm:$0xff] }
 0x307   : > { %5215 = vst [vmem:[#allocation14_spill] sm:$0xff] %v4453_v15  ;;  %v5241_v15 = vld [vmem:[#allocation23_spill] sm:$0xff] }
 0x30c   : > { %v1312_v39 = vpop.f32.mrf.mxu3 }
 0x30d   : > { %v4458_v41 = vadd.f32 %v1312_v39, %v4091_v20  ;;  %v5223_v20 = vld [vmem:[#allocation16_spill] sm:$0xff] }
 0x30f   : > { %5217 = vst [vmem:[#allocation92_spill] sm:$0xff] %v4458_v41 }
 0x311   : > { %2803 = vmatmul.msk.bf16.gmra.mxu3 %vm814_vm2, %v5219_v4  ;;  %2843 = vmatmul.msk.bf16.gmra.mxu1 %vm814_vm2, %v3755_v8  ;;  %v2045_v4 = vpop.f32.mrf.mxu1 }
 0x314   : > { %v1315_v31 = vpop.f32.mrf.mxu3 }
 0x315   : > { %v4467_v29 = vadd.f32 %v1315_v31, %v4102_v44  ;;  %v4481_v44 = vpop.f32.mrf.mxu2 }
 0x317   : > { %5220 = vst [vmem:[#allocation15_spill] sm:$0xff] %v4467_v29 }
 0x31c   : > { %v1317_v24 = vpop.f32.mrf.mxu3 }
 0x31d   : > { %v4470_v23 = vadd.f32 %v1317_v24, %v5221_v35  ;;  %v4486_v24 = vpop.f32.mrf.mxu1  ;;  %v5226_v35 = vld [vmem:[#allocation17_spill] sm:$0xff] }
 0x31f   : > { %5222 = vst [vmem:[#allocation60_spill] sm:$0xff] %v4470_v23 }
 0x321   : > { %2804 = vmatmul.msk.bf16.gmra.mxu3 %vm814_vm2, %v5223_v20  ;;  %2844 = vmatmul.msk.bf16.gmra.mxu1 %vm814_vm2, %v4227_v18  ;;  %v4492_v18 = vpop.f32.mrf.mxu2 }
 0x324   : > { %v1320_v39 = vpop.f32.mrf.mxu3 }
 0x325   : > { %v4479_v8 = vadd.f32 %v1320_v39, %v4121_v5  ;;  %v4497_v39 = vpop.f32.mrf.mxu1 }
 0x327   : > { %5224 = vst [vmem:[#allocation16_spill] sm:$0xff] %v4479_v8 }
 0x32c   : > { %v1322_v31 = vpop.f32.mrf.mxu3 }
 0x32d   : > { %v4484_v13 = vadd.f32 %v1322_v31, %v4131_v43  ;;  %v4502_v31 = vpop.f32.mrf.mxu2 }
 0x32f   : > { %5225 = vst [vmem:[#allocation94_spill] sm:$0xff] %v4484_v13  ;;  %v5229_v13 = vld [vmem:[#allocation18_spill] sm:$0xff] }
 0x331   : > { %2805 = vmatmul.msk.bf16.gmra.mxu3 %vm814_vm2, %v5226_v35  ;;  %2845 = vmatmul.msk.bf16.gmra.mxu1 %vm814_vm2, %v4260_v6  ;;  %v4508_v6 = vpop.f32.mrf.mxu1 }
 0x334   : > { %v1325_v20 = vpop.f32.mrf.mxu3 }
 0x335   : > { %v4495_v5 = vadd.f32 %v1325_v20, %v4145_v55  ;;  %v4513_v20 = vpop.f32.mrf.mxu2 }
 0x337   : > { %5227 = vst [vmem:[#allocation17_spill] sm:$0xff] %v4495_v5 }
 0x339   : > { %v4515_v23 = vpop.f32.mrf.mxu1 }
 0x33c   : > { %v1327_v8 = vpop.f32.mrf.mxu3 }
 0x33d   : > { %v4500_v43 = vadd.f32 %v1327_v8, %v4155_v46  ;;  %v5232_v8 = vld [vmem:[#allocation19_spill] sm:$0xff] }
 0x33f   : > { %5228 = vst [vmem:[#allocation95_spill] sm:$0xff] %v4500_v43 }
 0x341   : > { %2806 = vmatmul.msk.bf16.gmra.mxu3 %vm814_vm2, %v5229_v13  ;;  %2846 = vmatmul.msk.bf16.gmra.mxu1 %vm814_vm2, %v4297_v2  ;;  %v4524_v2 = vpop.f32.mrf.mxu2 }
 0x344   : > { %v1330_v35 = vpop.f32.mrf.mxu3 }
 0x345   : > { %v4511_v55 = vadd.f32 %v1330_v35, %v4165_v19  ;;  %v4529_v35 = vpop.f32.mrf.mxu1 }
 0x347   : > { %5230 = vst [vmem:[#allocation18_spill] sm:$0xff] %v4511_v55 }
 0x349   : > { %v4531_v55 = vpop.f32.mrf.mxu2 }
 0x34c   : > { %v1332_v5 = vpop.f32.mrf.mxu3 }
 0x34d   : > { %v4518_v46 = vadd.f32 %v1332_v5, %v4175_v47  ;;  %v4536_v5 = vpop.f32.mrf.mxu1 }
 0x34f   : > { %5231 = vst [vmem:[#allocation96_spill] sm:$0xff] %v4518_v46 }
 0x351   : > { %2807 = vmatmul.msk.bf16.gmra.mxu3 %vm814_vm2, %v5232_v8  ;;  %2847 = vmatmul.msk.bf16.gmra.mxu1 %vm814_vm2, %v4330_v56  ;;  %v5235_v8 = vld [vmem:[#allocation21_spill] sm:$0xff] }
 0x354   : > { %v1335_v13 = vpop.f32.mrf.mxu3 }
 0x355   : > { %v4527_v19 = vadd.f32 %v1335_v13, %v4187_v25  ;;  %v4544_v25 = vpop.f32.mrf.mxu2  ;;  %v5238_v13 = vld [vmem:[#allocation20_spill] sm:$0xff] }
 0x356   : > { %5237 = vst [vmem:[#allocation98_spill] sm:$0xff] %v4544_v25 }
 0x357   : > { %5233 = vst [vmem:[#allocation19_spill] sm:$0xff] %v4527_v19  ;;  %v1480_v19 = vadd.f32 %v5238_v13, %v4254_v48  ;;  %v5243_v13 = vld [vmem:[#allocation52_spill] sm:$0xff] }
 0x35c   : > { %v1337_v43 = vpop.f32.mrf.mxu3 }
 0x35d   : > { %v4534_v47 = vadd.f32 %v1337_v43, %v4195_v21  ;;  %v5239_v43 = vld [vmem:[#allocation50_spill] sm:$0xff]  ;;  %v4552_v41 = vpop.f32.mrf.mxu2 }
 0x35f   : > { %5234 = vst [vmem:[#allocation97_spill] sm:$0xff] %v4534_v47  ;;  %v1610_v47 = vadd.f32 %v5239_v43, %v1480_v19 }
 0x361   : > { %2808 = vmatmul.msk.bf16.gmra.mxu3 %vm814_vm2, %v5235_v8  ;;  %2117 = vmatmul.bf16.gmra.mxu1 %v5152_v57  ;;  %v5240_v8 = vld [vmem:[#allocation25_spill] sm:$0xff] }
 0x364   : > { %v1340_v56 = vpop.f32.mrf.mxu3 }
 0x365   : > { %v4542_v46 = vadd.f32 %v1340_v56, %v4213_v49  ;;  %v1481_v49 = vadd.f32 %v5241_v15, %v4274_v58  ;;  %v5242_v56 = vld [vmem:[#allocation74_spill] sm:$0xff]  ;;  %v5245_v58 = vld [vmem:[#allocation77_spill] sm:$0xff] }
 0x367   : > { %5236 = vst [vmem:[#allocation21_spill] sm:$0xff] %v4542_v46  ;;  %v1745_v46 = vadd.f32 %v5242_v56, %v1610_v47  ;;  %v1611_v30 = vadd.f32 %v5243_v13, %v1481_v49  ;;  %v5247_v49 = vld [vmem:[#allocation29_spill] sm:$0xff] }
 0x369   : > { %v1746_v15 = vadd.f32 %v5245_v58, %v1611_v30 }
 0x36c   : > { %v1342_v29 = vpop.f32.mrf.mxu3 }
 0x36d   : > { %v4549_v21 = vadd.f32 %v1342_v29, %v4237_v40  ;;  %v4561_v40 = vpop.f32.mrf.mxu2  ;;  %v5244_v29 = vld [vmem:[#allocation24_spill] sm:$0xff] }
 0x36e   : > { %v1482_v19 = vadd.f32 %v5244_v29, %v4287_v36  ;;  %v5246_v36 = vld [vmem:[#allocation54_spill] sm:$0xff] }
 0x371   : > { %2809 = vmatmul.msk.bf16.gmra.mxu3 %vm814_vm2, %v5240_v8  ;;  %v4568_v8 = vld [vmem:[%s5071_s5] ss:$0 sm:$0xff] }
 0x374   : > { %v1791_v14 = vpop.f32.mrf.mxu3 }
 0x375   : > { %v1871_v25 = vadd.f32 %v1791_v14, %v1745_v46  ;;  %v4586_v58 = vpop.f32.mrf.mxu2 }
 0x377   : > { %v1997_v48 = vadd.f32 %v4349_v32, %v1871_v25  ;;  %v4575_v32 = vld [vmem:[%s5072_s6] ss:$0 sm:$0xff] }
 0x379   : > { %v2123_v43 = vadd.f32 %v2043_v0, %v1997_v48  ;;  %v1612_v0 = vadd.f32 %v5246_v36, %v1482_v19  ;;  %v5248_v48 = vld [vmem:[#allocation27_spill] sm:$0xff] }
 0x37a   : > { %v1483_v30 = vadd.f32 %v5248_v48, %v4304_v54  ;;  %v4591_v54 = vpop.f32.mrf.mxu0  ;;  %v4598_v48 = vpop.f32.mrf.mxu1 }
 0x37b   : > { %v2159_v14 = vmul.f32 %v4568_v8, %v2123_v43  ;;  %v1747_v43 = vadd.f32 %v4223_v27, %v1612_v0 }
 0x37c   : > { %v1793_v47 = vpop.f32.mrf.mxu3 }
 0x37d   : > { %v1872_v56 = vadd.f32 %v1793_v47, %v1746_v15  ;;  %v2195_v13 = vadd.f32 %v4575_v32, %v2159_v14  ;;  %v5250_v14 = vld [vmem:[#allocation28_spill] sm:$0xff] }
 0x37f   : > { %v1998_v46 = vadd.f32 %v4361_v62, %v1872_v56  ;;  %v2227_v19 = vmax.f32 %v2195_v13, 0.0 }
 0x381   : > { %v2124_v25 = vadd.f32 %v2045_v4, %v1998_v46  ;;  %2810 = vmatmul.msk.bf16.gmra.mxu3 %vm814_vm2, %v5247_v49  ;;  %v5249_v46 = vld [vmem:[#allocation56_spill] sm:$0xff] }
 0x382   : > { %v1613_v36 = vadd.f32 %v5249_v46, %v1483_v30  ;;  %v4613_v46 = vpop.f32.mrf.mxu0 }
 0x383   : > { %v2160_v29 = vmul.f32 %v4568_v8, %v2124_v25  ;;  %v1484_v25 = vadd.f32 %v5250_v14, %v4322_v16  ;;  %v4616_v14 = vpop.f32.mrf.mxu1 }
 0x384   : > { %v1796_v15 = vpop.f32.mrf.mxu3  ;;  %v1748_v0 = vadd.f32 %v4247_v42, %v1613_v36 }
 0x385   : > { %v2196_v62 = vadd.f32 %v4575_v32, %v2160_v29  ;;  %v1873_v47 = vadd.f32 %v1796_v15, %v1747_v43  ;;  %v4600_v43 = vpop.f32.mrf.mxu2  ;;  %v5251_v15 = vld [vmem:[#allocation57_spill] sm:$0xff] }
 0x387   : > { %v2228_v4 = vmax.f32 %v2196_v62, 0.0  ;;  %v1999_v56 = vadd.f32 %v4372_v9, %v1873_v47  ;;  %v1614_v62 = vadd.f32 %v5251_v15, %v1484_v25  ;;  %v5252_v47 = vld [vmem:[#allocation33_spill] sm:$0xff] }
 0x389   : > { %v2259_v49 = vpack.c.bf16 %v2228_v4, %v2227_v19  ;;  %v2125_v27 = vadd.f32 %v4486_v24, %v1999_v56  ;;  %v5253_v24 = vld [vmem:[#allocation30_spill] sm:$0xff]  ;;  %v1749_v56 = vadd.f32 %v4270_v12, %v1614_v62 }
 0x38a   : > { %v1485_v42 = vadd.f32 %v5253_v24, %v4341_v53 }
 0x38b   : > { %2848 = vmatmul.msk.bf16.vlgmr.msra.gmra.mxu2 %vm814_vm2, %v2259_v49  ;;  %v2161_v9 = vmul.f32 %v4568_v8, %v2125_v27 }
 0x38c   : > { %v1798_v13 = vpop.f32.mrf.mxu3 }
 0x38d   : > { %v1874_v29 = vadd.f32 %v1798_v13, %v1748_v0  ;;  %v2197_v19 = vadd.f32 %v4575_v32, %v2161_v9  ;;  %v5254_v0 = vld [vmem:[#allocation59_spill] sm:$0xff]  ;;  %v4620_v13 = vpop.f32.mrf.mxu2  ;;  %v5255_v9 = vld [vmem:[#allocation32_spill] sm:$0xff] }
 0x38e   : > { %v1615_v53 = vadd.f32 %v5254_v0, %v1485_v42  ;;  %v1486_v12 = vadd.f32 %v5255_v9, %v4352_v28  ;;  %v5256_v42 = vld [vmem:[#allocation62_spill] sm:$0xff] }
 0x38f   : > { %v2000_v30 = vadd.f32 %v4385_v51, %v1874_v29 }
 0x390   : > { %v1750_v15 = vadd.f32 %v4293_v37, %v1615_v53  ;;  %v5258_v37 = vld [vmem:[#allocation35_spill] sm:$0xff] }
 0x391   : > { %v2126_v16 = vadd.f32 %v4497_v39, %v2000_v30  ;;  %2811 = vmatmul.msk.bf16.gmra.mxu3 %vm814_vm2, %v5252_v47  ;;  %v2229_v39 = vmax.f32 %v2197_v19, 0.0  ;;  %v4627_v47 = vpop.f32.mrf.mxu0  ;;  %v1616_v19 = vadd.f32 %v5256_v42, %v1486_v12 }
 0x393   : > { %v2162_v4 = vmul.f32 %v4568_v8, %v2126_v16 }
 0x394   : > { %v1801_v36 = vpop.f32.mrf.mxu3 }
 0x395   : > { %v2198_v51 = vadd.f32 %v4575_v32, %v2162_v4  ;;  %v1875_v49 = vadd.f32 %v1801_v36, %v1749_v56  ;;  %v4632_v4 = vpop.f32.mrf.mxu1  ;;  %v5257_v56 = vld [vmem:[#allocation38_spill] sm:$0xff]  ;;  %v1487_v36 = vadd.f32 %v5258_v37, %v4359_v59 }
 0x397   : > { %v2001_v25 = vadd.f32 %v4394_v63, %v1875_v49  ;;  %v2230_v27 = vmax.f32 %v2198_v51, 0.0 }
 0x399   : > { %v2260_v29 = vpack.c.bf16 %v2230_v27, %v2229_v39  ;;  %v2127_v30 = vadd.f32 %v4508_v6, %v2001_v25  ;;  %v4637_v6 = vpop.f32.mrf.mxu2  ;;  %v4647_v12 = vpop.f32.mrf.mxu0 }
 0x39b   : > { %2849 = vmatmul.msk.bf16.gmra.mxu2 %vm814_vm2, %v2260_v29  ;;  %v2163_v63 = vmul.f32 %v4568_v8, %v2127_v30  ;;  %v5259_v29 = vld [vmem:[#allocation64_spill] sm:$0xff] }
 0x39c   : > { %v1803_v62 = vpop.f32.mrf.mxu3  ;;  %v1617_v9 = vadd.f32 %v5259_v29, %v1487_v36  ;;  %v5262_v36 = vld [vmem:[#allocation43_spill] sm:$0xff] }
 0x39d   : > { %v1876_v16 = vadd.f32 %v1803_v62, %v1750_v15  ;;  %v2199_v51 = vadd.f32 %v4575_v32, %v2163_v63  ;;  %v4649_v59 = vpop.f32.mrf.mxu1  ;;  %v5260_v15 = vld [vmem:[#allocation37_spill] sm:$0xff]  ;;  %v5264_v29 = vld [vmem:[#allocation67_spill] sm:$0xff] }
 0x39e   : > { %v1488_v62 = vadd.f32 %v5260_v15, %v4368_v61 }
 0x39f   : > { %v2002_v24 = vadd.f32 %v4408_v3, %v1876_v16  ;;  %v1751_v3 = vadd.f32 %v4309_v7, %v1616_v19  ;;  %v2231_v0 = vmax.f32 %v2199_v51, 0.0  ;;  %v1752_v16 = vadd.f32 %v4332_v38, %v1617_v9 }
 0x3a1   : > { %v2128_v28 = vadd.f32 %v4515_v23, %v2002_v24  ;;  %2812 = vmatmul.msk.bf16.gmra.mxu3 %vm814_vm2, %v5257_v56  ;;  %v4656_v63 = vpop.f32.mrf.mxu2  ;;  %v4664_v61 = vpop.f32.mrf.mxu0 }
 0x3a3   : > { %v2164_v49 = vmul.f32 %v4568_v8, %v2128_v28  ;;  %v5261_v28 = vld [vmem:[#allocation66_spill] sm:$0xff] }
 0x3a4   : > { %v1806_v39 = vpop.f32.mrf.mxu3  ;;  %v1618_v56 = vadd.f32 %v5261_v28, %v1488_v62 }
 0x3a5   : > { %v2200_v25 = vadd.f32 %v4575_v32, %v2164_v49  ;;  %v1877_v27 = vadd.f32 %v1806_v39, %v1751_v3  ;;  %v4671_v39 = vpop.f32.mrf.mxu1 }
 0x3a6   : > { %v1753_v3 = vadd.f32 %v4472_v50, %v1618_v56 }
 0x3a7   : > { %v2003_v23 = vadd.f32 %v4417_v10, %v1877_v27  ;;  %v2232_v53 = vmax.f32 %v2200_v25, 0.0 }
 0x3a9   : > { %v2261_v30 = vpack.c.bf16 %v2232_v53, %v2231_v0  ;;  %v2129_v7 = vadd.f32 %v4529_v35, %v2003_v23  ;;  %v5263_v35 = vld [vmem:[#allocation40_spill] sm:$0xff]  ;;  %v4674_v27 = vpop.f32.mrf.mxu2 }
 0x3aa   : > { %v1489_v38 = vadd.f32 %v5263_v35, %v4377_v52 }
 0x3ab   : > { %2850 = vmatmul.msk.bf16.gmra.mxu2 %vm814_vm2, %v2261_v30  ;;  %v2165_v42 = vmul.f32 %v4568_v8, %v2129_v7  ;;  %v5265_v30 = vld [vmem:[#allocation42_spill] sm:$0xff]  ;;  %v1949_v7 = vpop.f32.mrf.mxu0 }
 0x3ac   : > { %v1808_v10 = vpop.f32.mrf.mxu3  ;;  %v1619_v52 = vadd.f32 %v5264_v29, %v1489_v38  ;;  %v1490_v15 = vadd.f32 %v5265_v30, %v4388_v33  ;;  %v5270_v29 = vld [vmem:[#allocation47_spill] sm:$0xff] }
 0x3ad   : > { %v1878_v24 = vadd.f32 %v1808_v10, %v1752_v16  ;;  %v2201_v51 = vadd.f32 %v4575_v32, %v2165_v42 }
 0x3ae   : > { %v1754_v62 = vadd.f32 %v4481_v44, %v1619_v52  ;;  %v1492_v52 = vadd.f32 %v5270_v29, %v4406_v26 }
 0x3af   : > { %v2004_v19 = vadd.f32 %v4428_v17, %v1878_v24  ;;  %v2233_v0 = vmax.f32 %v2201_v51, 0.0  ;;  %v2075_v24 = vpop.f32.mrf.mxu1 }
 0x3b1   : > { %v2130_v37 = vadd.f32 %v4536_v5, %v2004_v19  ;;  %2813 = vmatmul.msk.bf16.gmra.mxu3 %vm814_vm2, %v5262_v36  ;;  %v5266_v19 = vld [vmem:[#allocation69_spill] sm:$0xff]  ;;  %v4686_v56 = vpop.f32.mrf.mxu2 }
 0x3b2   : > { %v1620_v28 = vadd.f32 %v5266_v19, %v1490_v15 }
 0x3b3   : > { %v2166_v49 = vmul.f32 %v4568_v8, %v2130_v37  ;;  %v5267_v37 = vld [vmem:[#allocation46_spill] sm:$0xff] }
 0x3b4   : > { %v1811_v17 = vpop.f32.mrf.mxu3  ;;  %v1755_v38 = vadd.f32 %v4492_v18, %v1620_v28 }
 0x3b5   : > { %v2202_v25 = vadd.f32 %v4575_v32, %v2166_v49  ;;  %v1879_v5 = vadd.f32 %v1811_v17, %v1753_v3  ;;  %v1952_v3 = vpop.f32.mrf.mxu0 }
 0x3b7   : > { %v2005_v23 = vadd.f32 %v4591_v54, %v1879_v5  ;;  %v2234_v53 = vmax.f32 %v2202_v25, 0.0  ;;  %v5269_v5 = vld [vmem:[#allocation71_spill] sm:$0xff] }
 0x3b9   : > { %v2262_v9 = vpack.c.bf16 %v2234_v53, %v2233_v0  ;;  %v2131_v50 = vadd.f32 %v4598_v48, %v2005_v23  ;;  %v5268_v48 = vld [vmem:[#allocation45_spill] sm:$0xff]  ;;  %v2078_v23 = vpop.f32.mrf.mxu1 }
 0x3ba   : > { %v1491_v44 = vadd.f32 %v5268_v48, %v4397_v22  ;;  %v4699_v22 = vpop.f32.mrf.mxu2 }
 0x3bb   : > { %2851 = vmatmul.msk.bf16.gmra.mxu2 %vm814_vm2, %v2262_v9  ;;  %v2167_v42 = vmul.f32 %v4568_v8, %v2131_v50 }
 0x3bc   : > { %v1813_v16 = vpop.f32.mrf.mxu3  ;;  %v1621_v0 = vadd.f32 %v5269_v5, %v1491_v44 }
 0x3bd   : > { %v1880_v10 = vadd.f32 %v1813_v16, %v1754_v62  ;;  %v2203_v36 = vadd.f32 %v4575_v32, %v2167_v42  ;;  %v5271_v62 = vld [vmem:[#allocation73_spill] sm:$0xff] }
 0x3be   : > { %v1756_v9 = vadd.f32 %v4502_v31, %v1621_v0  ;;  %v1622_v16 = vadd.f32 %v5271_v62, %v1492_v52 }
 0x3bf   : > { %v2006_v54 = vadd.f32 %v4613_v46, %v1880_v10  ;;  %v2235_v17 = vmax.f32 %v2203_v36, 0.0  ;;  %v1954_v10 = vpop.f32.mrf.mxu0 }
 0x3c1   : > { %v2132_v33 = vadd.f32 %v4616_v14, %v2006_v54  ;;  %2814 = vmatmul.msk.bf16.gmra.mxu3 %vm814_vm2, %v5267_v37  ;;  %v5272_v54 = vld [vmem:[#allocation49_spill] sm:$0xff]  ;;  %v2080_v26 = vpop.f32.mrf.mxu1 }
 0x3c2   : > { %v4717_v37 = vpop.f32.mrf.mxu2 }
 0x3c3   : > { %v2168_v35 = vmul.f32 %v4568_v8, %v2132_v33  ;;  %v1757_v33 = vadd.f32 %v4513_v20, %v1622_v16 }
 0x3c4   : > { %v1816_v51 = vpop.f32.mrf.mxu3 }
 0x3c5   : > { %v2204_v46 = vadd.f32 %v4575_v32, %v2168_v35  ;;  %v1881_v49 = vadd.f32 %v1816_v51, %v1755_v38  ;;  %v5274_v38 = vld [vmem:[#allocation76_spill] sm:$0xff] }
 0x3c7   : > { %v2236_v25 = vmax.f32 %v2204_v46, 0.0  ;;  %v2007_v14 = vadd.f32 %v4627_v47, %v1881_v49  ;;  %v5275_v49 = vld [vmem:[#allocation51_spill] sm:$0xff] }
 0x3c9   : > { %v2263_v53 = vpack.c.bf16 %v2236_v25, %v2235_v17  ;;  %v2133_v18 = vadd.f32 %v4632_v4, %v2007_v14  ;;  %v5273_v4 = vld [vmem:[#allocation48_spill] sm:$0xff]  ;;  %v1494_v17 = vadd.f32 %v5275_v49, %v4424_v34  ;;  %v2083_v14 = vpop.f32.mrf.mxu1  ;;  %v5276_v34 = vld [vmem:[#allocation53_spill] sm:$0xff] }
 0x3ca   : > { %v1493_v19 = vadd.f32 %v5273_v4, %v4413_v11  ;;  %v1957_v11 = vpop.f32.mrf.mxu0  ;;  %v5278_v4 = vld [vmem:[#allocation55_spill] sm:$0xff] }
 0x3cb   : > { %2852 = vmatmul.msk.bf16.gmra.mxu2 %vm814_vm2, %v2263_v53  ;;  %v2169_v50 = vmul.f32 %v4568_v8, %v2133_v18  ;;  %v4727_v53 = vpop.f32.mrf.mxu2  ;;  %v1624_v52 = vadd.f32 %v4221_v1, %v1494_v17 }
 0x3cc   : > { %v1818_v30 = vpop.f32.mrf.mxu3  ;;  %v1623_v51 = vadd.f32 %v5274_v38, %v1493_v19 }
 0x3cd   : > { %v1882_v15 = vadd.f32 %v1818_v30, %v1756_v9  ;;  %v2205_v31 = vadd.f32 %v4575_v32, %v2169_v50  ;;  %v1759_v30 = vadd.f32 %v4531_v55, %v1624_v52  ;;  %v5279_v55 = vld [vmem:[#allocation98_spill] sm:$0xff]  ;;  %v5283_v52 = vld [vmem:[#allocation83_spill] sm:$0xff] }
 0x3ce   : > { %v1758_v20 = vadd.f32 %v4524_v2, %v1623_v51  ;;  %v5281_v51 = vld [vmem:[#allocation90_spill] sm:$0xff] }
 0x3cf   : > { %v2008_v47 = vadd.f32 %v4647_v12, %v1882_v15 }
 0x3d1   : > { %v2134_v42 = vadd.f32 %v4649_v59, %v2008_v47  ;;  %2815 = vmatmul.msk.bf16.gmra.mxu3 %vm814_vm2, %v5272_v54  ;;  %v2237_v59 = vmax.f32 %v2205_v31, 0.0  ;;  %v5277_v54 = vld [vmem:[#allocation88_spill] sm:$0xff] }
 0x3d2   : > { %v1959_v15 = vpop.f32.mrf.mxu0  ;;  %v1496_v19 = vadd.f32 %v5278_v4, %v5277_v54  ;;  %v5287_v4 = vld [vmem:[#allocation92_spill] sm:$0xff] }
 0x3d3   : > { %v2170_v28 = vmul.f32 %v4568_v8, %v2134_v42  ;;  %v4739_v42 = vpop.f32.mrf.mxu2 }
 0x3d4   : > { %v1821_v12 = vpop.f32.mrf.mxu3 }
 0x3d5   : > { %v2206_v48 = vadd.f32 %v4575_v32, %v2170_v28  ;;  %v1883_v44 = vadd.f32 %v1821_v12, %v1757_v33 }
 0x3d7   : > { %v2238_v36 = vmax.f32 %v2206_v48, 0.0  ;;  %v2009_v35 = vadd.f32 %v4664_v61, %v1883_v44 }
 0x3d9   : > { %v2264_v46 = vpack.c.bf16 %v2238_v36, %v2237_v59  ;;  %v2135_v25 = vadd.f32 %v4671_v39, %v2009_v35  ;;  %v1495_v39 = vadd.f32 %v5276_v34, %v4432_v60 }
 0x3da   : > { %v1962_v48 = vpop.f32.mrf.mxu0 }
 0x3db   : > { %2853 = vmatmul.msk.bf16.gmra.mxu2 %vm814_vm2, %v2264_v46  ;;  %v2171_v61 = vmul.f32 %v4568_v8, %v2135_v25  ;;  %v4747_v38 = vpop.f32.mrf.mxu2  ;;  %v5282_v46 = vld [vmem:[#allocation58_spill] sm:$0xff] }
 0x3dc   : > { %v1823_v5 = vpop.f32.mrf.mxu3  ;;  %v1497_v49 = vadd.f32 %v5282_v46, %v5281_v51  ;;  %v5290_v46 = vld [vmem:[#allocation15_spill] sm:$0xff] }
 0x3dd   : > { %v1884_v0 = vadd.f32 %v1823_v5, %v1758_v20  ;;  %v2207_v9 = vadd.f32 %v4575_v32, %v2171_v61 }
 0x3df   : > { %v2010_v29 = vadd.f32 %v1949_v7, %v1884_v0  ;;  %v2085_v7 = vpop.f32.mrf.mxu1  ;;  %v2239_v16 = vmax.f32 %v2207_v9, 0.0  ;;  %v5284_v9 = vld [vmem:[#allocation14_spill] sm:$0xff] }
 0x3e1   : > { %v2136_v18 = vadd.f32 %v2075_v24, %v2010_v29  ;;  %1865 = vmatmul.bf16.gmra.mxu3 %v5152_v57  ;;  %v1625_v57 = vadd.f32 %v4241_v45, %v1495_v39 }
 0x3e3   : > { %v2172_v2 = vmul.f32 %v4568_v8, %v2136_v18  ;;  %v1760_v28 = vadd.f32 %v5279_v55, %v1625_v57  ;;  %v1964_v18 = vpop.f32.mrf.mxu0 }
 0x3e4   : > { %v1826_v50 = vpop.f32.mrf.mxu3 }
 0x3e5   : > { %v2208_v47 = vadd.f32 %v4575_v32, %v2172_v2  ;;  %v1885_v62 = vadd.f32 %v1826_v50, %v1759_v30  ;;  %v5285_v2 = vld [vmem:[#allocation61_spill] sm:$0xff] }
 0x3e6   : > { %v1498_v30 = vadd.f32 %v5285_v2, %v5284_v9  ;;  %v5293_v2 = vld [vmem:[#allocation60_spill] sm:$0xff] }
 0x3e7   : > { %v2240_v1 = vmax.f32 %v2208_v47, 0.0  ;;  %v2011_v24 = vadd.f32 %v1952_v3, %v1885_v62  ;;  %v5280_v3 = vld [vmem:[#allocation81_spill] sm:$0xff]  ;;  %v2088_v45 = vpop.f32.mrf.mxu1  ;;  %v4760_v47 = vpop.f32.mrf.mxu2 }
 0x3e8   : > { %v1626_v36 = vadd.f32 %v5280_v3, %v1496_v19  ;;  %v5288_v19 = vld [vmem:[#allocation63_spill] sm:$0xff] }
 0x3e9   : > { %v2265_v60 = vpack.c.bf16 %v2240_v1, %v2239_v16  ;;  %v2137_v31 = vadd.f32 %v2078_v23, %v2011_v24  ;;  %v5286_v24 = vld [vmem:[#allocation84_spill] sm:$0xff] }
 0x3ea   : > { %v1761_v25 = vadd.f32 %v4552_v41, %v1626_v36  ;;  %v1628_v57 = vadd.f32 %v5286_v24, %v1498_v30  ;;  %v5289_v36 = vld [vmem:[#allocation12_spill] sm:$0xff] }
 0x3eb   : > { %2854 = vmatmul.msk.bf16.gmra.mxu2 %vm814_vm2, %v2265_v60  ;;  %v2173_v44 = vmul.f32 %v4568_v8, %v2137_v31  ;;  %v1967_v54 = vpop.f32.mrf.mxu0  ;;  %v1499_v31 = vadd.f32 %v5288_v19, %v5287_v4  ;;  %v5294_v30 = vld [vmem:[#allocation68_spill] sm:$0xff]  ;;  %v5295_v19 = vld [vmem:[#allocation87_spill] sm:$0xff] }
 0x3ec   : > { %v1828_v33 = vpop.f32.mrf.mxu3 }
 0x3ed   : > { %v1886_v12 = vadd.f32 %v1828_v33, %v1760_v28  ;;  %v2209_v23 = vadd.f32 %v4575_v32, %v2173_v44 }
 0x3ef   : > { %v2012_v59 = vadd.f32 %v1954_v10, %v1886_v12  ;;  %v2241_v10 = vmax.f32 %v2209_v23, 0.0  ;;  %v2090_v39 = vpop.f32.mrf.mxu1 }
 0x3f1   : > { %v2138_v35 = vadd.f32 %v2080_v26, %v2012_v59  ;;  %v1627_v26 = vadd.f32 %v5283_v52, %v1497_v49  ;;  %v4770_v59 = vpop.f32.mrf.mxu2  ;;  %v5291_v49 = vld [vmem:[#allocation65_spill] sm:$0xff]  ;;  %v5292_v52 = vld [vmem:[#allocation86_spill] sm:$0xff] }
 0x3f2   : > { %v1500_v23 = vadd.f32 %v5291_v49, %v5290_v46 }
 0x3f3   : > { %v2174_v17 = vmul.f32 %v4568_v8, %v2138_v35  ;;  %v1762_v41 = vadd.f32 %v4561_v40, %v1627_v26  ;;  %v1763_v40 = vadd.f32 %v4586_v58, %v1628_v57  ;;  %v1629_v35 = vadd.f32 %v5289_v36, %v1499_v31 }
 0x3f4   : > { %v1831_v20 = vpop.f32.mrf.mxu3  ;;  %v1630_v26 = vadd.f32 %v5292_v52, %v1500_v23  ;;  %v5299_v52 = vld [vmem:[#allocation94_spill] sm:$0xff] }
 0x3f5   : > { %v2210_v5 = vadd.f32 %v4575_v32, %v2174_v17  ;;  %v1887_v0 = vadd.f32 %v1831_v20, %v1761_v25  ;;  %v1764_v58 = vadd.f32 %v4600_v43, %v1629_v35  ;;  %v4780_v25 = vld [vmem:[%s5074_s8] ss:$0 sm:$0xff]  ;;  %v1969_v20 = vpop.f32.mrf.mxu0  ;;  %v2933_v35 = vld [vmem:[%s3214_s28 + $0x8] sm:$0xff] }
 0x3f7   : > { %v2242_v61 = vmax.f32 %v2210_v5, 0.0  ;;  %v2013_v29 = vadd.f32 %v1957_v11, %v1887_v0  ;;  %v2093_v28 = vpop.f32.mrf.mxu1  ;;  %v4785_v0 = vld [vmem:[%s5075_s9] ss:$0 sm:$0xff] }
 0x3f9   : > { %v2266_v34 = vpack.c.bf16 %v2242_v61, %v2241_v10  ;;  %v2139_v50 = vadd.f32 %v2083_v14, %v2013_v29 }
 0x3fb   : > { %2855 = vmatmul.msk.bf16.gmra.mxu2 %vm814_vm2, %v2266_v34  ;;  %v2175_v1 = vmul.f32 %v4568_v8, %v2139_v50  ;;  %v1501_v50 = vadd.f32 %v5294_v30, %v5293_v2  ;;  %v2934_v30 = vld [vmem:[%s3214_s28 + $0x10] sm:$0xff] }
 0x3fc   : > { %v1833_v62 = vpop.f32.mrf.mxu3 }
 0x3fd   : > { %v1888_v16 = vadd.f32 %v1833_v62, %v1762_v41  ;;  %v2211_v14 = vadd.f32 %v4575_v32, %v2175_v1  ;;  %v1631_v31 = vadd.f32 %v5295_v19, %v1501_v50 }
 0x3ff   : > { %v2014_v11 = vadd.f32 %v1959_v15, %v1888_v16  ;;  %v2243_v15 = vmax.f32 %v2211_v14, 0.0  ;;  %v2095_v10 = vpop.f32.mrf.mxu1  ;;  %v2932_v16 = vld [vmem:[%s3214_s28] sm:$0xff]  ;;  %v1766_v46 = vadd.f32 %v4637_v6, %v1631_v31 }
 0x400   : > { %v5300_v6 = vld [vmem:[#allocation72_spill] sm:$0xff] }
 0x401   : > { %v2140_v60 = vadd.f32 %v2085_v7, %v2014_v11  ;;  %v1765_v11 = vadd.f32 %v4620_v13, %v1630_v26  ;;  %v1503_v26 = vadd.f32 %v5300_v6, %v5299_v52 }
 0x403   : > { %v2176_v55 = vmul.f32 %v4568_v8, %v2140_v60  ;;  %v1972_v60 = vpop.f32.mrf.mxu0 }
 0x404   : > { %v1836_v33 = vpop.f32.mrf.mxu3 }
 0x405   : > { %v2212_v12 = vadd.f32 %v4575_v32, %v2176_v55  ;;  %v1889_v44 = vadd.f32 %v1836_v33, %v1763_v40 }
 0x407   : > { %v2244_v3 = vmax.f32 %v2212_v12, 0.0  ;;  %v2015_v7 = vadd.f32 %v1962_v48, %v1889_v44  ;;  %v2098_v33 = vpop.f32.mrf.mxu1 }
 0x409   : > { %v2267_v51 = vpack.c.bf16 %v2244_v3, %v2243_v15  ;;  %v2141_v17 = vadd.f32 %v2088_v45, %v2015_v7  ;;  %v5296_v15 = vld [vmem:[#allocation16_spill] sm:$0xff]  ;;  %v5297_v3 = vld [vmem:[#allocation70_spill] sm:$0xff] }
 0x40a   : > { %v1502_v7 = vadd.f32 %v5297_v3, %v5296_v15 }
 0x40b   : > { %2856 = vmatmul.msk.bf16.gmra.mxu2 %vm814_vm2, %v2267_v51  ;;  %v2177_v61 = vmul.f32 %v4568_v8, %v2141_v17 }
 0x40c   : > { %v1838_v5 = vpop.f32.mrf.mxu3 }
 0x40d   : > { %v1890_v48 = vadd.f32 %v1838_v5, %v1764_v58  ;;  %v2213_v41 = vadd.f32 %v4575_v32, %v2177_v61  ;;  %v1974_v61 = vpop.f32.mrf.mxu0 }
 0x40e   : > { %v2336_v45 = vpop.f32.mrf.mxu2 }
 0x40f   : > { %v2016_v29 = vadd.f32 %v1964_v18, %v1890_v48  ;;  %v2420_v43 = vmul.f32 %v4780_v25, %v2336_v45  ;;  %v2245_v14 = vmax.f32 %v2213_v41, 0.0  ;;  %v5298_v45 = vld [vmem:[#allocation31_spill] sm:$0xff] }
 0x411   : > { %v2142_v34 = vadd.f32 %v2090_v39, %v2016_v29  ;;  %v2456_v9 = vadd.f32 %v4785_v0, %v2420_v43 }
 0x413   : > { %v2178_v62 = vmul.f32 %v4568_v8, %v2142_v34  ;;  %v2488_v1 = vadd.f32 %v2932_v16, %v2456_v9  ;;  %v2100_v34 = vpop.f32.mrf.mxu1 }
 0x414   : > { %v1841_v18 = vpop.f32.mrf.mxu3 }
 0x415   : > { %v2214_v24 = vadd.f32 %v4575_v32, %v2178_v62  ;;  %v2520_v57 = vmax.f32 %v2488_v1, 0.0  ;;  %v1891_v39 = vadd.f32 %v1841_v18, %v1765_v11  ;;  %v5301_v11 = vld [vmem:[#allocation34_spill] sm:$0xff]  ;;  %v1977_v31 = vpop.f32.mrf.mxu0 }
 0x416   : > { %v2338_v4 = vpop.f32.mrf.mxu2  ;;  %v1633_v18 = vadd.f32 %v5301_v11, %v1503_v26  ;;  %v5309_v11 = vld [vmem:[#allocation79_spill] sm:$0xff] }
 0x417   : > { %v2246_v55 = vmax.f32 %v2214_v24, 0.0  ;;  %2552 = vst.msk [vmem:[%s4801_s12] sm:$0xff] %vm439_vm0, %v2520_v57  ;;  %v2017_v40 = vadd.f32 %v1967_v54, %v1891_v39  ;;  %v2421_v13 = vmul.f32 %v4780_v25, %v2338_v4 }
 0x418   : > { %v1768_v15 = vadd.f32 %v4674_v27, %v1633_v18  ;;  %v5306_v27 = vld [vmem:[#allocation78_spill] sm:$0xff] }
 0x419   : > { %v2457_v12 = vadd.f32 %v4785_v0, %v2421_v13  ;;  %v2268_v44 = vpack.c.bf16 %v2246_v55, %v2245_v14  ;;  %v2143_v36 = vadd.f32 %v2093_v28, %v2017_v40  ;;  %v1632_v28 = vadd.f32 %v5298_v45, %v1502_v7  ;;  %v5302_v14 = vld [vmem:[#allocation17_spill] sm:$0xff]  ;;  %v5303_v55 = vld [vmem:[#allocation75_spill] sm:$0xff] }
 0x41a   : > { %v1504_v40 = vadd.f32 %v5303_v55, %v5302_v14 }
 0x41b   : > { %v2489_v51 = vadd.f32 %v2933_v35, %v2457_v12  ;;  %2857 = vmatmul.msk.bf16.gmra.mxu2 %vm814_vm2, %v2268_v44  ;;  %v2179_v58 = vmul.f32 %v4568_v8, %v2143_v36  ;;  %v2935_v12 = vld [vmem:[%s3214_s28 + $0x18] sm:$0xff]  ;;  %v2103_v3 = vpop.f32.mrf.mxu1 }
 0x41c   : > { %v1843_v49 = vpop.f32.mrf.mxu3 }
 0x41d   : > { %v2521_v54 = vmax.f32 %v2489_v51, 0.0  ;;  %v1892_v23 = vadd.f32 %v1843_v49, %v1766_v46  ;;  %v2215_v9 = vadd.f32 %v4575_v32, %v2179_v58  ;;  %v5305_v58 = vld [vmem:[#allocation95_spill] sm:$0xff] }
 0x41e   : > { %v2341_v17 = vpop.f32.mrf.mxu2 }
 0x41f   : > { %2553 = vst.msk [vmem:[%s4801_s12 + $0x8] sm:$0xff] %vm439_vm0, %v2521_v54  ;;  %v2018_v5 = vadd.f32 %v1969_v20, %v1892_v23  ;;  %v2422_v48 = vmul.f32 %v4780_v25, %v2341_v17  ;;  %v1767_v20 = vadd.f32 %v4656_v63, %v1632_v28  ;;  %v2247_v24 = vmax.f32 %v2215_v9, 0.0  ;;  %v2936_v28 = vld [vmem:[%s3214_s28 + $0x20] sm:$0xff] }
 0x421   : > { %v2144_v29 = vadd.f32 %v2095_v10, %v2018_v5  ;;  %v2458_v43 = vadd.f32 %v4785_v0, %v2422_v48  ;;  %v1505_v5 = vadd.f32 %v5306_v27, %v5305_v58 }
 0x423   : > { %v2180_v2 = vmul.f32 %v4568_v8, %v2144_v29  ;;  %v2490_v50 = vadd.f32 %v2934_v30, %v2458_v43  ;;  %v2105_v9 = vpop.f32.mrf.mxu1  ;;  %v5307_v30 = vld [vmem:[#allocation39_spill] sm:$0xff] }
 0x424   : > { %v1846_v41 = vpop.f32.mrf.mxu3 }
 0x425   : > { %v2216_v62 = vadd.f32 %v4575_v32, %v2180_v2  ;;  %v2522_v10 = vmax.f32 %v2490_v50, 0.0  ;;  %v1893_v16 = vadd.f32 %v1846_v41, %v1767_v20  ;;  %v1635_v50 = vadd.f32 %v5307_v30, %v1505_v5 }
 0x426   : > { %v2343_v1 = vpop.f32.mrf.mxu2 }
 0x427   : > { %v2248_v57 = vmax.f32 %v2216_v62, 0.0  ;;  %2554 = vst.msk [vmem:[%s4801_s12 + $0x10] sm:$0xff] %vm439_vm0, %v2522_v10  ;;  %v2019_v39 = vadd.f32 %v1972_v60, %v1893_v16  ;;  %v2423_v4 = vmul.f32 %v4780_v25, %v2343_v1  ;;  %v5308_v1 = vld [vmem:[#allocation18_spill] sm:$0xff] }
 0x428   : > { %v1506_v18 = vadd.f32 %v5309_v11, %v5308_v1 }
 0x429   : > { %v2459_v19 = vadd.f32 %v4785_v0, %v2423_v4  ;;  %v2269_v63 = vpack.c.bf16 %v2248_v57, %v2247_v24  ;;  %v2145_v13 = vadd.f32 %v2098_v33, %v2019_v39  ;;  %v5304_v33 = vld [vmem:[#allocation36_spill] sm:$0xff]  ;;  %v2937_v57 = vld [vmem:[%s3214_s28 + $0x28] sm:$0xff]  ;;  %v1770_v4 = vadd.f32 %v4699_v22, %v1635_v50  ;;  %v2939_v50 = vld [vmem:[%s3214_s28 + $0x38] sm:$0xff] }
 0x42a   : > { %v1634_v54 = vadd.f32 %v5304_v33, %v1504_v40 }
 0x42b   : > { %v2491_v44 = vadd.f32 %v2935_v12, %v2459_v19  ;;  %2858 = vmatmul.msk.bf16.gmra.mxu2 %vm814_vm2, %v2269_v63  ;;  %v2181_v51 = vmul.f32 %v4568_v8, %v2145_v13 }
 0x42c   : > { %v1848_v60 = vpop.f32.mrf.mxu3  ;;  %v1769_v43 = vadd.f32 %v4686_v56, %v1634_v54 }
 0x42d   : > { %v2523_v7 = vmax.f32 %v2491_v44, 0.0  ;;  %v1894_v36 = vadd.f32 %v1848_v60, %v1768_v15  ;;  %v2217_v48 = vadd.f32 %v4575_v32, %v2181_v51  ;;  %v5310_v44 = vld [vmem:[#allocation41_spill] sm:$0xff] }
 0x42e   : > { %v2346_v35 = vpop.f32.mrf.mxu2  ;;  %v1636_v15 = vadd.f32 %v5310_v44, %v1506_v18 }
 0x42f   : > { %2555 = vst.msk [vmem:[%s4801_s12 + $0x18] sm:$0xff] %vm439_vm0, %v2523_v7  ;;  %v2020_v46 = vadd.f32 %v1974_v61, %v1894_v36  ;;  %v2424_v49 = vmul.f32 %v4780_v25, %v2346_v35  ;;  %v1979_v61 = vpop.f32.mrf.mxu0  ;;  %v2249_v20 = vmax.f32 %v2217_v48, 0.0  ;;  %v5311_v7 = vld [vmem:[#allocation96_spill] sm:$0xff] }
 0x430   : > { %v5312_v36 = vld [vmem:[#allocation80_spill] sm:$0xff]  ;;  %v1771_v54 = vadd.f32 %v4717_v37, %v1636_v15 }
 0x431   : > { %v2146_v23 = vadd.f32 %v2100_v34, %v2020_v46  ;;  %v2460_v17 = vadd.f32 %v4785_v0, %v2424_v49  ;;  %v1507_v35 = vadd.f32 %v5312_v36, %v5311_v7  ;;  %v2938_v49 = vld [vmem:[%s3214_s28 + $0x30] sm:$0xff]  ;;  %v5313_v48 = vld [vmem:[#allocation44_spill] sm:$0xff]  ;;  %v5319_v36 = vld [vmem:[#allocation89_spill] sm:$0xff] }
 0x433   : > { %v2182_v45 = vmul.f32 %v4568_v8, %v2146_v23  ;;  %v2492_v29 = vadd.f32 %v2936_v28, %v2460_v17 }
 0x434   : > { %v1851_v52 = vpop.f32.mrf.mxu3 }
 0x435   : > { %v2218_v6 = vadd.f32 %v4575_v32, %v2182_v45  ;;  %v2524_v26 = vmax.f32 %v2492_v29, 0.0  ;;  %v1895_v34 = vadd.f32 %v1851_v52, %v1769_v43  ;;  %v1637_v45 = vadd.f32 %v5313_v48, %v1507_v35 }
 0x436   : > { %v2348_v2 = vpop.f32.mrf.mxu2 }
 0x437   : > { %v2250_v41 = vmax.f32 %v2218_v6, 0.0  ;;  %2556 = vst.msk [vmem:[%s4801_s12 + $0x20] sm:$0xff] %vm439_vm0, %v2524_v26  ;;  %v2021_v62 = vadd.f32 %v1977_v31, %v1895_v34  ;;  %v2425_v10 = vmul.f32 %v4780_v25, %v2348_v2  ;;  %v1982_v14 = vpop.f32.mrf.mxu0  ;;  %v5314_v34 = vld [vmem:[#allocation19_spill] sm:$0xff] }
 0x439   : > { %v2461_v56 = vadd.f32 %v4785_v0, %v2425_v10  ;;  %v2270_v16 = vpack.c.bf16 %v2250_v41, %v2249_v20  ;;  %v2147_v24 = vadd.f32 %v2103_v3, %v2021_v62  ;;  %v2108_v3 = vpop.f32.mrf.mxu1  ;;  %v1772_v41 = vadd.f32 %v4727_v53, %v1637_v45  ;;  %v5318_v53 = vld [vmem:[#allocation22_spill] sm:$0xff] }
 0x43b   : > { %v2493_v39 = vadd.f32 %v2937_v57, %v2461_v56  ;;  %2859 = vmatmul.msk.bf16.gmra.mxu2 %vm814_vm2, %v2270_v16  ;;  %v2183_v40 = vmul.f32 %v4568_v8, %v2147_v24  ;;  %v5316_v24 = vld [vmem:[#allocation13_spill] sm:$0xff] }
 0x43c   : > { %v1853_v19 = vpop.f32.mrf.mxu3 }
 0x43d   : > { %v2525_v63 = vmax.f32 %v2493_v39, 0.0  ;;  %v1896_v31 = vadd.f32 %v1853_v19, %v1770_v4  ;;  %v2219_v51 = vadd.f32 %v4575_v32, %v2183_v40  ;;  %v2940_v40 = vld [vmem:[%s3214_s28 + $0x40] sm:$0xff] }
 0x43e   : > { %v2351_v55 = vpop.f32.mrf.mxu2 }
 0x43f   : > { %2557 = vst.msk [vmem:[%s4801_s12 + $0x28] sm:$0xff] %vm439_vm0, %v2525_v63  ;;  %v2022_v13 = vadd.f32 %v1979_v61, %v1896_v31  ;;  %v2426_v12 = vmul.f32 %v4780_v25, %v2351_v55  ;;  %v2251_v28 = vmax.f32 %v2219_v51, 0.0  ;;  %v1984_v52 = vpop.f32.mrf.mxu0  ;;  %v5317_v63 = vld [vmem:[#allocation97_spill] sm:$0xff] }
 0x440   : > { %v1509_v31 = vadd.f32 %v5318_v53, %v5317_v63 }
 0x441   : > { %v2148_v60 = vadd.f32 %v2105_v9, %v2022_v13  ;;  %v2462_v22 = vadd.f32 %v4785_v0, %v2426_v12  ;;  %v2110_v26 = vpop.f32.mrf.mxu1  ;;  %v5315_v9 = vld [vmem:[#allocation82_spill] sm:$0xff] }
 0x442   : > { %v1508_v2 = vadd.f32 %v5315_v9, %v5314_v34  ;;  %v1639_v35 = vadd.f32 %v5319_v36, %v1509_v31  ;;  %v5322_v9 = vld [vmem:[#allocation91_spill] sm:$0xff] }
 0x443   : > { %v2184_v46 = vmul.f32 %v4568_v8, %v2148_v60  ;;  %v2494_v33 = vadd.f32 %v2938_v49, %v2462_v22 }
 0x444   : > { %v1856_v23 = vpop.f32.mrf.mxu3  ;;  %v1638_v57 = vadd.f32 %v5316_v24, %v1508_v2  ;;  %v1774_v45 = vadd.f32 %v4747_v38, %v1639_v35  ;;  %v5323_v38 = vld [vmem:[#allocation26_spill] sm:$0xff] }
 0x445   : > { %v2220_v17 = vadd.f32 %v4575_v32, %v2184_v46  ;;  %v2526_v58 = vmax.f32 %v2494_v33, 0.0  ;;  %v1897_v27 = vadd.f32 %v1856_v23, %v1771_v54  ;;  %v5320_v23 = vld [vmem:[#allocation21_spill] sm:$0xff] }
 0x446   : > { %v2353_v5 = vpop.f32.mrf.mxu2  ;;  %v1773_v12 = vadd.f32 %v4739_v42, %v1638_v57 }
 0x447   : > { %v2252_v29 = vmax.f32 %v2220_v17, 0.0  ;;  %2558 = vst.msk [vmem:[%s4801_s12 + $0x30] sm:$0xff] %vm439_vm0, %v2526_v58  ;;  %v2023_v43 = vadd.f32 %v1982_v14, %v1897_v27  ;;  %v2427_v61 = vmul.f32 %v4780_v25, %v2353_v5  ;;  %v1987_v19 = vpop.f32.mrf.mxu0  ;;  %v5321_v17 = vld [vmem:[#allocation85_spill] sm:$0xff] }
 0x448   : > { %v1510_v58 = vadd.f32 %v5321_v17, %v5320_v23  ;;  %v2941_v5 = vld [vmem:[%s3214_s28 + $0x48] sm:$0xff] }
 0x449   : > { %v2463_v37 = vadd.f32 %v4785_v0, %v2427_v61  ;;  %v2271_v6 = vpack.c.bf16 %v2252_v29, %v2251_v28  ;;  %v2149_v30 = vadd.f32 %v2108_v3, %v2023_v43  ;;  %v2113_v44 = vpop.f32.mrf.mxu1 }
 0x44a   : > { %v1640_v2 = vadd.f32 %v5322_v9, %v1510_v58 }
 0x44b   : > { %v2495_v20 = vadd.f32 %v2939_v50, %v2463_v37  ;;  %2860 = vmatmul.msk.bf16.gmra.mxu2 %vm814_vm2, %v2271_v6  ;;  %v2185_v1 = vmul.f32 %v4568_v8, %v2149_v30 }
 0x44c   : > { %v1858_v62 = vpop.f32.mrf.mxu3 }
 0x44d   : > { %v2527_v10 = vmax.f32 %v2495_v20, 0.0  ;;  %v1898_v56 = vadd.f32 %v1858_v62, %v1772_v41  ;;  %v2221_v14 = vadd.f32 %v4575_v32, %v2185_v1  ;;  %v1511_v20 = vadd.f32 %v5323_v38, %v4549_v21 }
 0x44e   : > { %v2356_v16 = vpop.f32.mrf.mxu2 }
 0x44f   : > { %2559 = vst.msk [vmem:[%s4801_s12 + $0x38] sm:$0xff] %vm439_vm0, %v2527_v10  ;;  %v2024_v11 = vadd.f32 %v1984_v52, %v1898_v56  ;;  %v2428_v18 = vmul.f32 %v4780_v25, %v2356_v16  ;;  %v2253_v51 = vmax.f32 %v2221_v14, 0.0  ;;  %v1989_v28 = vpop.f32.mrf.mxu0  ;;  %v2942_v10 = vld [vmem:[%s3214_s28 + $0x50] sm:$0xff]  ;;  %v1775_v16 = vadd.f32 %v4760_v47, %v1640_v2 }
 0x451   : > { %v2150_v39 = vadd.f32 %v2110_v26, %v2024_v11  ;;  %v2464_v4 = vadd.f32 %v4785_v0, %v2428_v18  ;;  %v2115_v52 = vpop.f32.mrf.mxu1 }
 0x453   : > { %v2186_v55 = vmul.f32 %v4568_v8, %v2150_v39  ;;  %v2496_v13 = vadd.f32 %v2940_v40, %v2464_v4 }
 0x454   : > { %v1861_v15 = vpop.f32.mrf.mxu3 }
 0x455   : > { %v2222_v3 = vadd.f32 %v4575_v32, %v2186_v55  ;;  %v2528_v60 = vmax.f32 %v2496_v13, 0.0  ;;  %v1899_v22 = vadd.f32 %v1861_v15, %v1773_v12  ;;  %v2943_v13 = vld [vmem:[%s3214_s28 + $0x58] sm:$0xff] }
 0x456   : > { %v2358_v7 = vpop.f32.mrf.mxu2 }
 0x457   : > { %v2254_v46 = vmax.f32 %v2222_v3, 0.0  ;;  %2560 = vst.msk [vmem:[%s4801_s12 + $0x40] sm:$0xff] %vm439_vm0, %v2528_v60  ;;  %v2025_v49 = vadd.f32 %v1987_v19, %v1899_v22  ;;  %v2429_v33 = vmul.f32 %v4780_v25, %v2358_v7  ;;  %v1992_v1 = vpop.f32.mrf.mxu0  ;;  %v5324_v19 = vld [vmem:[#allocation93_spill] sm:$0xff] }
 0x458   : > { %v1641_v21 = vadd.f32 %v5324_v19, %v1511_v20 }
 0x459   : > { %v2465_v42 = vadd.f32 %v4785_v0, %v2429_v33  ;;  %v2272_v54 = vpack.c.bf16 %v2254_v46, %v2253_v51  ;;  %v2151_v27 = vadd.f32 %v2113_v44, %v2025_v49  ;;  %v2118_v39 = vpop.f32.mrf.mxu1 }
 0x45a   : > { %v1776_v44 = vadd.f32 %v4770_v59, %v1641_v21 }
 0x45b   : > { %v2497_v48 = vadd.f32 %v2941_v5, %v2465_v42  ;;  %2861 = vmatmul.msk.bf16.gmra.mxu2 %vm814_vm2, %v2272_v54  ;;  %v2187_v6 = vmul.f32 %v4568_v8, %v2151_v27  ;;  %v2944_v54 = vld [vmem:[%s3214_s28 + $0x60] sm:$0xff] }
 0x45c   : > { %v1863_v29 = vpop.f32.mrf.mxu3 }
 0x45d   : > { %v2529_v43 = vmax.f32 %v2497_v48, 0.0  ;;  %v1900_v61 = vadd.f32 %v1863_v29, %v1774_v45  ;;  %v2223_v41 = vadd.f32 %v4575_v32, %v2187_v6  ;;  %v2946_v6 = vld [vmem:[%s3214_s28 + $0x70] sm:$0xff] }
 0x45e   : > { %v2361_v37 = vpop.f32.mrf.mxu2 }
 0x45f   : > { %2561 = vst.msk [vmem:[%s4801_s12 + $0x48] sm:$0xff] %vm439_vm0, %v2529_v43  ;;  %v2026_v26 = vadd.f32 %v1989_v28, %v1900_v61  ;;  %v2430_v34 = vmul.f32 %v4780_v25, %v2361_v37  ;;  %v2255_v63 = vmax.f32 %v2223_v41, 0.0  ;;  %v1994_v22 = vpop.f32.mrf.mxu0 }
 0x461   : > { %v2152_v30 = vadd.f32 %v2115_v52, %v2026_v26  ;;  %v2466_v50 = vadd.f32 %v4785_v0, %v2430_v34  ;;  %v2120_v46 = vpop.f32.mrf.mxu1 }
 0x463   : > { %v2188_v62 = vmul.f32 %v4568_v8, %v2152_v30  ;;  %v2498_v56 = vadd.f32 %v2942_v10, %v2466_v50  ;;  %v2947_v50 = vld [vmem:[%s3214_s28 + $0x78] sm:$0xff] }
 0x464   : > { %v1866_v11 = vpop.f32.mrf.mxu3 }
 0x465   : > { %v2224_v18 = vadd.f32 %v4575_v32, %v2188_v62  ;;  %v2530_v24 = vmax.f32 %v2498_v56, 0.0  ;;  %v1901_v57 = vadd.f32 %v1866_v11, %v1775_v16  ;;  %v2948_v56 = vld [vmem:[%s3214_s28 + $0x80] sm:$0xff] }
 0x466   : > { %v2363_v4 = vpop.f32.mrf.mxu2 }
 0x467   : > { %v2256_v53 = vmax.f32 %v2224_v18, 0.0  ;;  %2562 = vst.msk [vmem:[%s4801_s12 + $0x50] sm:$0xff] %vm439_vm0, %v2530_v24  ;;  %v2027_v31 = vadd.f32 %v1992_v1, %v1901_v57  ;;  %v2431_v14 = vmul.f32 %v4780_v25, %v2363_v4  ;;  %v2949_v57 = vld [vmem:[%s3214_s28 + $0x88] sm:$0xff] }
 0x469   : > { %v2467_v47 = vadd.f32 %v4785_v0, %v2431_v14  ;;  %v2273_v55 = vpack.c.bf16 %v2256_v53, %v2255_v63  ;;  %v2153_v40 = vadd.f32 %v2118_v39, %v2027_v31  ;;  %v2950_v53 = vld [vmem:[%s3214_s28 + $0x90] sm:$0xff] }
 0x46b   : > { %v2499_v12 = vadd.f32 %v2943_v13, %v2467_v47  ;;  %2862 = vmatmul.msk.bf16.gmra.mxu2 %vm814_vm2, %v2273_v55  ;;  %v2189_v36 = vmul.f32 %v4568_v8, %v2153_v40  ;;  %v2951_v13 = vld [vmem:[%s3214_s28 + $0x98] sm:$0xff] }
 0x46c   : > { %v1868_v15 = vpop.f32.mrf.mxu3 }
 0x46d   : > { %v2531_v3 = vmax.f32 %v2499_v12, 0.0  ;;  %v1902_v60 = vadd.f32 %v1868_v15, %v1776_v44  ;;  %v2225_v59 = vadd.f32 %v4575_v32, %v2189_v36 }
 0x46e   : > { %v2366_v7 = vpop.f32.mrf.mxu2 }
 0x46f   : > { %2563 = vst.msk [vmem:[%s4801_s12 + $0x58] sm:$0xff] %vm439_vm0, %v2531_v3  ;;  %v2028_v35 = vadd.f32 %v1994_v22, %v1902_v60  ;;  %v2432_v51 = vmul.f32 %v4780_v25, %v2366_v7  ;;  %v2257_v5 = vmax.f32 %v2225_v59, 0.0  ;;  %v2952_v22 = vld [vmem:[%s3214_s28 + $0xa0] sm:$0xff] }
 0x471   : > { %v2154_v49 = vadd.f32 %v2120_v46, %v2028_v35  ;;  %v2468_v33 = vadd.f32 %v4785_v0, %v2432_v51 }
 0x473   : > { %v2190_v42 = vmul.f32 %v4568_v8, %v2154_v49  ;;  %v2500_v23 = vadd.f32 %v2944_v54, %v2468_v33  ;;  %v2945_v8 = vld [vmem:[%s3214_s28 + $0x68] sm:$0xff] }
 0x474   : > { %v2953_v49 = vld [vmem:[%s3214_s28 + $0xa8] sm:$0xff] }
 0x475   : > { %v2226_v17 = vadd.f32 %v4575_v32, %v2190_v42  ;;  %v2532_v58 = vmax.f32 %v2500_v23, 0.0 }
 0x476   : > { %v2368_v27 = vpop.f32.mrf.mxu2 }
 0x477   : > { %v2258_v48 = vmax.f32 %v2226_v17, 0.0  ;;  %2564 = vst.msk [vmem:[%s4801_s12 + $0x60] sm:$0xff] %vm439_vm0, %v2532_v58  ;;  %v2433_v45 = vmul.f32 %v4780_v25, %v2368_v27  ;;  %v2954_v17 = vld [vmem:[%s3214_s28 + $0xb0] sm:$0xff] }
 0x479   : > { %v2469_v28 = vadd.f32 %v4785_v0, %v2433_v45  ;;  %v2274_v29 = vpack.c.bf16 %v2258_v48, %v2257_v5 }
 0x47b   : > { %v2501_v43 = vadd.f32 %v2945_v8, %v2469_v28  ;;  %2863 = vmatmul.msk.bf16.gmra.mxu2 %vm814_vm2, %v2274_v29  ;;  %v2955_v28 = vld [vmem:[%s3214_s28 + $0xb8] sm:$0xff] }
 0x47d   : > { %v2533_v61 = vmax.f32 %v2501_v43, 0.0 }
 0x47e   : > { %v2371_v32 = vpop.f32.mrf.mxu2 }
 0x47f   : > { %2565 = vst.msk [vmem:[%s4801_s12 + $0x68] sm:$0xff] %vm439_vm0, %v2533_v61  ;;  %v2434_v52 = vmul.f32 %v4780_v25, %v2371_v32 }
 0x481   : > { %v2470_v37 = vadd.f32 %v4785_v0, %v2434_v52  ;;  %v2956_v52 = vld [vmem:[%s3214_s28 + $0xc0] sm:$0xff] }
 0x483   : > { %v2502_v26 = vadd.f32 %v2946_v6, %v2470_v37 }
 0x485   : > { %v2534_v34 = vmax.f32 %v2502_v26, 0.0 }
 0x486   : > { %v2373_v9 = vpop.f32.mrf.mxu2 }
 0x487   : > { %2566 = vst.msk [vmem:[%s4801_s12 + $0x70] sm:$0xff] %vm439_vm0, %v2534_v34  ;;  %v2435_v2 = vmul.f32 %v4780_v25, %v2373_v9 }
 0x489   : > { %v2471_v30 = vadd.f32 %v4785_v0, %v2435_v2  ;;  %v2957_v2 = vld [vmem:[%s3214_s28 + $0xc8] sm:$0xff] }
 0x48b   : > { %v2503_v38 = vadd.f32 %v2947_v50, %v2471_v30 }
 0x48d   : > { %v2535_v20 = vmax.f32 %v2503_v38, 0.0 }
 0x48e   : > { %v2376_v41 = vpop.f32.mrf.mxu2 }
 0x48f   : > { %2567 = vst.msk [vmem:[%s4801_s12 + $0x78] sm:$0xff] %vm439_vm0, %v2535_v20  ;;  %v2436_v62 = vmul.f32 %v4780_v25, %v2376_v41 }
 0x491   : > { %v2472_v10 = vadd.f32 %v4785_v0, %v2436_v62  ;;  %v2958_v62 = vld [vmem:[%s3214_s28 + $0xd0] sm:$0xff] }
 0x493   : > { %v2504_v16 = vadd.f32 %v2948_v56, %v2472_v10 }
 0x495   : > { %v2536_v1 = vmax.f32 %v2504_v16, 0.0 }
 0x496   : > { %v2378_v11 = vpop.f32.mrf.mxu2 }
 0x497   : > { %2568 = vst.msk [vmem:[%s4801_s12 + $0x80] sm:$0xff] %vm439_vm0, %v2536_v1  ;;  %v2437_v18 = vmul.f32 %v4780_v25, %v2378_v11 }
 0x499   : > { %v2473_v24 = vadd.f32 %v4785_v0, %v2437_v18  ;;  %v2959_v18 = vld [vmem:[%s3214_s28 + $0xd8] sm:$0xff] }
 0x49b   : > { %v2505_v39 = vadd.f32 %v2949_v57, %v2473_v24 }
 0x49d   : > { %v2537_v4 = vmax.f32 %v2505_v39, 0.0 }
 0x49e   : > { %v2381_v19 = vpop.f32.mrf.mxu2 }
 0x49f   : > { %2569 = vst.msk [vmem:[%s4801_s12 + $0x88] sm:$0xff] %vm439_vm0, %v2537_v4  ;;  %v2438_v21 = vmul.f32 %v4780_v25, %v2381_v19 }
 0x4a1   : > { %v2474_v63 = vadd.f32 %v4785_v0, %v2438_v21  ;;  %v2960_v21 = vld [vmem:[%s3214_s28 + $0xe0] sm:$0xff] }
 0x4a3   : > { %v2506_v31 = vadd.f32 %v2950_v53, %v2474_v63 }
 0x4a5   : > { %v2538_v14 = vmax.f32 %v2506_v31, 0.0 }
 0x4a6   : > { %v2383_v47 = vpop.f32.mrf.mxu2 }
 0x4a7   : > { %2570 = vst.msk [vmem:[%s4801_s12 + $0x90] sm:$0xff] %vm439_vm0, %v2538_v14  ;;  %v2439_v55 = vmul.f32 %v4780_v25, %v2383_v47 }
 0x4a9   : > { %v2475_v40 = vadd.f32 %v4785_v0, %v2439_v55  ;;  %v2961_v55 = vld [vmem:[%s3214_s28 + $0xe8] sm:$0xff] }
 0x4ab   : > { %v2507_v12 = vadd.f32 %v2951_v13, %v2475_v40 }
 0x4ad   : > { %v2539_v44 = vmax.f32 %v2507_v12, 0.0 }
 0x4ae   : > { %v2386_v15 = vpop.f32.mrf.mxu2 }
 0x4af   : > { %2571 = vst.msk [vmem:[%s4801_s12 + $0x98] sm:$0xff] %vm439_vm0, %v2539_v44  ;;  %v2440_v3 = vmul.f32 %v4780_v25, %v2386_v15 }
 0x4b1   : > { %v2476_v60 = vadd.f32 %v4785_v0, %v2440_v3  ;;  %v2962_v3 = vld [vmem:[%s3214_s28 + $0xf0] sm:$0xff] }
 0x4b3   : > { %v2508_v7 = vadd.f32 %v2952_v22, %v2476_v60 }
 0x4b5   : > { %v2540_v36 = vmax.f32 %v2508_v7, 0.0 }
 0x4b6   : > { %v2388_v35 = vpop.f32.mrf.mxu2 }
 0x4b7   : > { %2572 = vst.msk [vmem:[%s4801_s12 + $0xa0] sm:$0xff] %vm439_vm0, %v2540_v36  ;;  %v2441_v51 = vmul.f32 %v4780_v25, %v2388_v35 }
 0x4b9   : > { %v2477_v46 = vadd.f32 %v4785_v0, %v2441_v51  ;;  %v2963_v51 = vld [vmem:[%s3214_s28 + $0xf8] sm:$0xff] }
 0x4bb   : > { %v2509_v33 = vadd.f32 %v2953_v49, %v2477_v46 }
 0x4bd   : > { %v2541_v59 = vmax.f32 %v2509_v33, 0.0 }
 0x4be   : > { %v2391_v42 = vpop.f32.mrf.mxu2 }
 0x4bf   : > { %2573 = vst.msk [vmem:[%s4801_s12 + $0xa8] sm:$0xff] %vm439_vm0, %v2541_v59  ;;  %v2442_v54 = vmul.f32 %v4780_v25, %v2391_v42 }
 0x4c1   : > { %v2478_v23 = vadd.f32 %v4785_v0, %v2442_v54 }
 0x4c3   : > { %v2510_v58 = vadd.f32 %v2954_v17, %v2478_v23 }
 0x4c5   : > { %v2542_v27 = vmax.f32 %v2510_v58, 0.0 }
 0x4c6   : > { %v2393_v5 = vpop.f32.mrf.mxu2 }
 0x4c7   : > { %2574 = vst.msk [vmem:[%s4801_s12 + $0xb0] sm:$0xff] %vm439_vm0, %v2542_v27  ;;  %v2443_v48 = vmul.f32 %v4780_v25, %v2393_v5 }
 0x4c9   : > { %v2479_v45 = vadd.f32 %v4785_v0, %v2443_v48 }
 0x4cb   : > { %v2511_v29 = vadd.f32 %v2955_v28, %v2479_v45 }
 0x4cd   : > { %v2543_v8 = vmax.f32 %v2511_v29, 0.0 }
 0x4ce   : > { %v2396_v43 = vpop.f32.mrf.mxu2 }
 0x4cf   : > { %2575 = vst.msk [vmem:[%s4801_s12 + $0xb8] sm:$0xff] %vm439_vm0, %v2543_v8  ;;  %v2444_v61 = vmul.f32 %v4780_v25, %v2396_v43 }
 0x4d1   : > { %v2480_v32 = vadd.f32 %v4785_v0, %v2444_v61 }
 0x4d3   : > { %v2512_v37 = vadd.f32 %v2956_v52, %v2480_v32 }
 0x4d5   : > { %v2544_v6 = vmax.f32 %v2512_v37, 0.0 }
 0x4d6   : > { %v2398_v26 = vpop.f32.mrf.mxu2 }
 0x4d7   : > { %2576 = vst.msk [vmem:[%s4801_s12 + $0xc0] sm:$0xff] %vm439_vm0, %v2544_v6  ;;  %v2445_v34 = vmul.f32 %v4780_v25, %v2398_v26 }
 0x4d9   : > { %v2481_v9 = vadd.f32 %v4785_v0, %v2445_v34 }
 0x4db   : > { %v2513_v30 = vadd.f32 %v2957_v2, %v2481_v9 }
 0x4dd   : > { %v2545_v50 = vmax.f32 %v2513_v30, 0.0 }
 0x4de   : > { %v2401_v38 = vpop.f32.mrf.mxu2 }
 0x4df   : > { %2577 = vst.msk [vmem:[%s4801_s12 + $0xc8] sm:$0xff] %vm439_vm0, %v2545_v50  ;;  %v2446_v20 = vmul.f32 %v4780_v25, %v2401_v38 }
 0x4e1   : > { %v2482_v41 = vadd.f32 %v4785_v0, %v2446_v20 }
 0x4e3   : > { %v2514_v10 = vadd.f32 %v2958_v62, %v2482_v41 }
 0x4e5   : > { %v2546_v56 = vmax.f32 %v2514_v10, 0.0 }
 0x4e6   : > { %v2403_v16 = vpop.f32.mrf.mxu2 }
 0x4e7   : > { %2578 = vst.msk [vmem:[%s4801_s12 + $0xd0] sm:$0xff] %vm439_vm0, %v2546_v56  ;;  %v2447_v1 = vmul.f32 %v4780_v25, %v2403_v16 }
 0x4e9   : > { %v2483_v11 = vadd.f32 %v4785_v0, %v2447_v1 }
 0x4eb   : > { %v2515_v24 = vadd.f32 %v2959_v18, %v2483_v11 }
 0x4ed   : > { %v2547_v57 = vmax.f32 %v2515_v24, 0.0 }
 0x4ee   : > { %v2406_v39 = vpop.f32.mrf.mxu2 }
 0x4ef   : > { %2579 = vst.msk [vmem:[%s4801_s12 + $0xd8] sm:$0xff] %vm439_vm0, %v2547_v57  ;;  %v2448_v4 = vmul.f32 %v4780_v25, %v2406_v39 }
 0x4f1   : > { %v2484_v19 = vadd.f32 %v4785_v0, %v2448_v4 }
 0x4f3   : > { %v2516_v63 = vadd.f32 %v2960_v21, %v2484_v19 }
 0x4f5   : > { %v2548_v53 = vmax.f32 %v2516_v63, 0.0 }
 0x4f6   : > { %v2408_v31 = vpop.f32.mrf.mxu2 }
 0x4f7   : > { %2580 = vst.msk [vmem:[%s4801_s12 + $0xe0] sm:$0xff] %vm439_vm0, %v2548_v53  ;;  %v2449_v14 = vmul.f32 %v4780_v25, %v2408_v31 }
 0x4f9   : > { %v2485_v47 = vadd.f32 %v4785_v0, %v2449_v14 }
 0x4fb   : > { %v2517_v40 = vadd.f32 %v2961_v55, %v2485_v47 }
 0x4fd   : > { %v2549_v13 = vmax.f32 %v2517_v40, 0.0 }
 0x4fe   : > { %v2411_v12 = vpop.f32.mrf.mxu2 }
 0x4ff   : > { %2581 = vst.msk [vmem:[%s4801_s12 + $0xe8] sm:$0xff] %vm439_vm0, %v2549_v13  ;;  %v2450_v44 = vmul.f32 %v4780_v25, %v2411_v12 }
 0x501   : > { %v2486_v15 = vadd.f32 %v4785_v0, %v2450_v44 }
 0x503   : > { %v2518_v60 = vadd.f32 %v2962_v3, %v2486_v15 }
 0x505   : > { %v2550_v22 = vmax.f32 %v2518_v60, 0.0 }
 0x506   : > { %v2413_v7 = vpop.f32.mrf.mxu2 }
 0x507   : > { %2582 = vst.msk [vmem:[%s4801_s12 + $0xf0] sm:$0xff] %vm439_vm0, %v2550_v22  ;;  %v2451_v36 = vmul.f32 %v4780_v25, %v2413_v7 }
 0x509   : > { %v2487_v35 = vadd.f32 %v4785_v0, %v2451_v36 }
 0x50b   : > { %v2519_v46 = vadd.f32 %v2963_v51, %v2487_v35 }
 0x50d   : > { %v2551_v49 = vmax.f32 %v2519_v46, 0.0 }
 0x50f   : > { %2583 = vst.msk [vmem:[%s4801_s12 + $0xf8] sm:$0xff] %vm439_vm0, %v2551_v49 }
 0x510   : > { %3021 = shalt.err (!%p3018_p4)
}
 0x511   : > { %s3065_s18 = smov 128   ;;  %s3066_s12 = smov 8  }
 0x512   : > { %2877 = dma.vmem_to_hbm [thread:$0]  (%p3172_p11), %s2598_s24, 4096, %s2600_s20, %s2585_s17, %s3065_s18, %s3065_s18, %s3066_s12  }
 0x513 PF: > { %s2614_s26 = sand.u32 1, %s3048_s13   ;;  %p5326_p7 = scmp.ge.s32.totalorder %s3060_s16, 2 }
 0x514   : > { %s2615_s15 = scalar_lea.sflag [#allocation4], %s2614_s26 }
 0x515   : > { %p2884_p5 = pnand %p5326_p7, %p3176_p12 }
 0x517   : > { %p2885_p8 = pneg %p2884_p5 }
 0x519   : > { %3043 = dma.done.wait (%p2885_p8), %s2615_s15, 4096  }
 0x51a   : > { %3045 = vsyncadd (%p2885_p8), %s2615_s15, 4294963200  ;;  %s5327_s16 = sld [smem:[#allocation9_spill]]  ;;  %s5330_s13 = smov %s3052_s14 }
 0x51b   : > { %s5328_s22 = sld [smem:[#allocation8_spill]] }
 0x51c   : > { %s5329_s15 = sld [smem:[#allocation10_spill]] }
 0x520   : > { %p23_p10 = scmp.ge.s32.totalorder %s5327_s16, 4  }
 0x521   : > { %s5331_s14 = smov %s5328_s22 }
 0x522   :  { %25 = sbr.rel (!%p23_p10) target bundleno = 5 (0x5), region = 113 }
 0x527   :  { %2621 = vsyncpa [#allocation3], 1 }
 0x528   :  { %2623 = vsyncpa [#allocation3 + $0x1], 1 }
 0x529   :  { %2624 = vsyncpa [#allocation4], 1 }
 0x52a   :  { %2626 = vsyncpa [#allocation4 + $0x1], 1 }

</bundles_post_ra>
